<compile_context>
chip_gen: v6e
topology: v6e:2x2x1
jax: 0.10.0
libtpu: 0.0.40
codegen_flags: <defaults>
</compile_context>

<pallas_src>
import functools

import jax
import jax.numpy as jnp
from jax.experimental import pallas as pl
from jax.experimental.pallas import tpu as pltpu


def _round_up(x, m):
    return (x + m - 1) // m * m


def _pick_tile(dim, prefs):
    for p in prefs:
        if p <= dim and dim % p == 0:
            return p
    return dim


# ----------------------------------------------------------------------------
# Tiled matmul + bias (+ ReLU) kernel: y = act(x @ w + b)   (bf16 in, f32 acc)
# ----------------------------------------------------------------------------
def _matmul_bias_act_kernel(x_ref, w_ref, b_ref, o_ref, acc_ref, *, apply_relu):
    k = pl.program_id(2)

    @pl.when(k == 0)
    def _init():
        acc_ref[...] = jnp.zeros_like(acc_ref)

    acc_ref[...] += jnp.dot(
        x_ref[...], w_ref[...], preferred_element_type=jnp.float32
    )

    @pl.when(k == pl.num_programs(2) - 1)
    def _finalize():
        y = acc_ref[...] + b_ref[...]
        if apply_relu:
            y = jnp.maximum(y, 0.0)
        o_ref[...] = y.astype(o_ref.dtype)


def matmul_bias_act(x, w, b, *, relu, out_dtype=jnp.bfloat16):
    """x: (M, K) [any dtype], w: (Kp, Np) bf16 pre-padded, b: (1, Np) f32.

    Returns the padded (Mp, Np) result; caller slices if needed.
    """
    M, K = x.shape
    Kp, Np = w.shape
    Mp = _round_up(max(M, 1), 8)
    if (Mp, Kp) != (M, K):
        x = jnp.pad(x, ((0, Mp - M), (0, Kp - K)))
    x = x.astype(jnp.bfloat16)

    tm = _pick_tile(Mp, (256, 128, 64, 32, 16, 8))
    tn = _pick_tile(Np, (512, 256, 128))
    tk = _pick_tile(Kp, (512, 384, 256, 128))
    grid = (Mp // tm, Np // tn, Kp // tk)

    kernel = functools.partial(_matmul_bias_act_kernel, apply_relu=relu)
    return pl.pallas_call(
        kernel,
        out_shape=jax.ShapeDtypeStruct((Mp, Np), out_dtype),
        grid=grid,
        in_specs=[
            pl.BlockSpec((tm, tk), lambda i, j, k: (i, k)),
            pl.BlockSpec((tk, tn), lambda i, j, k: (k, j)),
            pl.BlockSpec((1, tn), lambda i, j, k: (0, j)),
        ],
        out_specs=pl.BlockSpec((tm, tn), lambda i, j, k: (i, j)),
        scratch_shapes=[pltpu.VMEM((tm, tn), jnp.float32)],
        compiler_params=pltpu.CompilerParams(
            dimension_semantics=("parallel", "parallel", "arbitrary")
        ),
    )(x, w, b)


# ----------------------------------------------------------------------------
# Direct 3x3 conv (pad=1, stride=1) + fused bias + ReLU, NHWC, bf16 MXU path
# ----------------------------------------------------------------------------
def _conv3x3_kernel(x_ref, w_ref, b_ref, o_ref, *, th, width):
    cin = x_ref.shape[-1]
    cout = o_ref.shape[-1]
    x = x_ref[0, 0]  # (th+2, W+2, Cin) bf16 row-tile with halo
    acc = jnp.zeros((th * width, cout), jnp.float32)
    for dy in range(3):
        for dx in range(3):
            win = x[dy:dy + th, dx:dx + width, :].reshape(th * width, cin)
            acc = acc + jnp.dot(
                win, w_ref[dy, dx], preferred_element_type=jnp.float32
            )
    y = jnp.maximum(acc + b_ref[...], 0.0)
    o_ref[0] = y.reshape(th, width, cout).astype(o_ref.dtype)


def _choose_conv_row_tile(H, W, Cin, Cout):
    # Keep (f32 acc + double-buffered in/out tiles) a few MiB -> safe on v7x.
    def need(t):
        acc = t * W * Cout * 4
        xin = 2 * (t + 2) * (W + 2) * Cin * 2
        out = 2 * t * W * Cout * 2
        return acc + xin + out

    t = H
    while t % 2 == 0 and t > 2 and need(t) > (6 << 20):
        t //= 2
    return t


def conv3x3_relu(x, w_kkio, b_1c):
    """x: (N, H, W, Cin) bf16; w: (3, 3, Cin, Cout) bf16; b: (1, Cout) f32."""
    N, H, W, Cin = x.shape
    Cout = w_kkio.shape[-1]
    th = _choose_conv_row_tile(H, W, Cin, Cout)
    nt = H // th

    xp = jnp.pad(x, ((0, 0), (1, 1), (1, 1), (0, 0)))
    if nt == 1:
        xr = xp[:, None]  # (N, 1, H+2, W+2, Cin)
    else:
        # Row tiles with a 2-row halo (~(1 + 2/th)x input, not 9x im2col).
        xr = jnp.stack([xp[:, i * th:i * th + th + 2] for i in range(nt)],
                       axis=1)  # (N, nt, th+2, W+2, Cin)

    kernel = functools.partial(_conv3x3_kernel, th=th, width=W)
    return pl.pallas_call(
        kernel,
        out_shape=jax.ShapeDtypeStruct((N, H, W, Cout), jnp.bfloat16),
        grid=(N, nt),
        in_specs=[
            pl.BlockSpec((1, 1, th + 2, W + 2, Cin),
                         lambda n, i: (n, i, 0, 0, 0)),
            pl.BlockSpec((3, 3, Cin, Cout), lambda n, i: (0, 0, 0, 0)),
            pl.BlockSpec((1, Cout), lambda n, i: (0, 0)),
        ],
        out_specs=pl.BlockSpec((1, th, W, Cout), lambda n, i: (n, i, 0, 0)),
        compiler_params=pltpu.CompilerParams(
            dimension_semantics=("parallel", "parallel")
        ),
    )(xr, w_kkio, b_1c)


# ----------------------------------------------------------------------------
# Tiled 2x2 stride-2 max pool (NHWC)
# ----------------------------------------------------------------------------
def _maxpool_kernel(x_ref, o_ref):
    c = o_ref.shape[-1]
    x = x_ref[0]                        # (tph, 2, Wo, 2C)
    m = jnp.maximum(x[:, 0], x[:, 1])   # max over the row pair -> (tph, Wo, 2C)
    o_ref[0] = jnp.maximum(m[:, :, :c], m[:, :, c:])  # max over the column pair


def _choose_pool_row_tile(Ho, Wo, C):
    t = Ho
    while t % 2 == 0 and t > 2 and (t * 2 * Wo * 2 * C * 2) > (2 << 20):
        t //= 2
    return t


def maxpool2x2(x):
    """x: (N, H, W, C) -> (N, H//2, W//2, C)."""
    N, H, W, C = x.shape
    assert H % 2 == 0 and W % 2 == 0, (H, W)
    Ho, Wo = H // 2, W // 2
    # Pure row-major reshape (no transpose): exposes the 2x2 taps statically.
    xr = x.reshape(N, Ho, 2, Wo, 2 * C)
    tph = _choose_pool_row_tile(Ho, Wo, C)
    nt = Ho // tph
    return pl.pallas_call(
        _maxpool_kernel,
        out_shape=jax.ShapeDtypeStruct((N, Ho, Wo, C), x.dtype),
        grid=(N, nt),
        in_specs=[pl.BlockSpec((1, tph, 2, Wo, 2 * C),
                               lambda n, i: (n, i, 0, 0, 0))],
        out_specs=pl.BlockSpec((1, tph, Wo, C), lambda n, i: (n, i, 0, 0)),
        compiler_params=pltpu.CompilerParams(
            dimension_semantics=("parallel", "parallel")
        ),
    )(xr)


# ----------------------------------------------------------------------------
# Parameters: synthetic PyTorch-layout init + one-time kernel-layout prep
# ----------------------------------------------------------------------------
def init_vgg_params(key, arch, in_channels, spatial, num_classes=10):
    """Deterministic synthetic params in PyTorch layouts (OIHW conv, (out,in) FC)."""
    params = {"blocks": [], "fc": []}
    c_in, h = in_channels, spatial
    for num_convs, out_channels in arch:
        block = []
        for _ in range(num_convs):
            key, k1, k2 = jax.random.split(key, 3)
            w = 0.05 * jax.random.normal(k1, (out_channels, c_in, 3, 3), jnp.float32)
            bb = 0.01 * jax.random.normal(k2, (out_channels,), jnp.float32)
            block.append((w, bb))
            c_in = out_channels
        params["blocks"].append(block)
        h //= 2
    flat = c_in * h * h
    for fin, fout in [(flat, 4096), (4096, 4096), (4096, num_classes)]:
        key, k1, k2 = jax.random.split(key, 3)
        w = 0.02 * jax.random.normal(k1, (fout, fin), jnp.float32)
        bb = 0.01 * jax.random.normal(k2, (fout,), jnp.float32)
        params["fc"].append((w, bb))
    return params


def _prep_fc(w_kn, b):
    k, n = w_kn.shape
    kp, np_ = _round_up(k, 128), _round_up(n, 128)
    w_p = jnp.pad(w_kn, ((0, kp - k), (0, np_ - n))).astype(jnp.bfloat16)
    b_p = jnp.pad(b.astype(jnp.float32), (0, np_ - n)).reshape(1, np_)
    return w_p, b_p


def prepare_params(raw, arch, in_channels, spatial, num_classes):
    """One-time host-side layout prep: transpose / permute / pad / cast to bf16."""
    conv_blocks = []
    for blk in raw["blocks"]:
        pblk = []
        for w, b in blk:
            wk = jnp.transpose(w, (2, 3, 1, 0)).astype(jnp.bfloat16)  # (3,3,Cin,Cout)
            pblk.append((wk, b.astype(jnp.float32).reshape(1, -1)))
        conv_blocks.append(pblk)

    c_final = arch[-1][1]
    h_final = spatial // (2 ** len(arch))
    flat = c_final * h_final * h_final

    (w1, b1), (w2, b2), (w3, b3) = raw["fc"]
    # Fold the NCHW-flatten -> NHWC-flatten permutation into FC1's weight.
    w1p = w1.reshape(w1.shape[0], c_final, h_final, h_final)
    w1p = jnp.transpose(w1p, (2, 3, 1, 0)).reshape(flat, w1.shape[0])
    fcs = [_prep_fc(w1p, b1), _prep_fc(w2.T, b2), _prep_fc(w3.T, b3)]
    return {"conv": conv_blocks, "fc": fcs}


# ----------------------------------------------------------------------------
# Forward pass (matches nn.Sequential(conv_blks, Flatten, FC stack))
# ----------------------------------------------------------------------------
def vgg_forward(params, x_nchw, *, num_classes):
    x = jnp.transpose(x_nchw, (0, 2, 3, 1)).astype(jnp.bfloat16)  # NCHW -> NHWC
    for block in params["conv"]:
        for w, b in block:
            x = conv3x3_relu(x, w, b)
        x = maxpool2x2(x)
    n = x.shape[0]
    x = x.reshape(n, -1)  # NHWC flatten; FC1 weight was pre-permuted to match

    (w1, b1), (w2, b2), (w3, b3) = params["fc"]
    x = matmul_bias_act(x, w1, b1, relu=True)
    # Dropout(0.5): inference-mode identity.
    # TODO(synk): training-mode dropout (RNG mask) not implemented.
    x = matmul_bias_act(x, w2, b2, relu=True)
    # Dropout(0.5): inference-mode identity.
    x = matmul_bias_act(x, w3, b3, relu=False, out_dtype=jnp.float32)
    return x[:n, :num_classes]


if __name__ == "__main__":
    key = jax.random.PRNGKey(0)
    key, kx, kp = jax.random.split(key, 3)

    # Small shapes: batch=2, channels=4, spatial=16; arch = ((1, 8), (1, 16))
    batch, in_ch, spatial = 2, 4, 16
    arch = ((1, 8), (1, 16))
    num_classes = 10

    x = jax.random.normal(kx, (batch, in_ch, spatial, spatial), jnp.float32)
    raw = init_vgg_params(kp, arch, in_ch, spatial, num_classes)
    params = prepare_params(raw, arch, in_ch, spatial, num_classes)

    fwd = jax.jit(functools.partial(vgg_forward, num_classes=num_classes))
    out = jax.block_until_ready(fwd(params, x))

    assert out.shape == (batch, num_classes), out.shape
    assert jnp.all(jnp.isfinite(out))
    print("KERNEL_OK")
</pallas_src>

<mosaic_0001>
module attributes {stable_mosaic.version = 11 : i64} {
  func.func @_conv3x3_kernel(%arg0: i32, %arg1: i32, %arg2: memref<1x1x18x18x4xbf16, #tpu.memory_space<vmem>>, %arg3: memref<3x3x4x8xbf16, #tpu.memory_space<vmem>>, %arg4: memref<1x8xf32, #tpu.memory_space<vmem>>, %arg5: memref<1x16x16x8xbf16, #tpu.memory_space<vmem>>) attributes {dimension_semantics = [#tpu.dimension_semantics<parallel>, #tpu.dimension_semantics<parallel>], iteration_bounds = array<i64: 2, 1>, scalar_prefetch = 0 : i64, scratch_operands = 0 : i64, tpu.core_type = #tpu.core_type<tc>, window_params = [{transform_indices = @transform_0, window_bounds = array<i64: 1, 1, 18, 18, 4>}, {pipeline_mode = #tpu.pipeline_mode<synchronous>, transform_indices = @transform_1, window_bounds = array<i64: 3, 3, 4, 8>}, {pipeline_mode = #tpu.pipeline_mode<synchronous>, transform_indices = @transform_2, window_bounds = array<i64: 1, 8>}, {transform_indices = @transform_3, window_bounds = array<i64: 1, 16, 16, 8>}]} {
    %c0 = arith.constant 0 : index
    %c0_0 = arith.constant 0 : index
    %c0_1 = arith.constant 0 : index
    %c0_2 = arith.constant 0 : index
    %c0_3 = arith.constant 0 : index
    %0 = vector.load %arg2[%c0, %c0_0, %c0_1, %c0_2, %c0_3] : memref<1x1x18x18x4xbf16, #tpu.memory_space<vmem>>, vector<1x1x18x18x4xbf16>
    %1 = vector.shape_cast %0 : vector<1x1x18x18x4xbf16> to vector<18x18x4xbf16>
    %cst = arith.constant 0.000000e+00 : f32
    %2 = vector.broadcast %cst : f32 to vector<256x8xf32>
    %3 = vector.extract_strided_slice %1 {offsets = [0, 0, 0], sizes = [16, 16, 4], strides = [1, 1, 1]} : vector<18x18x4xbf16> to vector<16x16x4xbf16>
    %4 = vector.shape_cast %3 : vector<16x16x4xbf16> to vector<256x4xbf16>
    %c0_4 = arith.constant 0 : index
    %c0_5 = arith.constant 0 : index
    %c0_6 = arith.constant 0 : index
    %c0_7 = arith.constant 0 : index
    %5 = vector.load %arg3[%c0_4, %c0_5, %c0_6, %c0_7] : memref<3x3x4x8xbf16, #tpu.memory_space<vmem>>, vector<1x1x4x8xbf16>
    %6 = vector.shape_cast %5 : vector<1x1x4x8xbf16> to vector<4x8xbf16>
    %cst_8 = arith.constant dense<0.000000e+00> : vector<256x8xf32>
    %7 = tpu.matmul %4, %6, %cst_8 {dimension_numbers = #tpu.dot_dimension_numbers<[1], [0], [0], [1], [0, 0, 1, 1], [], []>} : vector<256x4xbf16>, vector<4x8xbf16>, vector<256x8xf32> -> vector<256x8xf32>
    %8 = arith.addf %2, %7 : vector<256x8xf32>
    %9 = vector.extract_strided_slice %1 {offsets = [0, 1, 0], sizes = [16, 16, 4], strides = [1, 1, 1]} : vector<18x18x4xbf16> to vector<16x16x4xbf16>
    %10 = vector.shape_cast %9 : vector<16x16x4xbf16> to vector<256x4xbf16>
    %c0_9 = arith.constant 0 : index
    %c1 = arith.constant 1 : index
    %c0_10 = arith.constant 0 : index
    %c0_11 = arith.constant 0 : index
    %11 = vector.load %arg3[%c0_9, %c1, %c0_10, %c0_11] : memref<3x3x4x8xbf16, #tpu.memory_space<vmem>>, vector<1x1x4x8xbf16>
    %12 = vector.shape_cast %11 : vector<1x1x4x8xbf16> to vector<4x8xbf16>
    %cst_12 = arith.constant dense<0.000000e+00> : vector<256x8xf32>
    %13 = tpu.matmul %10, %12, %cst_12 {dimension_numbers = #tpu.dot_dimension_numbers<[1], [0], [0], [1], [0, 0, 1, 1], [], []>} : vector<256x4xbf16>, vector<4x8xbf16>, vector<256x8xf32> -> vector<256x8xf32>
    %14 = arith.addf %8, %13 : vector<256x8xf32>
    %15 = vector.extract_strided_slice %1 {offsets = [0, 2, 0], sizes = [16, 16, 4], strides = [1, 1, 1]} : vector<18x18x4xbf16> to vector<16x16x4xbf16>
    %16 = vector.shape_cast %15 : vector<16x16x4xbf16> to vector<256x4xbf16>
    %c0_13 = arith.constant 0 : index
    %c2 = arith.constant 2 : index
    %c0_14 = arith.constant 0 : index
    %c0_15 = arith.constant 0 : index
    %17 = vector.load %arg3[%c0_13, %c2, %c0_14, %c0_15] : memref<3x3x4x8xbf16, #tpu.memory_space<vmem>>, vector<1x1x4x8xbf16>
    %18 = vector.shape_cast %17 : vector<1x1x4x8xbf16> to vector<4x8xbf16>
    %cst_16 = arith.constant dense<0.000000e+00> : vector<256x8xf32>
    %19 = tpu.matmul %16, %18, %cst_16 {dimension_numbers = #tpu.dot_dimension_numbers<[1], [0], [0], [1], [0, 0, 1, 1], [], []>} : vector<256x4xbf16>, vector<4x8xbf16>, vector<256x8xf32> -> vector<256x8xf32>
    %20 = arith.addf %14, %19 : vector<256x8xf32>
    %21 = vector.extract_strided_slice %1 {offsets = [1, 0, 0], sizes = [16, 16, 4], strides = [1, 1, 1]} : vector<18x18x4xbf16> to vector<16x16x4xbf16>
    %22 = vector.shape_cast %21 : vector<16x16x4xbf16> to vector<256x4xbf16>
    %c1_17 = arith.constant 1 : index
    %c0_18 = arith.constant 0 : index
    %c0_19 = arith.constant 0 : index
    %c0_20 = arith.constant 0 : index
    %23 = vector.load %arg3[%c1_17, %c0_18, %c0_19, %c0_20] : memref<3x3x4x8xbf16, #tpu.memory_space<vmem>>, vector<1x1x4x8xbf16>
    %24 = vector.shape_cast %23 : vector<1x1x4x8xbf16> to vector<4x8xbf16>
    %cst_21 = arith.constant dense<0.000000e+00> : vector<256x8xf32>
    %25 = tpu.matmul %22, %24, %cst_21 {dimension_numbers = #tpu.dot_dimension_numbers<[1], [0], [0], [1], [0, 0, 1, 1], [], []>} : vector<256x4xbf16>, vector<4x8xbf16>, vector<256x8xf32> -> vector<256x8xf32>
    %26 = arith.addf %20, %25 : vector<256x8xf32>
    %27 = vector.extract_strided_slice %1 {offsets = [1, 1, 0], sizes = [16, 16, 4], strides = [1, 1, 1]} : vector<18x18x4xbf16> to vector<16x16x4xbf16>
    %28 = vector.shape_cast %27 : vector<16x16x4xbf16> to vector<256x4xbf16>
    %c1_22 = arith.constant 1 : index
    %c1_23 = arith.constant 1 : index
    %c0_24 = arith.constant 0 : index
    %c0_25 = arith.constant 0 : index
    %29 = vector.load %arg3[%c1_22, %c1_23, %c0_24, %c0_25] : memref<3x3x4x8xbf16, #tpu.memory_space<vmem>>, vector<1x1x4x8xbf16>
    %30 = vector.shape_cast %29 : vector<1x1x4x8xbf16> to vector<4x8xbf16>
    %cst_26 = arith.constant dense<0.000000e+00> : vector<256x8xf32>
    %31 = tpu.matmul %28, %30, %cst_26 {dimension_numbers = #tpu.dot_dimension_numbers<[1], [0], [0], [1], [0, 0, 1, 1], [], []>} : vector<256x4xbf16>, vector<4x8xbf16>, vector<256x8xf32> -> vector<256x8xf32>
    %32 = arith.addf %26, %31 : vector<256x8xf32>
    %33 = vector.extract_strided_slice %1 {offsets = [1, 2, 0], sizes = [16, 16, 4], strides = [1, 1, 1]} : vector<18x18x4xbf16> to vector<16x16x4xbf16>
    %34 = vector.shape_cast %33 : vector<16x16x4xbf16> to vector<256x4xbf16>
    %c1_27 = arith.constant 1 : index
    %c2_28 = arith.constant 2 : index
    %c0_29 = arith.constant 0 : index
    %c0_30 = arith.constant 0 : index
    %35 = vector.load %arg3[%c1_27, %c2_28, %c0_29, %c0_30] : memref<3x3x4x8xbf16, #tpu.memory_space<vmem>>, vector<1x1x4x8xbf16>
    %36 = vector.shape_cast %35 : vector<1x1x4x8xbf16> to vector<4x8xbf16>
    %cst_31 = arith.constant dense<0.000000e+00> : vector<256x8xf32>
    %37 = tpu.matmul %34, %36, %cst_31 {dimension_numbers = #tpu.dot_dimension_numbers<[1], [0], [0], [1], [0, 0, 1, 1], [], []>} : vector<256x4xbf16>, vector<4x8xbf16>, vector<256x8xf32> -> vector<256x8xf32>
    %38 = arith.addf %32, %37 : vector<256x8xf32>
    %39 = vector.extract_strided_slice %1 {offsets = [2, 0, 0], sizes = [16, 16, 4], strides = [1, 1, 1]} : vector<18x18x4xbf16> to vector<16x16x4xbf16>
    %40 = vector.shape_cast %39 : vector<16x16x4xbf16> to vector<256x4xbf16>
    %c2_32 = arith.constant 2 : index
    %c0_33 = arith.constant 0 : index
    %c0_34 = arith.constant 0 : index
    %c0_35 = arith.constant 0 : index
    %41 = vector.load %arg3[%c2_32, %c0_33, %c0_34, %c0_35] : memref<3x3x4x8xbf16, #tpu.memory_space<vmem>>, vector<1x1x4x8xbf16>
    %42 = vector.shape_cast %41 : vector<1x1x4x8xbf16> to vector<4x8xbf16>
    %cst_36 = arith.constant dense<0.000000e+00> : vector<256x8xf32>
    %43 = tpu.matmul %40, %42, %cst_36 {dimension_numbers = #tpu.dot_dimension_numbers<[1], [0], [0], [1], [0, 0, 1, 1], [], []>} : vector<256x4xbf16>, vector<4x8xbf16>, vector<256x8xf32> -> vector<256x8xf32>
    %44 = arith.addf %38, %43 : vector<256x8xf32>
    %45 = vector.extract_strided_slice %1 {offsets = [2, 1, 0], sizes = [16, 16, 4], strides = [1, 1, 1]} : vector<18x18x4xbf16> to vector<16x16x4xbf16>
    %46 = vector.shape_cast %45 : vector<16x16x4xbf16> to vector<256x4xbf16>
    %c2_37 = arith.constant 2 : index
    %c1_38 = arith.constant 1 : index
    %c0_39 = arith.constant 0 : index
    %c0_40 = arith.constant 0 : index
    %47 = vector.load %arg3[%c2_37, %c1_38, %c0_39, %c0_40] : memref<3x3x4x8xbf16, #tpu.memory_space<vmem>>, vector<1x1x4x8xbf16>
    %48 = vector.shape_cast %47 : vector<1x1x4x8xbf16> to vector<4x8xbf16>
    %cst_41 = arith.constant dense<0.000000e+00> : vector<256x8xf32>
    %49 = tpu.matmul %46, %48, %cst_41 {dimension_numbers = #tpu.dot_dimension_numbers<[1], [0], [0], [1], [0, 0, 1, 1], [], []>} : vector<256x4xbf16>, vector<4x8xbf16>, vector<256x8xf32> -> vector<256x8xf32>
    %50 = arith.addf %44, %49 : vector<256x8xf32>
    %51 = vector.extract_strided_slice %1 {offsets = [2, 2, 0], sizes = [16, 16, 4], strides = [1, 1, 1]} : vector<18x18x4xbf16> to vector<16x16x4xbf16>
    %52 = vector.shape_cast %51 : vector<16x16x4xbf16> to vector<256x4xbf16>
    %c2_42 = arith.constant 2 : index
    %c2_43 = arith.constant 2 : index
    %c0_44 = arith.constant 0 : index
    %c0_45 = arith.constant 0 : index
    %53 = vector.load %arg3[%c2_42, %c2_43, %c0_44, %c0_45] : memref<3x3x4x8xbf16, #tpu.memory_space<vmem>>, vector<1x1x4x8xbf16>
    %54 = vector.shape_cast %53 : vector<1x1x4x8xbf16> to vector<4x8xbf16>
    %cst_46 = arith.constant dense<0.000000e+00> : vector<256x8xf32>
    %55 = tpu.matmul %52, %54, %cst_46 {dimension_numbers = #tpu.dot_dimension_numbers<[1], [0], [0], [1], [0, 0, 1, 1], [], []>} : vector<256x4xbf16>, vector<4x8xbf16>, vector<256x8xf32> -> vector<256x8xf32>
    %56 = arith.addf %50, %55 : vector<256x8xf32>
    %c0_47 = arith.constant 0 : index
    %c0_48 = arith.constant 0 : index
    %57 = vector.load %arg4[%c0_47, %c0_48] : memref<1x8xf32, #tpu.memory_space<vmem>>, vector<1x8xf32>
    %58 = vector.broadcast %57 : vector<1x8xf32> to vector<256x8xf32>
    %59 = arith.addf %56, %58 : vector<256x8xf32>
    %cst_49 = arith.constant 0.000000e+00 : f32
    %60 = vector.broadcast %cst_49 : f32 to vector<256x8xf32>
    %61 = arith.maximumf %59, %60 : vector<256x8xf32>
    %62 = vector.shape_cast %61 : vector<256x8xf32> to vector<16x16x8xf32>
    %63 = arith.truncf %62 : vector<16x16x8xf32> to vector<16x16x8xbf16>
    %c0_50 = arith.constant 0 : index
    %c0_51 = arith.constant 0 : index
    %c0_52 = arith.constant 0 : index
    %c0_53 = arith.constant 0 : index
    %64 = vector.load %arg5[%c0_50, %c0_51, %c0_52, %c0_53] : memref<1x16x16x8xbf16, #tpu.memory_space<vmem>>, vector<1x16x16x8xbf16>
    %65 = vector.shape_cast %64 : vector<1x16x16x8xbf16> to vector<16x16x8xbf16>
    %66 = vector.shape_cast %63 : vector<16x16x8xbf16> to vector<1x16x16x8xbf16>
    tpu.vector_store %arg5[%c0_50, %c0_51, %c0_52, %c0_53], %66 {strides = array<i32>} : memref<1x16x16x8xbf16, #tpu.memory_space<vmem>>, vector<1x16x16x8xbf16>,
    return
  }
  func.func @transform_0(%arg0: i32, %arg1: i32) -> (i32, i32, i32, i32, i32) {
    %c0_i32 = arith.constant 0 : i32
    %c0_i32_0 = arith.constant 0 : i32
    %c0_i32_1 = arith.constant 0 : i32
    %c0_i32_2 = arith.constant 0 : i32
    return %arg0, %arg1, %c0_i32, %c0_i32_0, %c0_i32_1 : i32, i32, i32, i32, i32
  }
  func.func @transform_1(%arg0: i32, %arg1: i32) -> (i32, i32, i32, i32) {
    %c0_i32 = arith.constant 0 : i32
    %c0_i32_0 = arith.constant 0 : i32
    %c0_i32_1 = arith.constant 0 : i32
    %c0_i32_2 = arith.constant 0 : i32
    %c0_i32_3 = arith.constant 0 : i32
    return %c0_i32, %c0_i32_0, %c0_i32_1, %c0_i32_2 : i32, i32, i32, i32
  }
  func.func @transform_2(%arg0: i32, %arg1: i32) -> (i32, i32) {
    %c0_i32 = arith.constant 0 : i32
    %c0_i32_0 = arith.constant 0 : i32
    %c0_i32_1 = arith.constant 0 : i32
    return %c0_i32, %c0_i32_0 : i32, i32
  }
  func.func @transform_3(%arg0: i32, %arg1: i32) -> (i32, i32, i32, i32) {
    %c0_i32 = arith.constant 0 : i32
    %c0_i32_0 = arith.constant 0 : i32
    %c0_i32_1 = arith.constant 0 : i32
    return %arg0, %arg1, %c0_i32, %c0_i32_0 : i32, i32, i32, i32
  }
}

module attributes {stable_mosaic.version = 11 : i64} {
  func.func @_maxpool_kernel(%arg0: i32, %arg1: i32, %arg2: memref<1x8x2x8x16xbf16, #tpu.memory_space<vmem>>, %arg3: memref<1x8x8x8xbf16, #tpu.memory_space<vmem>>) attributes {dimension_semantics = [#tpu.dimension_semantics<parallel>, #tpu.dimension_semantics<parallel>], iteration_bounds = array<i64: 2, 1>, scalar_prefetch = 0 : i64, scratch_operands = 0 : i64, tpu.core_type = #tpu.core_type<tc>, window_params = [{transform_indices = @transform_0, window_bounds = array<i64: 1, 8, 2, 8, 16>}, {transform_indices = @transform_1, window_bounds = array<i64: 1, 8, 8, 8>}]} {
    %c0 = arith.constant 0 : index
    %c0_0 = arith.constant 0 : index
    %c0_1 = arith.constant 0 : index
    %c0_2 = arith.constant 0 : index
    %c0_3 = arith.constant 0 : index
    %0 = vector.load %arg2[%c0, %c0_0, %c0_1, %c0_2, %c0_3] : memref<1x8x2x8x16xbf16, #tpu.memory_space<vmem>>, vector<1x8x2x8x16xbf16>
    %1 = vector.shape_cast %0 : vector<1x8x2x8x16xbf16> to vector<8x2x8x16xbf16>
    %2 = vector.extract_strided_slice %1 {offsets = [0, 0, 0, 0], sizes = [8, 1, 8, 16], strides = [1, 1, 1, 1]} : vector<8x2x8x16xbf16> to vector<8x1x8x16xbf16>
    %3 = vector.shape_cast %2 : vector<8x1x8x16xbf16> to vector<8x8x16xbf16>
    %4 = vector.extract_strided_slice %1 {offsets = [0, 1, 0, 0], sizes = [8, 1, 8, 16], strides = [1, 1, 1, 1]} : vector<8x2x8x16xbf16> to vector<8x1x8x16xbf16>
    %5 = vector.shape_cast %4 : vector<8x1x8x16xbf16> to vector<8x8x16xbf16>
    %6 = arith.maximumf %3, %5 : vector<8x8x16xbf16>
    %7 = vector.extract_strided_slice %6 {offsets = [0, 0, 0], sizes = [8, 8, 8], strides = [1, 1, 1]} : vector<8x8x16xbf16> to vector<8x8x8xbf16>
    %8 = vector.extract_strided_slice %6 {offsets = [0, 0, 8], sizes = [8, 8, 8], strides = [1, 1, 1]} : vector<8x8x16xbf16> to vector<8x8x8xbf16>
    %9 = arith.maximumf %7, %8 : vector<8x8x8xbf16>
    %c0_4 = arith.constant 0 : index
    %c0_5 = arith.constant 0 : index
    %c0_6 = arith.constant 0 : index
    %c0_7 = arith.constant 0 : index
    %10 = vector.load %arg3[%c0_4, %c0_5, %c0_6, %c0_7] : memref<1x8x8x8xbf16, #tpu.memory_space<vmem>>, vector<1x8x8x8xbf16>
    %11 = vector.shape_cast %10 : vector<1x8x8x8xbf16> to vector<8x8x8xbf16>
    %12 = vector.shape_cast %9 : vector<8x8x8xbf16> to vector<1x8x8x8xbf16>
    tpu.vector_store %arg3[%c0_4, %c0_5, %c0_6, %c0_7], %12 {strides = array<i32>} : memref<1x8x8x8xbf16, #tpu.memory_space<vmem>>, vector<1x8x8x8xbf16>,
    return
  }
  func.func @transform_0(%arg0: i32, %arg1: i32) -> (i32, i32, i32, i32, i32) {
    %c0_i32 = arith.constant 0 : i32
    %c0_i32_0 = arith.constant 0 : i32
    %c0_i32_1 = arith.constant 0 : i32
    %c0_i32_2 = arith.constant 0 : i32
    return %arg0, %arg1, %c0_i32, %c0_i32_0, %c0_i32_1 : i32, i32, i32, i32, i32
  }
  func.func @transform_1(%arg0: i32, %arg1: i32) -> (i32, i32, i32, i32) {
    %c0_i32 = arith.constant 0 : i32
    %c0_i32_0 = arith.constant 0 : i32
    %c0_i32_1 = arith.constant 0 : i32
    return %arg0, %arg1, %c0_i32, %c0_i32_0 : i32, i32, i32, i32
  }
}

module attributes {stable_mosaic.version = 11 : i64} {
  func.func @_conv3x3_kernel(%arg0: i32, %arg1: i32, %arg2: memref<1x1x10x10x8xbf16, #tpu.memory_space<vmem>>, %arg3: memref<3x3x8x16xbf16, #tpu.memory_space<vmem>>, %arg4: memref<1x16xf32, #tpu.memory_space<vmem>>, %arg5: memref<1x8x8x16xbf16, #tpu.memory_space<vmem>>) attributes {dimension_semantics = [#tpu.dimension_semantics<parallel>, #tpu.dimension_semantics<parallel>], iteration_bounds = array<i64: 2, 1>, scalar_prefetch = 0 : i64, scratch_operands = 0 : i64, tpu.core_type = #tpu.core_type<tc>, window_params = [{transform_indices = @transform_0, window_bounds = array<i64: 1, 1, 10, 10, 8>}, {pipeline_mode = #tpu.pipeline_mode<synchronous>, transform_indices = @transform_1, window_bounds = array<i64: 3, 3, 8, 16>}, {pipeline_mode = #tpu.pipeline_mode<synchronous>, transform_indices = @transform_2, window_bounds = array<i64: 1, 16>}, {transform_indices = @transform_3, window_bounds = array<i64: 1, 8, 8, 16>}]} {
    %c0 = arith.constant 0 : index
    %c0_0 = arith.constant 0 : index
    %c0_1 = arith.constant 0 : index
    %c0_2 = arith.constant 0 : index
    %c0_3 = arith.constant 0 : index
    %0 = vector.load %arg2[%c0, %c0_0, %c0_1, %c0_2, %c0_3] : memref<1x1x10x10x8xbf16, #tpu.memory_space<vmem>>, vector<1x1x10x10x8xbf16>
    %1 = vector.shape_cast %0 : vector<1x1x10x10x8xbf16> to vector<10x10x8xbf16>
    %cst = arith.constant 0.000000e+00 : f32
    %2 = vector.broadcast %cst : f32 to vector<64x16xf32>
    %3 = vector.extract_strided_slice %1 {offsets = [0, 0, 0], sizes = [8, 8, 8], strides = [1, 1, 1]} : vector<10x10x8xbf16> to vector<8x8x8xbf16>
    %4 = vector.shape_cast %3 : vector<8x8x8xbf16> to vector<64x8xbf16>
    %c0_4 = arith.constant 0 : index
    %c0_5 = arith.constant 0 : index
    %c0_6 = arith.constant 0 : index
    %c0_7 = arith.constant 0 : index
    %5 = vector.load %arg3[%c0_4, %c0_5, %c0_6, %c0_7] : memref<3x3x8x16xbf16, #tpu.memory_space<vmem>>, vector<1x1x8x16xbf16>
    %6 = vector.shape_cast %5 : vector<1x1x8x16xbf16> to vector<8x16xbf16>
    %cst_8 = arith.constant dense<0.000000e+00> : vector<64x16xf32>
    %7 = tpu.matmul %4, %6, %cst_8 {dimension_numbers = #tpu.dot_dimension_numbers<[1], [0], [0], [1], [0, 0, 1, 1], [], []>} : vector<64x8xbf16>, vector<8x16xbf16>, vector<64x16xf32> -> vector<64x16xf32>
    %8 = arith.addf %2, %7 : vector<64x16xf32>
    %9 = vector.extract_strided_slice %1 {offsets = [0, 1, 0], sizes = [8, 8, 8], strides = [1, 1, 1]} : vector<10x10x8xbf16> to vector<8x8x8xbf16>
    %10 = vector.shape_cast %9 : vector<8x8x8xbf16> to vector<64x8xbf16>
    %c0_9 = arith.constant 0 : index
    %c1 = arith.constant 1 : index
    %c0_10 = arith.constant 0 : index
    %c0_11 = arith.constant 0 : index
    %11 = vector.load %arg3[%c0_9, %c1, %c0_10, %c0_11] : memref<3x3x8x16xbf16, #tpu.memory_space<vmem>>, vector<1x1x8x16xbf16>
    %12 = vector.shape_cast %11 : vector<1x1x8x16xbf16> to vector<8x16xbf16>
    %cst_12 = arith.constant dense<0.000000e+00> : vector<64x16xf32>
    %13 = tpu.matmul %10, %12, %cst_12 {dimension_numbers = #tpu.dot_dimension_numbers<[1], [0], [0], [1], [0, 0, 1, 1], [], []>} : vector<64x8xbf16>, vector<8x16xbf16>, vector<64x16xf32> -> vector<64x16xf32>
    %14 = arith.addf %8, %13 : vector<64x16xf32>
    %15 = vector.extract_strided_slice %1 {offsets = [0, 2, 0], sizes = [8, 8, 8], strides = [1, 1, 1]} : vector<10x10x8xbf16> to vector<8x8x8xbf16>
    %16 = vector.shape_cast %15 : vector<8x8x8xbf16> to vector<64x8xbf16>
    %c0_13 = arith.constant 0 : index
    %c2 = arith.constant 2 : index
    %c0_14 = arith.constant 0 : index
    %c0_15 = arith.constant 0 : index
    %17 = vector.load %arg3[%c0_13, %c2, %c0_14, %c0_15] : memref<3x3x8x16xbf16, #tpu.memory_space<vmem>>, vector<1x1x8x16xbf16>
    %18 = vector.shape_cast %17 : vector<1x1x8x16xbf16> to vector<8x16xbf16>
    %cst_16 = arith.constant dense<0.000000e+00> : vector<64x16xf32>
    %19 = tpu.matmul %16, %18, %cst_16 {dimension_numbers = #tpu.dot_dimension_numbers<[1], [0], [0], [1], [0, 0, 1, 1], [], []>} : vector<64x8xbf16>, vector<8x16xbf16>, vector<64x16xf32> -> vector<64x16xf32>
    %20 = arith.addf %14, %19 : vector<64x16xf32>
    %21 = vector.extract_strided_slice %1 {offsets = [1, 0, 0], sizes = [8, 8, 8], strides = [1, 1, 1]} : vector<10x10x8xbf16> to vector<8x8x8xbf16>
    %22 = vector.shape_cast %21 : vector<8x8x8xbf16> to vector<64x8xbf16>
    %c1_17 = arith.constant 1 : index
    %c0_18 = arith.constant 0 : index
    %c0_19 = arith.constant 0 : index
    %c0_20 = arith.constant 0 : index
    %23 = vector.load %arg3[%c1_17, %c0_18, %c0_19, %c0_20] : memref<3x3x8x16xbf16, #tpu.memory_space<vmem>>, vector<1x1x8x16xbf16>
    %24 = vector.shape_cast %23 : vector<1x1x8x16xbf16> to vector<8x16xbf16>
    %cst_21 = arith.constant dense<0.000000e+00> : vector<64x16xf32>
    %25 = tpu.matmul %22, %24, %cst_21 {dimension_numbers = #tpu.dot_dimension_numbers<[1], [0], [0], [1], [0, 0, 1, 1], [], []>} : vector<64x8xbf16>, vector<8x16xbf16>, vector<64x16xf32> -> vector<64x16xf32>
    %26 = arith.addf %20, %25 : vector<64x16xf32>
    %27 = vector.extract_strided_slice %1 {offsets = [1, 1, 0], sizes = [8, 8, 8], strides = [1, 1, 1]} : vector<10x10x8xbf16> to vector<8x8x8xbf16>
    %28 = vector.shape_cast %27 : vector<8x8x8xbf16> to vector<64x8xbf16>
    %c1_22 = arith.constant 1 : index
    %c1_23 = arith.constant 1 : index
    %c0_24 = arith.constant 0 : index
    %c0_25 = arith.constant 0 : index
    %29 = vector.load %arg3[%c1_22, %c1_23, %c0_24, %c0_25] : memref<3x3x8x16xbf16, #tpu.memory_space<vmem>>, vector<1x1x8x16xbf16>
    %30 = vector.shape_cast %29 : vector<1x1x8x16xbf16> to vector<8x16xbf16>
    %cst_26 = arith.constant dense<0.000000e+00> : vector<64x16xf32>
    %31 = tpu.matmul %28, %30, %cst_26 {dimension_numbers = #tpu.dot_dimension_numbers<[1], [0], [0], [1], [0, 0, 1, 1], [], []>} : vector<64x8xbf16>, vector<8x16xbf16>, vector<64x16xf32> -> vector<64x16xf32>
    %32 = arith.addf %26, %31 : vector<64x16xf32>
    %33 = vector.extract_strided_slice %1 {offsets = [1, 2, 0], sizes = [8, 8, 8], strides = [1, 1, 1]} : vector<10x10x8xbf16> to vector<8x8x8xbf16>
    %34 = vector.shape_cast %33 : vector<8x8x8xbf16> to vector<64x8xbf16>
    %c1_27 = arith.constant 1 : index
    %c2_28 = arith.constant 2 : index
    %c0_29 = arith.constant 0 : index
    %c0_30 = arith.constant 0 : index
    %35 = vector.load %arg3[%c1_27, %c2_28, %c0_29, %c0_30] : memref<3x3x8x16xbf16, #tpu.memory_space<vmem>>, vector<1x1x8x16xbf16>
    %36 = vector.shape_cast %35 : vector<1x1x8x16xbf16> to vector<8x16xbf16>
    %cst_31 = arith.constant dense<0.000000e+00> : vector<64x16xf32>
    %37 = tpu.matmul %34, %36, %cst_31 {dimension_numbers = #tpu.dot_dimension_numbers<[1], [0], [0], [1], [0, 0, 1, 1], [], []>} : vector<64x8xbf16>, vector<8x16xbf16>, vector<64x16xf32> -> vector<64x16xf32>
    %38 = arith.addf %32, %37 : vector<64x16xf32>
    %39 = vector.extract_strided_slice %1 {offsets = [2, 0, 0], sizes = [8, 8, 8], strides = [1, 1, 1]} : vector<10x10x8xbf16> to vector<8x8x8xbf16>
    %40 = vector.shape_cast %39 : vector<8x8x8xbf16> to vector<64x8xbf16>
    %c2_32 = arith.constant 2 : index
    %c0_33 = arith.constant 0 : index
    %c0_34 = arith.constant 0 : index
    %c0_35 = arith.constant 0 : index
    %41 = vector.load %arg3[%c2_32, %c0_33, %c0_34, %c0_35] : memref<3x3x8x16xbf16, #tpu.memory_space<vmem>>, vector<1x1x8x16xbf16>
    %42 = vector.shape_cast %41 : vector<1x1x8x16xbf16> to vector<8x16xbf16>
    %cst_36 = arith.constant dense<0.000000e+00> : vector<64x16xf32>
    %43 = tpu.matmul %40, %42, %cst_36 {dimension_numbers = #tpu.dot_dimension_numbers<[1], [0], [0], [1], [0, 0, 1, 1], [], []>} : vector<64x8xbf16>, vector<8x16xbf16>, vector<64x16xf32> -> vector<64x16xf32>
    %44 = arith.addf %38, %43 : vector<64x16xf32>
    %45 = vector.extract_strided_slice %1 {offsets = [2, 1, 0], sizes = [8, 8, 8], strides = [1, 1, 1]} : vector<10x10x8xbf16> to vector<8x8x8xbf16>
    %46 = vector.shape_cast %45 : vector<8x8x8xbf16> to vector<64x8xbf16>
    %c2_37 = arith.constant 2 : index
    %c1_38 = arith.constant 1 : index
    %c0_39 = arith.constant 0 : index
    %c0_40 = arith.constant 0 : index
    %47 = vector.load %arg3[%c2_37, %c1_38, %c0_39, %c0_40] : memref<3x3x8x16xbf16, #tpu.memory_space<vmem>>, vector<1x1x8x16xbf16>
    %48 = vector.shape_cast %47 : vector<1x1x8x16xbf16> to vector<8x16xbf16>
    %cst_41 = arith.constant dense<0.000000e+00> : vector<64x16xf32>
    %49 = tpu.matmul %46, %48, %cst_41 {dimension_numbers = #tpu.dot_dimension_numbers<[1], [0], [0], [1], [0, 0, 1, 1], [], []>} : vector<64x8xbf16>, vector<8x16xbf16>, vector<64x16xf32> -> vector<64x16xf32>
    %50 = arith.addf %44, %49 : vector<64x16xf32>
    %51 = vector.extract_strided_slice %1 {offsets = [2, 2, 0], sizes = [8, 8, 8], strides = [1, 1, 1]} : vector<10x10x8xbf16> to vector<8x8x8xbf16>
    %52 = vector.shape_cast %51 : vector<8x8x8xbf16> to vector<64x8xbf16>
    %c2_42 = arith.constant 2 : index
    %c2_43 = arith.constant 2 : index
    %c0_44 = arith.constant 0 : index
    %c0_45 = arith.constant 0 : index
    %53 = vector.load %arg3[%c2_42, %c2_43, %c0_44, %c0_45] : memref<3x3x8x16xbf16, #tpu.memory_space<vmem>>, vector<1x1x8x16xbf16>
    %54 = vector.shape_cast %53 : vector<1x1x8x16xbf16> to vector<8x16xbf16>
    %cst_46 = arith.constant dense<0.000000e+00> : vector<64x16xf32>
    %55 = tpu.matmul %52, %54, %cst_46 {dimension_numbers = #tpu.dot_dimension_numbers<[1], [0], [0], [1], [0, 0, 1, 1], [], []>} : vector<64x8xbf16>, vector<8x16xbf16>, vector<64x16xf32> -> vector<64x16xf32>
    %56 = arith.addf %50, %55 : vector<64x16xf32>
    %c0_47 = arith.constant 0 : index
    %c0_48 = arith.constant 0 : index
    %57 = vector.load %arg4[%c0_47, %c0_48] : memref<1x16xf32, #tpu.memory_space<vmem>>, vector<1x16xf32>
    %58 = vector.broadcast %57 : vector<1x16xf32> to vector<64x16xf32>
    %59 = arith.addf %56, %58 : vector<64x16xf32>
    %cst_49 = arith.constant 0.000000e+00 : f32
    %60 = vector.broadcast %cst_49 : f32 to vector<64x16xf32>
    %61 = arith.maximumf %59, %60 : vector<64x16xf32>
    %62 = vector.shape_cast %61 : vector<64x16xf32> to vector<8x8x16xf32>
    %63 = arith.truncf %62 : vector<8x8x16xf32> to vector<8x8x16xbf16>
    %c0_50 = arith.constant 0 : index
    %c0_51 = arith.constant 0 : index
    %c0_52 = arith.constant 0 : index
    %c0_53 = arith.constant 0 : index
    %64 = vector.load %arg5[%c0_50, %c0_51, %c0_52, %c0_53] : memref<1x8x8x16xbf16, #tpu.memory_space<vmem>>, vector<1x8x8x16xbf16>
    %65 = vector.shape_cast %64 : vector<1x8x8x16xbf16> to vector<8x8x16xbf16>
    %66 = vector.shape_cast %63 : vector<8x8x16xbf16> to vector<1x8x8x16xbf16>
    tpu.vector_store %arg5[%c0_50, %c0_51, %c0_52, %c0_53], %66 {strides = array<i32>} : memref<1x8x8x16xbf16, #tpu.memory_space<vmem>>, vector<1x8x8x16xbf16>,
    return
  }
  func.func @transform_0(%arg0: i32, %arg1: i32) -> (i32, i32, i32, i32, i32) {
    %c0_i32 = arith.constant 0 : i32
    %c0_i32_0 = arith.constant 0 : i32
    %c0_i32_1 = arith.constant 0 : i32
    %c0_i32_2 = arith.constant 0 : i32
    return %arg0, %arg1, %c0_i32, %c0_i32_0, %c0_i32_1 : i32, i32, i32, i32, i32
  }
  func.func @transform_1(%arg0: i32, %arg1: i32) -> (i32, i32, i32, i32) {
    %c0_i32 = arith.constant 0 : i32
    %c0_i32_0 = arith.constant 0 : i32
    %c0_i32_1 = arith.constant 0 : i32
    %c0_i32_2 = arith.constant 0 : i32
    %c0_i32_3 = arith.constant 0 : i32
    return %c0_i32, %c0_i32_0, %c0_i32_1, %c0_i32_2 : i32, i32, i32, i32
  }
  func.func @transform_2(%arg0: i32, %arg1: i32) -> (i32, i32) {
    %c0_i32 = arith.constant 0 : i32
    %c0_i32_0 = arith.constant 0 : i32
    %c0_i32_1 = arith.constant 0 : i32
    return %c0_i32, %c0_i32_0 : i32, i32
  }
  func.func @transform_3(%arg0: i32, %arg1: i32) -> (i32, i32, i32, i32) {
    %c0_i32 = arith.constant 0 : i32
    %c0_i32_0 = arith.constant 0 : i32
    %c0_i32_1 = arith.constant 0 : i32
    return %arg0, %arg1, %c0_i32, %c0_i32_0 : i32, i32, i32, i32
  }
}

module attributes {stable_mosaic.version = 11 : i64} {
  func.func @_matmul_bias_act_kernel(%arg0: i32, %arg1: i32, %arg2: i32, %arg3: memref<8x256xbf16, #tpu.memory_space<vmem>>, %arg4: memref<256x512xbf16, #tpu.memory_space<vmem>>, %arg5: memref<1x512xf32, #tpu.memory_space<vmem>>, %arg6: memref<8x512xbf16, #tpu.memory_space<vmem>>, %arg7: memref<8x512xf32, #tpu.memory_space<vmem>>) attributes {dimension_semantics = [#tpu.dimension_semantics<parallel>, #tpu.dimension_semantics<parallel>, #tpu.dimension_semantics<arbitrary>], iteration_bounds = array<i64: 1, 8, 1>, scalar_prefetch = 0 : i64, scratch_operands = 1 : i64, tpu.core_type = #tpu.core_type<tc>, window_params = [{transform_indices = @transform_0, window_bounds = array<i64: 8, 256>}, {transform_indices = @transform_1, window_bounds = array<i64: 256, 512>}, {transform_indices = @transform_2, window_bounds = array<i64: 1, 512>}, {transform_indices = @transform_3, window_bounds = array<i64: 8, 512>}]} {
    %c0_i32 = arith.constant 0 : i32
    %0 = arith.cmpi eq, %arg2, %c0_i32 : i32
    %1 = arith.extui %0 : i1 to i32
    %c0_i32_0 = arith.constant 0 : i32
    %2 = arith.cmpi ne, %1, %c0_i32_0 : i32
    scf.if %2 {
      %cst_10 = arith.constant 0.000000e+00 : f32
      %12 = vector.broadcast %cst_10 : f32 to vector<8x512xf32>
      %c0_11 = arith.constant 0 : index
      %c0_12 = arith.constant 0 : index
      %13 = vector.load %arg7[%c0_11, %c0_12] : memref<8x512xf32, #tpu.memory_space<vmem>>, vector<8x512xf32>
      tpu.vector_store %arg7[%c0_11, %c0_12], %12 {strides = array<i32>} : memref<8x512xf32, #tpu.memory_space<vmem>>, vector<8x512xf32>,
    } else {
    }
    %c0 = arith.constant 0 : index
    %c0_1 = arith.constant 0 : index
    %3 = vector.load %arg7[%c0, %c0_1] : memref<8x512xf32, #tpu.memory_space<vmem>>, vector<8x512xf32>
    %c0_2 = arith.constant 0 : index
    %c0_3 = arith.constant 0 : index
    %4 = vector.load %arg3[%c0_2, %c0_3] : memref<8x256xbf16, #tpu.memory_space<vmem>>, vector<8x256xbf16>
    %c0_4 = arith.constant 0 : index
    %c0_5 = arith.constant 0 : index
    %5 = vector.load %arg4[%c0_4, %c0_5] : memref<256x512xbf16, #tpu.memory_space<vmem>>, vector<256x512xbf16>
    %cst = arith.constant dense<0.000000e+00> : vector<8x512xf32>
    %6 = tpu.matmul %4, %5, %cst {dimension_numbers = #tpu.dot_dimension_numbers<[1], [0], [0], [1], [0, 0, 1, 1], [], []>} : vector<8x256xbf16>, vector<256x512xbf16>, vector<8x512xf32> -> vector<8x512xf32>
    %7 = arith.addf %3, %6 : vector<8x512xf32>
    %c0_6 = arith.constant 0 : index
    %c0_7 = arith.constant 0 : index
    %8 = vector.load %arg7[%c0_6, %c0_7] : memref<8x512xf32, #tpu.memory_space<vmem>>, vector<8x512xf32>
    tpu.vector_store %arg7[%c0_6, %c0_7], %7 {strides = array<i32>} : memref<8x512xf32, #tpu.memory_space<vmem>>, vector<8x512xf32>,
    %c0_i32_8 = arith.constant 0 : i32
    %9 = arith.cmpi eq, %arg2, %c0_i32_8 : i32
    %10 = arith.extui %9 : i1 to i32
    %c0_i32_9 = arith.constant 0 : i32
    %11 = arith.cmpi ne, %10, %c0_i32_9 : i32
    scf.if %11 {
      %c0_10 = arith.constant 0 : index
      %c0_11 = arith.constant 0 : index
      %12 = vector.load %arg7[%c0_10, %c0_11] : memref<8x512xf32, #tpu.memory_space<vmem>>, vector<8x512xf32>
      %c0_12 = arith.constant 0 : index
      %c0_13 = arith.constant 0 : index
      %13 = vector.load %arg5[%c0_12, %c0_13] : memref<1x512xf32, #tpu.memory_space<vmem>>, vector<1x512xf32>
      %14 = vector.broadcast %13 : vector<1x512xf32> to vector<8x512xf32>
      %15 = arith.addf %12, %14 : vector<8x512xf32>
      %cst_14 = arith.constant 0.000000e+00 : f32
      %16 = vector.broadcast %cst_14 : f32 to vector<8x512xf32>
      %17 = arith.maximumf %15, %16 : vector<8x512xf32>
      %18 = arith.truncf %17 : vector<8x512xf32> to vector<8x512xbf16>
      %c0_15 = arith.constant 0 : index
      %c0_16 = arith.constant 0 : index
      %19 = vector.load %arg6[%c0_15, %c0_16] : memref<8x512xbf16, #tpu.memory_space<vmem>>, vector<8x512xbf16>
      tpu.vector_store %arg6[%c0_15, %c0_16], %18 {strides = array<i32>} : memref<8x512xbf16, #tpu.memory_space<vmem>>, vector<8x512xbf16>,
    } else {
    }
    return
  }
  func.func @transform_0(%arg0: i32, %arg1: i32, %arg2: i32) -> (i32, i32) {
    %c0_i32 = arith.constant 0 : i32
    return %arg0, %arg2 : i32, i32
  }
  func.func @transform_1(%arg0: i32, %arg1: i32, %arg2: i32) -> (i32, i32) {
    %c0_i32 = arith.constant 0 : i32
    return %arg2, %arg1 : i32, i32
  }
  func.func @transform_2(%arg0: i32, %arg1: i32, %arg2: i32) -> (i32, i32) {
    %c0_i32 = arith.constant 0 : i32
    %c0_i32_0 = arith.constant 0 : i32
    return %c0_i32, %arg1 : i32, i32
  }
  func.func @transform_3(%arg0: i32, %arg1: i32, %arg2: i32) -> (i32, i32) {
    %c0_i32 = arith.constant 0 : i32
    return %arg0, %arg1 : i32, i32
  }
}

module attributes {stable_mosaic.version = 11 : i64} {
  func.func @_maxpool_kernel(%arg0: i32, %arg1: i32, %arg2: memref<1x4x2x4x32xbf16, #tpu.memory_space<vmem>>, %arg3: memref<1x4x4x16xbf16, #tpu.memory_space<vmem>>) attributes {dimension_semantics = [#tpu.dimension_semantics<parallel>, #tpu.dimension_semantics<parallel>], iteration_bounds = array<i64: 2, 1>, scalar_prefetch = 0 : i64, scratch_operands = 0 : i64, tpu.core_type = #tpu.core_type<tc>, window_params = [{transform_indices = @transform_0, window_bounds = array<i64: 1, 4, 2, 4, 32>}, {transform_indices = @transform_1, window_bounds = array<i64: 1, 4, 4, 16>}]} {
    %c0 = arith.constant 0 : index
    %c0_0 = arith.constant 0 : index
    %c0_1 = arith.constant 0 : index
    %c0_2 = arith.constant 0 : index
    %c0_3 = arith.constant 0 : index
    %0 = vector.load %arg2[%c0, %c0_0, %c0_1, %c0_2, %c0_3] : memref<1x4x2x4x32xbf16, #tpu.memory_space<vmem>>, vector<1x4x2x4x32xbf16>
    %1 = vector.shape_cast %0 : vector<1x4x2x4x32xbf16> to vector<4x2x4x32xbf16>
    %2 = vector.extract_strided_slice %1 {offsets = [0, 0, 0, 0], sizes = [4, 1, 4, 32], strides = [1, 1, 1, 1]} : vector<4x2x4x32xbf16> to vector<4x1x4x32xbf16>
    %3 = vector.shape_cast %2 : vector<4x1x4x32xbf16> to vector<4x4x32xbf16>
    %4 = vector.extract_strided_slice %1 {offsets = [0, 1, 0, 0], sizes = [4, 1, 4, 32], strides = [1, 1, 1, 1]} : vector<4x2x4x32xbf16> to vector<4x1x4x32xbf16>
    %5 = vector.shape_cast %4 : vector<4x1x4x32xbf16> to vector<4x4x32xbf16>
    %6 = arith.maximumf %3, %5 : vector<4x4x32xbf16>
    %7 = vector.extract_strided_slice %6 {offsets = [0, 0, 0], sizes = [4, 4, 16], strides = [1, 1, 1]} : vector<4x4x32xbf16> to vector<4x4x16xbf16>
    %8 = vector.extract_strided_slice %6 {offsets = [0, 0, 16], sizes = [4, 4, 16], strides = [1, 1, 1]} : vector<4x4x32xbf16> to vector<4x4x16xbf16>
    %9 = arith.maximumf %7, %8 : vector<4x4x16xbf16>
    %c0_4 = arith.constant 0 : index
    %c0_5 = arith.constant 0 : index
    %c0_6 = arith.constant 0 : index
    %c0_7 = arith.constant 0 : index
    %10 = vector.load %arg3[%c0_4, %c0_5, %c0_6, %c0_7] : memref<1x4x4x16xbf16, #tpu.memory_space<vmem>>, vector<1x4x4x16xbf16>
    %11 = vector.shape_cast %10 : vector<1x4x4x16xbf16> to vector<4x4x16xbf16>
    %12 = vector.shape_cast %9 : vector<4x4x16xbf16> to vector<1x4x4x16xbf16>
    tpu.vector_store %arg3[%c0_4, %c0_5, %c0_6, %c0_7], %12 {strides = array<i32>} : memref<1x4x4x16xbf16, #tpu.memory_space<vmem>>, vector<1x4x4x16xbf16>,
    return
  }
  func.func @transform_0(%arg0: i32, %arg1: i32) -> (i32, i32, i32, i32, i32) {
    %c0_i32 = arith.constant 0 : i32
    %c0_i32_0 = arith.constant 0 : i32
    %c0_i32_1 = arith.constant 0 : i32
    %c0_i32_2 = arith.constant 0 : i32
    return %arg0, %arg1, %c0_i32, %c0_i32_0, %c0_i32_1 : i32, i32, i32, i32, i32
  }
  func.func @transform_1(%arg0: i32, %arg1: i32) -> (i32, i32, i32, i32) {
    %c0_i32 = arith.constant 0 : i32
    %c0_i32_0 = arith.constant 0 : i32
    %c0_i32_1 = arith.constant 0 : i32
    return %arg0, %arg1, %c0_i32, %c0_i32_0 : i32, i32, i32, i32
  }
}

module attributes {stable_mosaic.version = 11 : i64} {
  func.func @_matmul_bias_act_kernel(%arg0: i32, %arg1: i32, %arg2: i32, %arg3: memref<8x512xbf16, #tpu.memory_space<vmem>>, %arg4: memref<512x512xbf16, #tpu.memory_space<vmem>>, %arg5: memref<1x512xf32, #tpu.memory_space<vmem>>, %arg6: memref<8x512xbf16, #tpu.memory_space<vmem>>, %arg7: memref<8x512xf32, #tpu.memory_space<vmem>>) attributes {dimension_semantics = [#tpu.dimension_semantics<parallel>, #tpu.dimension_semantics<parallel>, #tpu.dimension_semantics<arbitrary>], iteration_bounds = array<i64: 1, 8, 8>, scalar_prefetch = 0 : i64, scratch_operands = 1 : i64, tpu.core_type = #tpu.core_type<tc>, window_params = [{transform_indices = @transform_0, window_bounds = array<i64: 8, 512>}, {transform_indices = @transform_1, window_bounds = array<i64: 512, 512>}, {transform_indices = @transform_2, window_bounds = array<i64: 1, 512>}, {transform_indices = @transform_3, window_bounds = array<i64: 8, 512>}]} {
    %c0_i32 = arith.constant 0 : i32
    %0 = arith.cmpi eq, %arg2, %c0_i32 : i32
    %1 = arith.extui %0 : i1 to i32
    %c0_i32_0 = arith.constant 0 : i32
    %2 = arith.cmpi ne, %1, %c0_i32_0 : i32
    scf.if %2 {
      %cst_9 = arith.constant 0.000000e+00 : f32
      %12 = vector.broadcast %cst_9 : f32 to vector<8x512xf32>
      %c0_10 = arith.constant 0 : index
      %c0_11 = arith.constant 0 : index
      %13 = vector.load %arg7[%c0_10, %c0_11] : memref<8x512xf32, #tpu.memory_space<vmem>>, vector<8x512xf32>
      tpu.vector_store %arg7[%c0_10, %c0_11], %12 {strides = array<i32>} : memref<8x512xf32, #tpu.memory_space<vmem>>, vector<8x512xf32>,
    } else {
    }
    %c0 = arith.constant 0 : index
    %c0_1 = arith.constant 0 : index
    %3 = vector.load %arg7[%c0, %c0_1] : memref<8x512xf32, #tpu.memory_space<vmem>>, vector<8x512xf32>
    %c0_2 = arith.constant 0 : index
    %c0_3 = arith.constant 0 : index
    %4 = vector.load %arg3[%c0_2, %c0_3] : memref<8x512xbf16, #tpu.memory_space<vmem>>, vector<8x512xbf16>
    %c0_4 = arith.constant 0 : index
    %c0_5 = arith.constant 0 : index
    %5 = vector.load %arg4[%c0_4, %c0_5] : memref<512x512xbf16, #tpu.memory_space<vmem>>, vector<512x512xbf16>
    %cst = arith.constant dense<0.000000e+00> : vector<8x512xf32>
    %6 = tpu.matmul %4, %5, %cst {dimension_numbers = #tpu.dot_dimension_numbers<[1], [0], [0], [1], [0, 0, 1, 1], [], []>} : vector<8x512xbf16>, vector<512x512xbf16>, vector<8x512xf32> -> vector<8x512xf32>
    %7 = arith.addf %3, %6 : vector<8x512xf32>
    %c0_6 = arith.constant 0 : index
    %c0_7 = arith.constant 0 : index
    %8 = vector.load %arg7[%c0_6, %c0_7] : memref<8x512xf32, #tpu.memory_space<vmem>>, vector<8x512xf32>
    tpu.vector_store %arg7[%c0_6, %c0_7], %7 {strides = array<i32>} : memref<8x512xf32, #tpu.memory_space<vmem>>, vector<8x512xf32>,
    %c7_i32 = arith.constant 7 : i32
    %9 = arith.cmpi eq, %arg2, %c7_i32 : i32
    %10 = arith.extui %9 : i1 to i32
    %c0_i32_8 = arith.constant 0 : i32
    %11 = arith.cmpi ne, %10, %c0_i32_8 : i32
    scf.if %11 {
      %c0_9 = arith.constant 0 : index
      %c0_10 = arith.constant 0 : index
      %12 = vector.load %arg7[%c0_9, %c0_10] : memref<8x512xf32, #tpu.memory_space<vmem>>, vector<8x512xf32>
      %c0_11 = arith.constant 0 : index
      %c0_12 = arith.constant 0 : index
      %13 = vector.load %arg5[%c0_11, %c0_12] : memref<1x512xf32, #tpu.memory_space<vmem>>, vector<1x512xf32>
      %14 = vector.broadcast %13 : vector<1x512xf32> to vector<8x512xf32>
      %15 = arith.addf %12, %14 : vector<8x512xf32>
      %cst_13 = arith.constant 0.000000e+00 : f32
      %16 = vector.broadcast %cst_13 : f32 to vector<8x512xf32>
      %17 = arith.maximumf %15, %16 : vector<8x512xf32>
      %18 = arith.truncf %17 : vector<8x512xf32> to vector<8x512xbf16>
      %c0_14 = arith.constant 0 : index
      %c0_15 = arith.constant 0 : index
      %19 = vector.load %arg6[%c0_14, %c0_15] : memref<8x512xbf16, #tpu.memory_space<vmem>>, vector<8x512xbf16>
      tpu.vector_store %arg6[%c0_14, %c0_15], %18 {strides = array<i32>} : memref<8x512xbf16, #tpu.memory_space<vmem>>, vector<8x512xbf16>,
    } else {
    }
    return
  }
  func.func @transform_0(%arg0: i32, %arg1: i32, %arg2: i32) -> (i32, i32) {
    %c0_i32 = arith.constant 0 : i32
    return %arg0, %arg2 : i32, i32
  }
  func.func @transform_1(%arg0: i32, %arg1: i32, %arg2: i32) -> (i32, i32) {
    %c0_i32 = arith.constant 0 : i32
    return %arg2, %arg1 : i32, i32
  }
  func.func @transform_2(%arg0: i32, %arg1: i32, %arg2: i32) -> (i32, i32) {
    %c0_i32 = arith.constant 0 : i32
    %c0_i32_0 = arith.constant 0 : i32
    return %c0_i32, %arg1 : i32, i32
  }
  func.func @transform_3(%arg0: i32, %arg1: i32, %arg2: i32) -> (i32, i32) {
    %c0_i32 = arith.constant 0 : i32
    return %arg0, %arg1 : i32, i32
  }
}

module attributes {stable_mosaic.version = 11 : i64} {
  func.func @_matmul_bias_act_kernel(%arg0: i32, %arg1: i32, %arg2: i32, %arg3: memref<8x512xbf16, #tpu.memory_space<vmem>>, %arg4: memref<512x128xbf16, #tpu.memory_space<vmem>>, %arg5: memref<1x128xf32, #tpu.memory_space<vmem>>, %arg6: memref<8x128xf32, #tpu.memory_space<vmem>>, %arg7: memref<8x128xf32, #tpu.memory_space<vmem>>) attributes {dimension_semantics = [#tpu.dimension_semantics<parallel>, #tpu.dimension_semantics<parallel>, #tpu.dimension_semantics<arbitrary>], iteration_bounds = array<i64: 1, 1, 8>, scalar_prefetch = 0 : i64, scratch_operands = 1 : i64, tpu.core_type = #tpu.core_type<tc>, window_params = [{transform_indices = @transform_0, window_bounds = array<i64: 8, 512>}, {transform_indices = @transform_1, window_bounds = array<i64: 512, 128>}, {transform_indices = @transform_2, window_bounds = array<i64: 1, 128>}, {transform_indices = @transform_3, window_bounds = array<i64: 8, 128>}]} {
    %c0_i32 = arith.constant 0 : i32
    %0 = arith.cmpi eq, %arg2, %c0_i32 : i32
    %1 = arith.extui %0 : i1 to i32
    %c0_i32_0 = arith.constant 0 : i32
    %2 = arith.cmpi ne, %1, %c0_i32_0 : i32
    scf.if %2 {
      %cst_9 = arith.constant 0.000000e+00 : f32
      %12 = vector.broadcast %cst_9 : f32 to vector<8x128xf32>
      %c0_10 = arith.constant 0 : index
      %c0_11 = arith.constant 0 : index
      %13 = vector.load %arg7[%c0_10, %c0_11] : memref<8x128xf32, #tpu.memory_space<vmem>>, vector<8x128xf32>
      tpu.vector_store %arg7[%c0_10, %c0_11], %12 {strides = array<i32>} : memref<8x128xf32, #tpu.memory_space<vmem>>, vector<8x128xf32>,
    } else {
    }
    %c0 = arith.constant 0 : index
    %c0_1 = arith.constant 0 : index
    %3 = vector.load %arg7[%c0, %c0_1] : memref<8x128xf32, #tpu.memory_space<vmem>>, vector<8x128xf32>
    %c0_2 = arith.constant 0 : index
    %c0_3 = arith.constant 0 : index
    %4 = vector.load %arg3[%c0_2, %c0_3] : memref<8x512xbf16, #tpu.memory_space<vmem>>, vector<8x512xbf16>
    %c0_4 = arith.constant 0 : index
    %c0_5 = arith.constant 0 : index
    %5 = vector.load %arg4[%c0_4, %c0_5] : memref<512x128xbf16, #tpu.memory_space<vmem>>, vector<512x128xbf16>
    %cst = arith.constant dense<0.000000e+00> : vector<8x128xf32>
    %6 = tpu.matmul %4, %5, %cst {dimension_numbers = #tpu.dot_dimension_numbers<[1], [0], [0], [1], [0, 0, 1, 1], [], []>} : vector<8x512xbf16>, vector<512x128xbf16>, vector<8x128xf32> -> vector<8x128xf32>
    %7 = arith.addf %3, %6 : vector<8x128xf32>
    %c0_6 = arith.constant 0 : index
    %c0_7 = arith.constant 0 : index
    %8 = vector.load %arg7[%c0_6, %c0_7] : memref<8x128xf32, #tpu.memory_space<vmem>>, vector<8x128xf32>
    tpu.vector_store %arg7[%c0_6, %c0_7], %7 {strides = array<i32>} : memref<8x128xf32, #tpu.memory_space<vmem>>, vector<8x128xf32>,
    %c7_i32 = arith.constant 7 : i32
    %9 = arith.cmpi eq, %arg2, %c7_i32 : i32
    %10 = arith.extui %9 : i1 to i32
    %c0_i32_8 = arith.constant 0 : i32
    %11 = arith.cmpi ne, %10, %c0_i32_8 : i32
    scf.if %11 {
      %c0_9 = arith.constant 0 : index
      %c0_10 = arith.constant 0 : index
      %12 = vector.load %arg7[%c0_9, %c0_10] : memref<8x128xf32, #tpu.memory_space<vmem>>, vector<8x128xf32>
      %c0_11 = arith.constant 0 : index
      %c0_12 = arith.constant 0 : index
      %13 = vector.load %arg5[%c0_11, %c0_12] : memref<1x128xf32, #tpu.memory_space<vmem>>, vector<1x128xf32>
      %14 = vector.broadcast %13 : vector<1x128xf32> to vector<8x128xf32>
      %15 = arith.addf %12, %14 : vector<8x128xf32>
      %c0_13 = arith.constant 0 : index
      %c0_14 = arith.constant 0 : index
      %16 = vector.load %arg6[%c0_13, %c0_14] : memref<8x128xf32, #tpu.memory_space<vmem>>, vector<8x128xf32>
      tpu.vector_store %arg6[%c0_13, %c0_14], %15 {strides = array<i32>} : memref<8x128xf32, #tpu.memory_space<vmem>>, vector<8x128xf32>,
    } else {
    }
    return
  }
  func.func @transform_0(%arg0: i32, %arg1: i32, %arg2: i32) -> (i32, i32) {
    %c0_i32 = arith.constant 0 : i32
    return %arg0, %arg2 : i32, i32
  }
  func.func @transform_1(%arg0: i32, %arg1: i32, %arg2: i32) -> (i32, i32) {
    %c0_i32 = arith.constant 0 : i32
    return %arg2, %arg1 : i32, i32
  }
  func.func @transform_2(%arg0: i32, %arg1: i32, %arg2: i32) -> (i32, i32) {
    %c0_i32 = arith.constant 0 : i32
    %c0_i32_0 = arith.constant 0 : i32
    return %c0_i32, %arg1 : i32, i32
  }
  func.func @transform_3(%arg0: i32, %arg1: i32, %arg2: i32) -> (i32, i32) {
    %c0_i32 = arith.constant 0 : i32
    return %arg0, %arg1 : i32, i32
  }
}

</mosaic_0001>

<bundles_post_ra>
// kernel: vgg_forward.8
= control target key start
LH: loop header
LB: loop body
LE: loop exit
PB: predicated region body
PF: predicated region fallthrough
CT: control target
= control target key end

     0   :  { %s395_s6 = smov 0   ;;  %s397_s7 = smov 0   ;;  %s440_s0 = inlined_call_operand.vmem [shape: bf16[2,8,2,8,16], index: 0, kind: input, shape index: {}]   ;;  %s441_s1 = inlined_call_operand.vmem [shape: bf16[2,8,8,8], index: 1, kind: output, shape index: {}]  }
   0x1   :  { %s399_s8 = smov 0  }
   0x2 LB: > { %s23_s9 = sadd.s32 1, %s378_s7  ;;  %p326_p0 = scmp.ge.s32.totalorder %s382_s8, 1  ;;  %s382_s8 = sphi %s399_s8, %s11_s8   ;;  %s378_s7 = sphi %s397_s7, %s443_s7   ;;  %s374_s6 = sphi %s395_s6, %s442_s6  }
   0x3   : > { %p25_p1 = scmp.ge.s32.totalorder %s23_s9, 2  ;;  %p109_p2 = scmp.lt.s32.totalorder %s382_s8, 3 }
   0x5   : > { %s445_s9 = smov (%p25_p1, %s23_s9), 0  ;;  %p110_p3 = pnand %p326_p0, %p109_p2 }
   0x6   : > { %p139_p4 = scmp.lt.s32.totalorder (!%p110_p3), %s374_s6, 1  ;;  %s384_s14 = smov (!%p110_p3), 120  }
   0x7   : > { %113 = sbr.rel (%p110_p3) target bundleno = 149 (0x95), region = 24 }
   0xc   : > { %s447_s6 = smov (!%p139_p4, %s374_s6), 1  ;;  %vm223_vm0 = vcmask 60416  }
   0xd   : > { %s333_s10 = sshll.u32 %s447_s6, 6  ;;  %s334_s15 = sshll.u32 %s447_s6, 5 }
   0xe   : > { %s147_s13 = scalar_lea.vmem %s440_s0, %s333_s10  ;;  %s157_s18 = scalar_lea.vmem %s441_s1, %s334_s15 }
   0xf   : > { %v163_v0 = vld [vmem:[%s147_s13 + $0x10] sm:$0xf]  ;;  %v164_v1 = vld [vmem:[%s147_s13 + $0x14] sm:$0xf]  ;;  %v159_v2 = vld [vmem:[%s147_s13] sm:$0xf] }
  0x10   : > { %v177_v3 = vmax.bf16 %v164_v1, %v163_v0  ;;  %v160_v4 = vld [vmem:[%s147_s13 + $0x4] sm:$0xf]  ;;  %v165_v5 = vld [vmem:[%s147_s13 + $0x18] sm:$0xf]  ;;  %v166_v6 = vld [vmem:[%s147_s13 + $0x1c] sm:$0xf] }
  0x11   : > { %v175_v7 = vmax.bf16 %v160_v4, %v159_v2  ;;  %v161_v8 = vld [vmem:[%s147_s13 + $0x8] sm:$0xf]  ;;  %v162_v9 = vld [vmem:[%s147_s13 + $0xc] sm:$0xf]  ;;  %v178_v10 = vmax.bf16 %v166_v6, %v165_v5  ;;  %v167_v14 = vld [vmem:[%s147_s13 + $0x20] sm:$0xf] }
  0x12   : > { %195 = vrot.lane.b32.xlu1 %v177_v3, %s384_s14  ;;  %v176_v11 = vmax.bf16 %v162_v9, %v161_v8  ;;  %v169_v12 = vld [vmem:[%s147_s13 + $0x28] sm:$0xf]  ;;  %v170_v13 = vld [vmem:[%s147_s13 + $0x2c] sm:$0xf]  ;;  %v168_v15 = vld [vmem:[%s147_s13 + $0x24] sm:$0xf] }
  0x13   : > { %191 = vrot.lane.b32.xlu0 %v175_v7, %s384_s14  ;;  %v180_v16 = vmax.bf16 %v170_v13, %v169_v12  ;;  %v179_v17 = vmax.bf16 %v168_v15, %v167_v14  ;;  %v173_v18 = vld [vmem:[%s147_s13 + $0x38] sm:$0xf]  ;;  %v174_v19 = vld [vmem:[%s147_s13 + $0x3c] sm:$0xf]  ;;  %v171_v20 = vld [vmem:[%s147_s13 + $0x30] sm:$0xf] }
  0x14   : > { %v172_v21 = vld [vmem:[%s147_s13 + $0x34] sm:$0xf]  ;;  %v182_v22 = vmax.bf16 %v174_v19, %v173_v18 }
  0x15   : > { %v181_v23 = vmax.bf16 %v172_v21, %v171_v20 }
  0x16   : > { %197 = vrot.lane.b32.xlu1 %v178_v10, %s384_s14 }
  0x17   : > { %193 = vrot.lane.b32.xlu0 %v176_v11, %s384_s14 }
  0x1a   : > { %201 = vrot.lane.b32.xlu1 %v180_v16, %s384_s14 }
  0x1b   : > { %199 = vrot.lane.b32.xlu0 %v179_v17, %s384_s14 }
  0x1e   : > { %205 = vrot.lane.b32.xlu1 %v182_v22, %s384_s14 }
  0x1f   : > { %203 = vrot.lane.b32.xlu0 %v181_v23, %s384_s14 }
  0x84   : > { %v196_v24 = vpop.permute.xlu1 %195 }
  0x85   : > { %v217_v25 = vmax.bf16 %v196_v24, %v177_v3  ;;  %v192_v26 = vpop.permute.xlu0 %191 }
  0x86   : > { %v215_v27 = vmax.bf16 %v192_v26, %v175_v7 }
  0x87   : > { %226 = vst.msk [vmem:[%s157_s18 + $0x8] sm:$0xf] %vm223_vm0, %v217_v25 }
  0x88   : > { %224 = vst.msk [vmem:[%s157_s18] sm:$0xf] %vm223_vm0, %v215_v27  ;;  %v198_v28 = vpop.permute.xlu1 %197 }
  0x89   : > { %v218_v29 = vmax.bf16 %v198_v28, %v178_v10  ;;  %v194_v30 = vpop.permute.xlu0 %193 }
  0x8a   : > { %v216_v31 = vmax.bf16 %v194_v30, %v176_v11 }
  0x8b   : > { %227 = vst.msk [vmem:[%s157_s18 + $0xc] sm:$0xf] %vm223_vm0, %v218_v29 }
  0x8c   : > { %225 = vst.msk [vmem:[%s157_s18 + $0x4] sm:$0xf] %vm223_vm0, %v216_v31  ;;  %v202_v32 = vpop.permute.xlu1 %201 }
  0x8d   : > { %v220_v33 = vmax.bf16 %v202_v32, %v180_v16  ;;  %v200_v34 = vpop.permute.xlu0 %199 }
  0x8e   : > { %v219_v35 = vmax.bf16 %v200_v34, %v179_v17 }
  0x8f   : > { %229 = vst.msk [vmem:[%s157_s18 + $0x14] sm:$0xf] %vm223_vm0, %v220_v33 }
  0x90   : > { %228 = vst.msk [vmem:[%s157_s18 + $0x10] sm:$0xf] %vm223_vm0, %v219_v35  ;;  %v206_v36 = vpop.permute.xlu1 %205 }
  0x91   : > { %v222_v37 = vmax.bf16 %v206_v36, %v182_v22  ;;  %v204_v38 = vpop.permute.xlu0 %203 }
  0x92   : > { %v221_v39 = vmax.bf16 %v204_v38, %v181_v23 }
  0x93   : > { %231 = vst.msk [vmem:[%s157_s18 + $0x1c] sm:$0xf] %vm223_vm0, %v222_v37 }
  0x94   : > { %230 = vst.msk [vmem:[%s157_s18 + $0x18] sm:$0xf] %vm223_vm0, %v221_v39 }
  0x95 PF: > { %s11_s8 = sadd.s32 1, %s382_s8   ;;  %s442_s6 = smov %s378_s7 }
  0x96   : > { %p8_p5 = scmp.ge.s32.totalorder %s11_s8, 4   ;;  %s443_s7 = smov %s445_s9 }
  0x98   :  { %10 = sbr.rel (!%p8_p5) target bundleno = 2 (0x2), region = 54 }

// kernel: vgg_forward.10
= control target key start
LH: loop header
LB: loop body
LE: loop exit
PB: predicated region body
PF: predicated region fallthrough
CT: control target
= control target key end

     0   :  { %s359_s6 = smov 0   ;;  %s361_s7 = smov 0   ;;  %s392_s0 = inlined_call_operand.vmem [shape: bf16[2,4,2,4,32], index: 0, kind: input, shape index: {}]   ;;  %s393_s1 = inlined_call_operand.vmem [shape: bf16[2,4,4,16], index: 1, kind: output, shape index: {}]  }
   0x1   :  { %s363_s8 = smov 0  }
   0x2 LB: > { %s23_s9 = sadd.s32 1, %s342_s7  ;;  %p290_p0 = scmp.ge.s32.totalorder %s346_s8, 1  ;;  %s346_s8 = sphi %s363_s8, %s11_s8   ;;  %s342_s7 = sphi %s361_s7, %s395_s7   ;;  %s338_s6 = sphi %s359_s6, %s394_s6  }
   0x3   : > { %p25_p1 = scmp.ge.s32.totalorder %s23_s9, 2  ;;  %p109_p2 = scmp.lt.s32.totalorder %s346_s8, 3 }
   0x5   : > { %s397_s9 = smov (%p25_p1, %s23_s9), 0  ;;  %p110_p3 = pnand %p290_p0, %p109_p2 }
   0x6   : > { %p139_p4 = scmp.lt.s32.totalorder (!%p110_p3), %s338_s6, 1  ;;  %s348_s14 = smov (!%p110_p3), 112  }
   0x7   : > { %113 = sbr.rel (%p110_p3) target bundleno = 141 (0x8d), region = 24 }
   0xc   : > { %s399_s6 = smov (!%p139_p4, %s338_s6), 1  ;;  %vm191_vm0 = vcmask 123904  }
   0xd   : > { %s297_s10 = sshll.u32 %s399_s6, 4  ;;  %s298_s15 = sshll.u32 %s399_s6, 3 }
   0xe   : > { %s147_s13 = scalar_lea.vmem %s392_s0, %s297_s10  ;;  %s157_s18 = scalar_lea.vmem %s393_s1, %s298_s15 }
   0xf   : > { %v163_v0 = vld [vmem:[%s147_s13 + $0x8] sm:$0x3]  ;;  %v164_v1 = vld [vmem:[%s147_s13 + $0xa] sm:$0x3]  ;;  %v159_v2 = vld [vmem:[%s147_s13] sm:$0x3] }
  0x10   : > { %v169_v3 = vmax.bf16 %v164_v1, %v163_v0  ;;  %v160_v4 = vld [vmem:[%s147_s13 + $0x2] sm:$0x3]  ;;  %v165_v5 = vld [vmem:[%s147_s13 + $0xc] sm:$0x3]  ;;  %v166_v6 = vld [vmem:[%s147_s13 + $0xe] sm:$0x3] }
  0x11   : > { %v167_v7 = vmax.bf16 %v160_v4, %v159_v2  ;;  %v161_v8 = vld [vmem:[%s147_s13 + $0x4] sm:$0x3]  ;;  %v162_v9 = vld [vmem:[%s147_s13 + $0x6] sm:$0x3]  ;;  %v170_v10 = vmax.bf16 %v166_v6, %v165_v5 }
  0x12   : > { %179 = vrot.lane.b32.xlu1 %v169_v3, %s348_s14  ;;  %v168_v11 = vmax.bf16 %v162_v9, %v161_v8 }
  0x13   : > { %175 = vrot.lane.b32.xlu0 %v167_v7, %s348_s14 }
  0x16   : > { %181 = vrot.lane.b32.xlu1 %v170_v10, %s348_s14 }
  0x17   : > { %177 = vrot.lane.b32.xlu0 %v168_v11, %s348_s14 }
  0x84   : > { %v180_v12 = vpop.permute.xlu1 %179 }
  0x85   : > { %v189_v13 = vmax.bf16 %v180_v12, %v169_v3  ;;  %v176_v14 = vpop.permute.xlu0 %175 }
  0x86   : > { %v187_v15 = vmax.bf16 %v176_v14, %v167_v7 }
  0x87   : > { %194 = vst.msk [vmem:[%s157_s18 + $0x4] sm:$0x3] %vm191_vm0, %v189_v13 }
  0x88   : > { %192 = vst.msk [vmem:[%s157_s18] sm:$0x3] %vm191_vm0, %v187_v15  ;;  %v182_v16 = vpop.permute.xlu1 %181 }
  0x89   : > { %v190_v17 = vmax.bf16 %v182_v16, %v170_v10  ;;  %v178_v18 = vpop.permute.xlu0 %177 }
  0x8a   : > { %v188_v19 = vmax.bf16 %v178_v18, %v168_v11 }
  0x8b   : > { %195 = vst.msk [vmem:[%s157_s18 + $0x6] sm:$0x3] %vm191_vm0, %v190_v17 }
  0x8c   : > { %193 = vst.msk [vmem:[%s157_s18 + $0x2] sm:$0x3] %vm191_vm0, %v188_v19 }
  0x8d PF: > { %s11_s8 = sadd.s32 1, %s346_s8   ;;  %s394_s6 = smov %s342_s7 }
  0x8e   : > { %p8_p5 = scmp.ge.s32.totalorder %s11_s8, 4   ;;  %s395_s7 = smov %s397_s9 }
  0x90   :  { %10 = sbr.rel (!%p8_p5) target bundleno = 2 (0x2), region = 54 }

// kernel: vgg_forward.9
= control target key start
LH: loop header
LB: loop body
LE: loop exit
PB: predicated region body
PF: predicated region fallthrough
CT: control target
= control target key end

     0   :  { %8 = vsyncpa [#allocation3], 0  ;;  %s2304_s0 = inlined_call_operand.vmem [shape: bf16[2,1,10,10,8], index: 0, kind: input, shape index: {}]   ;;  %s2305_s1 = inlined_call_operand.hbm [shape: bf16[3,3,8,16], index: 1, kind: input, shape index: {}]   ;;  %s2306_s2 = inlined_call_operand.hbm [shape: f32[1,16], index: 2, kind: input, shape index: {}]   ;;  %s2307_s3 = inlined_call_operand.vmem [shape: bf16[2,8,8,16], index: 3, kind: output, shape index: {}]  }
   0x1   :  { %9 = vsyncpa [#allocation5], 0  ;;  %s1841_s12 = smov 0   ;;  %s1843_s13 = smov 0  }
   0x2   :  { %s1845_s14 = smov 0  }
   0x3 LB: > { %s1440_s15 = sadd.s32 4294967295, %s1815_s14   ;;  %s27_s16 = sadd.s32 1, %s1811_s13  ;;  %s1815_s14 = sphi %s1845_s14, %s15_s14   ;;  %s1811_s13 = sphi %s1843_s13, %s2316_s13   ;;  %s1807_s12 = sphi %s1841_s12, %s2315_s12  }
   0x4   : > { %p29_p0 = scmp.ge.s32.totalorder %s27_s16, 2  ;;  %p1442_p1 = scmp.ge.s32.totalorder %s1815_s14, 1 }
   0x5   : > { %p130_p2 = scmp.lt.s32.totalorder %s1815_s14, 3  ;;  %p1866_p4 = scmp.eq.s32.totalorder %s1440_s15, 0 }
   0x6   : > { %s2318_s16 = smov (%p29_p0, %s27_s16), 0  ;;  %s1817_s19 = smov [#allocation2]  }
   0x7   : > { %p1862_p3 = pnand %p1442_p1, %p130_p2  ;;  %s142_s20 = sshll.u32 %s1817_s19, 4  ;;  %s143_s20 = int_to_ptr.vmem [resolvable:$true] %s142_s20 }
   0x8   : > { %s1818_s22 = smov [#allocation4]   ;;  %s1744_s24 = scalar_lea.vmem %s143_s20, 576 }
   0x9   : > { %p1685_p5 = pneg %p1862_p3  ;;  %s156_s23 = sshll.u32 %s1818_s22, 4  ;;  %s157_s23 = int_to_ptr.vmem [resolvable:$true] %s156_s23 }
   0xa   : > { %p1745_p8 = scmp.ne.s32.totalorder %s143_s20, %s1744_s24  ;;  %p1752_p11 = scmp.lt.s32.totalorder %s143_s20, %s143_s20 }
   0xb   : > { %p1874_p6 = pnand %p1866_p4, %p1685_p5  ;;  %p1753_p12 = scmp.lt.s32.totalorder %s1744_s24, %s1744_s24 }
   0xd   : > { %p1735_p7 = pneg %p1874_p6  ;;  %p1754_p13 = por %p1753_p12, %p1752_p11 }
   0xf   : > { %p1747_p9 = pnand %p1745_p8, %p1735_p7 }
  0x11   : > { %p1748_p10 = pneg %p1747_p9 }
  0x13   : > { %p1755_p0 = pnand %p1754_p13, %p1748_p10 }
  0x15   : > { %1758 = shalt.err (!%p1755_p0)
}
  0x16   : > { %s1819_s25 = smov 64   ;;  %s1820_s26 = smov 4  }
  0x17   : > { %1688 = dma.hbm_to_vmem [thread:$0]  (!%p1874_p6), %s2305_s1, 576, %s143_s20, [#allocation3], %s1819_s25, %s1819_s25, %s1820_s26  }
  0x18   : > { %s1770_s29 = scalar_lea.vmem %s157_s23, 16  ;;  %s1777_s30 = scalar_lea.vmem %s157_s23, 32 }
  0x19   : > { %p1771_p1 = scmp.ne.s32.totalorder %s157_s23, %s1770_s29  ;;  %p1778_p8 = scmp.lt.s32.totalorder %s157_s23, %s157_s23 }
  0x1a   : > { %p1779_p9 = scmp.lt.s32.totalorder %s1777_s30, %s1770_s29 }
  0x1b   : > { %p1773_p2 = pnand %p1771_p1, %p1735_p7 }
  0x1c   : > { %p1780_p10 = por %p1779_p9, %p1778_p8 }
  0x1d   : > { %p1774_p5 = pneg %p1773_p2 }
  0x1f   : > { %p1781_p11 = pnand %p1780_p10, %p1774_p5 }
  0x21   : > { %1784 = shalt.err (!%p1781_p11)
}
  0x22   : > { %1691 = dma.hbm_to_vmem [thread:$0]  (!%p1874_p6), %s2306_s2, 16, %s157_s23, [#allocation5]  }
  0x23   : > { %181 = sbr.rel (%p1862_p3) target bundleno = 350 (0x15e), region = 32 }
  0x28   : > { %1798 = dma.done.wait (%p1866_p4), [#allocation3], 576  }
  0x29   : > { %1800 = vsyncadd (%p1866_p4), [#allocation3], 4294966720 }
  0x2a   : > { %1802 = dma.done.wait (%p1866_p4), [#allocation5], 16  }
  0x2b   : > { %1804 = vsyncadd (%p1866_p4), [#allocation5], 4294967280  ;;  %p217_p7 = scmp.lt.s32.totalorder %s1807_s12, 1  ;;  %vm400_vm0 = vcmask 1043456   ;;  %vm258_vm1 = vsmask.f32 3328 }
  0x2c   : > { %v374_v0 = vld [vmem:[#allocation2 + $0x4] sm:$0xf]  ;;  %vm259_vm2 = vsmask.f32 7440  ;;  %vm387_vm4 = vcmask 64512   ;;  %vm577_vm5 = vcmask 1042432  }
  0x2d   : > { %s2320_s12 = smov (!%p217_p7, %s1807_s12), 1  ;;  %1667 = vmatprep.subr.msk.bf16.mxu1 %vm400_vm0, %v374_v0  ;;  %1666 = vmatprep.subr.msk.bf16.mxu0 %vm400_vm0, %v374_v0  ;;  %v402_v3 = vsel %vm400_vm0, %v374_v0, 0  ;;  %vm1950_vm3 = vmor %vm258_vm1, %vm259_vm2  ;;  %v1980_v48 = vld [vmem:[#allocation2] sm:$0xf]  ;;  %v613_v52 = vld [vmem:[#allocation2 + $0x8] sm:$0xf] }
  0x2e   : > { %s1676_s6 = smul.u32 80, %s2320_s12  ;;  %1665 = vmatpush3.bf16.msra.mxu1 %v402_v3  ;;  %1575 = vmatpush3.bf16.msra.mxu0 %v402_v3  ;;  %vm578_vm6 = vcmask 1046532   ;;  %s1528_s10 = sshll.u32 %s2320_s12, 5  ;;  %vm1319_vm8 = vcmask 125952  }
  0x2f   : > { %1668 = vmatprep.subr.msk.bf16.mxu1 %vm400_vm0, %v1980_v48  ;;  %1669 = vmatprep.subr.msk.bf16.mxu0 %vm400_vm0, %v613_v52  ;;  %vm2045_vm7 = vmor %vm577_vm5, %vm578_vm6  ;;  %s2269_s15 = scalar_lea.vmem %s2307_s3, %s1528_s10 }
  0x30   : > { %s1914_s9 = scalar_lea.vmem %s2304_s0, %s1676_s6 }
  0x31   : > { %v1917_v1 = vld [vmem:[%s1914_s9] sm:$0xf]  ;;  %v1920_v2 = vld [vmem:[%s1914_s9 + $0x4] sm:$0x1]  ;;  %v1926_v4 = vld [vmem:[%s1914_s9 + $0x8] sm:$0xf] }
  0x32   : > { %v1929_v5 = vld [vmem:[%s1914_s9 + $0xc] sm:$0x1]  ;;  %v262_v6 = vshrl.u32 %v1917_v1, 16  ;;  %v1933_v7 = vld [vmem:[%s1914_s9 + $0x10] sm:$0xf]  ;;  %v265_v9 = vshll.u32 %v1917_v1, 16 }
  0x33   : > { %v1936_v8 = vld [vmem:[%s1914_s9 + $0x14] sm:$0x1]  ;;  %v271_v10 = vshll.u32 %v1920_v2, 16  ;;  %v276_v12 = vshrl.u32 %v1926_v4, 16  ;;  %v279_v13 = vshll.u32 %v1926_v4, 16  ;;  %v285_v14 = vshll.u32 %v1929_v5, 16 }
  0x34   : > { %v264_v11 = vrot.slane %v262_v6, 4  ;;  %v267_v15 = vrot.slane %v265_v9, 5  ;;  %v290_v16 = vshrl.u32 %v1933_v7, 16  ;;  %v293_v17 = vshll.u32 %v1933_v7, 16  ;;  %v1947_v21 = vld [vmem:[%s1914_s9 + $0x18] sm:$0xf] }
  0x35   : > { %v278_v18 = vrot.slane %v276_v12, 4  ;;  %v281_v19 = vrot.slane %v279_v13, 5  ;;  %v299_v20 = vshll.u32 %v1936_v8, 16  ;;  %v273_v23 = vrot.slane %v271_v10, 5  ;;  %v1955_v29 = vld [vmem:[%s1914_s9 + $0x1c] sm:$0x1] }
  0x36   : > { %v268_v22 = vor.u32 %v267_v15, %v264_v11  ;;  %v292_v24 = vrot.slane %v290_v16, 4  ;;  %v295_v25 = vrot.slane %v293_v17, 5  ;;  %v287_v28 = vrot.slane %v285_v14, 5  ;;  %v1958_v32 = vld [vmem:[%s1914_s9 + $0x20] sm:$0xf] }
  0x37   : > { %v282_v27 = vor.u32 %v281_v19, %v278_v18  ;;  %v1961_v33 = vld [vmem:[%s1914_s9 + $0x24] sm:$0x1]  ;;  %v304_v34 = vshrl.u32 %v1947_v21, 16  ;;  %v301_v36 = vrot.slane %v299_v20, 5  ;;  %v1965_v37 = vld [vmem:[%s1914_s9 + $0x28] sm:$0xf] }
  0x38   : > { %v269_v30 = vrot.slane %v268_v22, 4  ;;  %v296_v31 = vor.u32 %v295_v25, %v292_v24  ;;  %v307_v38 = vshll.u32 %v1947_v21, 16  ;;  %v1971_v41 = vld [vmem:[%s1914_s9 + $0x2c] sm:$0x1]  ;;  %v313_v43 = vshll.u32 %v1955_v29, 16 }
  0x39   : > { %v283_v35 = vrot.slane %v282_v27, 4  ;;  %v306_v42 = vrot.slane %v304_v34, 4  ;;  %v318_v46 = vshrl.u32 %v1958_v32, 16  ;;  %v321_v47 = vshll.u32 %v1958_v32, 16  ;;  %v1984_v50 = vld [vmem:[%s1914_s9 + $0x30] sm:$0xf] }
  0x3a   : > { %v274_v39 = vsel %vm1950_vm3, %v269_v30, %v273_v23  ;;  %v297_v40 = vrot.slane %v296_v31, 4  ;;  %v309_v45 = vrot.slane %v307_v38, 5  ;;  %v327_v51 = vshll.u32 %v1961_v33, 16  ;;  %v1990_v53 = vld [vmem:[%s1914_s9 + $0x34] sm:$0x1] }
  0x3b   : > { %v1976_v44 = vsel %vm1950_vm3, %v283_v35, %v287_v28  ;;  %v315_v55 = vrot.slane %v313_v43, 5  ;;  %v320_v56 = vrot.slane %v318_v46, 4  ;;  %v323_v57 = vrot.slane %v321_v47, 5  ;;  %v2002_v62 = vld [vmem:[%s1914_s9 + $0x38] sm:$0xf] }
  0x3c   : > { %v1452_v49 = vcombine.low %v274_v39, %v1976_v44  ;;  %v310_v54 = vor.u32 %v309_v45, %v306_v42  ;;  %v1995_v58 = vsel %vm1950_vm3, %v297_v40, %v301_v36  ;;  %v332_v59 = vshrl.u32 %v1965_v37, 16  ;;  %v2007_v9 = vld [vmem:[%s1914_s9 + $0x3c] sm:$0x1]  ;;  %v825_v46 = vld [vmem:[#allocation2 + $0x10] sm:$0xf] }
  0x3d   : > { %v335_v60 = vshll.u32 %v1965_v37, 16  ;;  %v341_v61 = vshll.u32 %v1971_v41, 16  ;;  %v324_v0 = vor.u32 %v323_v57, %v320_v56  ;;  %v346_v3 = vshrl.u32 %v1984_v50, 16 }
  0x3e   : > { %1576 = vmatprep.mubr.msk.bf16.mxu0 %vm387_vm4, %v1452_v49  ;;  %v311_v63 = vrot.slane %v310_v54, 4  ;;  %v349_v6 = vshll.u32 %v1984_v50, 16  ;;  %v329_v10 = vrot.slane %v327_v51, 5  ;;  %v334_v11 = vrot.slane %v332_v59, 4 }
  0x3f   : > { %v337_v12 = vrot.slane %v335_v60, 5  ;;  %v355_v13 = vshll.u32 %v1990_v53, 16  ;;  %v325_v15 = vrot.slane %v324_v0, 4  ;;  %v348_v16 = vrot.slane %v346_v3, 4 }
  0x40   : > { %v2012_v14 = vsel %vm1950_vm3, %v311_v63, %v315_v55  ;;  %v351_v17 = vrot.slane %v349_v6, 5  ;;  %v343_v19 = vrot.slane %v341_v61, 5  ;;  %v360_v20 = vshrl.u32 %v2002_v62, 16  ;;  %v715_v6 = vld [vmem:[#allocation2 + $0xc] sm:$0xf] }
  0x41   : > { %v338_v18 = vor.u32 %v337_v12, %v334_v11  ;;  %v363_v22 = vshll.u32 %v2002_v62, 16  ;;  %v357_v24 = vrot.slane %v355_v13, 5  ;;  %v369_v25 = vshll.u32 %v2007_v9, 16 }
  0x42   : > { %v352_v23 = vor.u32 %v351_v17, %v348_v16  ;;  %v2019_v27 = vcombine.low %v1995_v58, %v2012_v14  ;;  %v2023_v28 = vsel %vm1950_vm3, %v325_v15, %v329_v10  ;;  %v362_v31 = vrot.slane %v360_v20, 4  ;;  %v2105_v17 = vld [vmem:[%s1914_s9 + $0x40] sm:$0xf] }
  0x43   : > { %v339_v30 = vrot.slane %v338_v18, 4  ;;  %v365_v34 = vrot.slane %v363_v22, 5  ;;  %v582_v35 = vrot.slane %v1920_v2, 5  ;;  %v586_v36 = vrot.slane %v1929_v5, 5 }
  0x44   : > { %v353_v38 = vrot.slane %v352_v23, 4  ;;  %1577 = vmatmul.mubr.msk.bf16.vlgmr.msra.gmra.mxu0 %vm387_vm4, %v2019_v27  ;;  %v1460_v39 = vcombine.low %v1917_v1, %v1926_v4  ;;  %v590_v40 = vrot.slane %v1936_v8, 5  ;;  %v371_v45 = vrot.slane %v369_v25, 5 }
  0x45   : > { %v2034_v42 = vsel %vm1950_vm3, %v339_v30, %v343_v19  ;;  %v366_v43 = vor.u32 %v365_v34, %v362_v31  ;;  %v594_v5 = vrot.slane %v1955_v29, 5  ;;  %v598_v47 = vrot.slane %v1961_v33, 5  ;;  %v1020_v19 = vld [vmem:[#allocation2 + $0x18] sm:$0xf]  ;;  %v2135_v30 = vld [vmem:[%s1914_s9 + $0x4c] sm:$0x1] }
  0x46   : > { %v2038_v2 = vcombine.low %v2023_v28, %v2034_v42  ;;  %v639_v49 = vsel %vm400_vm0, %v613_v52, 0  ;;  %v2051_v51 = vsel %vm1950_vm3, %v353_v38, %v357_v24  ;;  %v1468_v55 = vrot.slane %v1917_v1, 9  ;;  %v2140_v34 = vld [vmem:[%s1914_s9 + $0x48] sm:$0xf] }
  0x47   : > { %v367_v54 = vrot.slane %v366_v43, 4  ;;  %1595 = vmatpush3.bf16.msra.mxu0 %v639_v49  ;;  %v1469_v29 = vrot.slane %v1926_v4, 9  ;;  %v602_v33 = vrot.slane %v1971_v41, 5  ;;  %v502_v52 = vsel %vm400_vm0, %v1980_v48, 0 }
  0x48   : > { %1580 = vmatprep.mubr.msk.bf16.mxu1 %vm387_vm4, %v2038_v2  ;;  %v1470_v56 = vrot.slane %v1933_v7, 9  ;;  %v1471_v57 = vrot.slane %v1947_v21, 9  ;;  %1671 = vmatprep.subr.msk.bf16.mxu0 %vm400_vm0, %v825_v46  ;;  %v583_v1 = vsel %vm2045_vm7, %v1468_v55, %v582_v35  ;;  %v1472_v41 = vrot.slane %v1958_v32, 9 }
  0x49   : > { %v2065_v59 = vsel %vm1950_vm3, %v367_v54, %v371_v45  ;;  %v2071_v60 = vsel %vm2045_vm7, %v1469_v29, %v586_v36  ;;  %v606_v3 = vrot.slane %v1990_v53, 5  ;;  %v1473_v12 = vrot.slane %v1965_v37, 9 }
  0x4a   : > { %v2076_v48 = vcombine.low %v2051_v51, %v2065_v59  ;;  %v1476_v61 = vcombine.low %v583_v1, %v2071_v60  ;;  %v2081_v63 = vsel %vm2045_vm7, %v1470_v56, %v590_v40  ;;  %v2085_v0 = vsel %vm2045_vm7, %v1471_v57, %v594_v5  ;;  %v925_v40 = vld [vmem:[#allocation2 + $0x14] sm:$0xf] }
  0x4b   : > { %v2090_v10 = vcombine.low %v2081_v63, %v2085_v0  ;;  %v2094_v11 = vsel %vm2045_vm7, %v1472_v41, %v598_v47  ;;  %v844_v13 = vsel %vm400_vm0, %v825_v46, 0  ;;  %v1474_v53 = vrot.slane %v1984_v50, 9  ;;  %v254_v47 = vld [vmem:[%s1914_s9 + $0x44] sm:$0x1] }
  0x4c   : > { %1581 = vmatmul.mubr.msk.bf16.vlgmr.msra.gmra.mxu1 %vm387_vm4, %v2076_v48  ;;  %1596 = vmatprep.mubr.msk.bf16.mxu0 %vm387_vm4, %v1476_v61  ;;  %v1475_v15 = vrot.slane %v2002_v62, 9  ;;  %v610_v16 = vrot.slane %v2007_v9, 5  ;;  %v2110_v18 = vsel %vm2045_vm7, %v1473_v12, %v602_v33  ;;  %v811_v23 = vshrl.u32 %v2105_v17, 16  ;;  %v1206_v12 = vld [vmem:[#allocation2 + $0x20] sm:$0xf] }
  0x4d   : > { %1585 = vmatpush3.bf16.msra.mxu1 %v502_v52  ;;  %1586 = vmatprep.mubr.msk.bf16.mxu1 %vm387_vm4, %v1460_v39  ;;  %v2117_v9 = vcombine.low %v2094_v11, %v2110_v18  ;;  %v2121_v20 = vsel %vm2045_vm7, %v1474_v53, %v606_v3  ;;  %v814_v24 = vshll.u32 %v2105_v17, 16  ;;  %v1461_v25 = vcombine.low %v1933_v7, %v1947_v21 }
  0x4e   : > { %1670 = vmatprep.subr.msk.bf16.mxu1 %vm400_vm0, %v715_v6  ;;  %1597 = vmatmul.mubr.msk.bf16.vlgmr.msra.gmra.mxu0 %vm387_vm4, %v2090_v10  ;;  %v2125_v22 = vsel %vm2045_vm7, %v1475_v15, %v610_v16  ;;  %v1462_v31 = vcombine.low %v1958_v32, %v1965_v37  ;;  %v1492_v35 = vcombine.low %v1976_v44, %v1995_v58  ;;  %v735_v36 = vsel %vm400_vm0, %v715_v6, 0 }
  0x4f   : > { %1615 = vmatpush3.bf16.msra.mxu0 %v844_v13  ;;  %1600 = vmatprep.mubr.msk.bf16.mxu0 %vm387_vm4, %v2117_v9  ;;  %v2147_v38 = vcombine.low %v2121_v20, %v2125_v22  ;;  %v1104_v39 = vshrl.u32 %v2140_v34, 16  ;;  %v813_v43 = vrot.slane %v811_v23, 4  ;;  %v816_v45 = vrot.slane %v814_v24, 5 }
  0x50   : > { %1673 = vmatprep.subr.msk.bf16.mxu0 %vm400_vm0, %v1020_v19  ;;  %v1107_v46 = vshll.u32 %v2140_v34, 16  ;;  %v1113_v5 = vshll.u32 %v2135_v30, 16  ;;  %v820_v54 = vshll.u32 %v254_v47, 16  ;;  %v1463_v33 = vcombine.low %v1984_v50, %v2002_v62 }
  0x51   : > { %v1106_v49 = vrot.slane %v1104_v39, 4  ;;  %v817_v58 = vor.u32 %v816_v45, %v813_v43  ;;  %v1484_v52 = vcombine.low %v1926_v4, %v1933_v7  ;;  %v1493_v57 = vcombine.low %v2012_v14, %v2023_v28 }
  0x52   : > { %v1109_v44 = vrot.slane %v1107_v46, 5  ;;  %v1115_v29 = vrot.slane %v1113_v5, 5  ;;  %v1494_v1 = vcombine.low %v2034_v42, %v2051_v51  ;;  %v822_v61 = vrot.slane %v820_v54, 5  ;;  %v1118_v51 = vld [vmem:[#allocation2 + $0x1c] sm:$0xf] }
  0x53   : > { %v818_v41 = vrot.slane %v817_v58, 4  ;;  %v1028_v6 = vsel %vm400_vm0, %v1020_v19, 0  ;;  %v1485_v7 = vcombine.low %v1947_v21, %v1958_v32  ;;  %v1486_v14 = vcombine.low %v1965_v37, %v1984_v50 }
  0x54   : > { %1587 = vmatmul.mubr.msk.bf16.vlgmr.msra.gmra.mxu1 %vm387_vm4, %v1461_v25  ;;  %v1110_v55 = vor.u32 %v1109_v44, %v1106_v49  ;;  %v944_v28 = vsel %vm400_vm0, %v925_v40, 0  ;;  %v1487_v21 = vcombine.low %v2002_v62, %v2105_v17  ;;  %v1501_v26 = vcombine.low %v2071_v60, %v2081_v63 }
  0x55   : > { %1605 = vmatpush3.bf16.msra.mxu1 %v735_v36  ;;  %1590 = vmatprep.mubr.msk.bf16.mxu1 %vm387_vm4, %v1462_v31  ;;  %v823_v4 = vsel %vm1950_vm3, %v818_v41, %v822_v61  ;;  %v1213_v32 = vsel %vm400_vm0, %v1206_v12, 0  ;;  %v1502_v37 = vcombine.low %v2085_v0, %v2094_v11  ;;  %v1503_v50 = vcombine.low %v2110_v18, %v2121_v20 }
  0x56   : > { %1601 = vmatmul.mubr.msk.bf16.gmra.mxu0 %vm387_vm4, %v2147_v38  ;;  %1672 = vmatprep.subr.msk.bf16.mxu1 %vm400_vm0, %v925_v40  ;;  %v1111_v56 = vrot.slane %v1110_v55, 4  ;;  %v1495_v42 = vcombine.low %v2065_v59, %v823_v4  ;;  %v1500_v62 = vrot.slane %v2105_v17, 9  ;;  %v922_v59 = vrot.slane %v254_v47, 5 }
  0x57   : > { %1616 = vmatprep.mubr.msk.bf16.mxu0 %vm387_vm4, %v1492_v35  ;;  %v1125_v60 = vsel %vm400_vm0, %v1118_v51, 0  ;;  %v1509_v63 = vcombine.low %v2105_v17, %v2140_v34  ;;  %v1519_v11 = vrot.slane %v2140_v34, 9  ;;  %v1203_v53 = vrot.slane %v2135_v30, 5 }
  0x58   : > { %v1116_v3 = vsel %vm1950_vm3, %v1111_v56, %v1115_v29  ;;  %v923_v13 = vsel %vm2045_vm7, %v1500_v62, %v922_v59 }
  0x59   : > { %v1504_v0 = vcombine.low %v2125_v22, %v923_v13  ;;  %v1514_v16 = vcombine.low %v823_v4, %v1116_v3 }
  0x5c   : > { %1591 = vmatmul.mubr.msk.bf16.gmra.mxu1 %vm387_vm4, %v1463_v33 }
  0x5d   : > { %1606 = vmatprep.mubr.msk.bf16.mxu1 %vm387_vm4, %v1484_v52 }
  0x5e   : > { %1617 = vmatmul.mubr.msk.bf16.vlgmr.msra.gmra.mxu0 %vm387_vm4, %v1493_v57 }
  0x5f   : > { %1635 = vmatpush3.bf16.msra.mxu0 %v1028_v6  ;;  %1620 = vmatprep.mubr.msk.bf16.mxu0 %vm387_vm4, %v1494_v1 }
  0x60   : > { %1675 = vmatprep.subr.msk.bf16.mxu0 %vm400_vm0, %v1206_v12 }
  0x64   : > { %1607 = vmatmul.mubr.msk.bf16.vlgmr.msra.gmra.mxu1 %vm387_vm4, %v1485_v7 }
  0x65   : > { %1625 = vmatpush3.bf16.msra.mxu1 %v944_v28  ;;  %1610 = vmatprep.mubr.msk.bf16.mxu1 %vm387_vm4, %v1486_v14 }
  0x66   : > { %1621 = vmatmul.mubr.msk.bf16.gmra.mxu0 %vm387_vm4, %v1495_v42  ;;  %1674 = vmatprep.subr.msk.bf16.mxu1 %vm400_vm0, %v1118_v51 }
  0x67   : > { %1636 = vmatprep.mubr.msk.bf16.mxu0 %vm387_vm4, %v1461_v25 }
  0x6c   : > { %1611 = vmatmul.mubr.msk.bf16.gmra.mxu1 %vm387_vm4, %v1487_v21 }
  0x6d   : > { %1626 = vmatprep.mubr.msk.bf16.mxu1 %vm387_vm4, %v1501_v26 }
  0x6e   : > { %1637 = vmatmul.mubr.msk.bf16.vlgmr.msra.gmra.mxu0 %vm387_vm4, %v1462_v31 }
  0x6f   : > { %1655 = vmatpush3.bf16.msra.mxu0 %v1213_v32  ;;  %1640 = vmatprep.mubr.msk.bf16.mxu0 %vm387_vm4, %v1463_v33 }
  0x74   : > { %1627 = vmatmul.mubr.msk.bf16.vlgmr.msra.gmra.mxu1 %vm387_vm4, %v1502_v37 }
  0x75   : > { %1645 = vmatpush3.bf16.msra.mxu1 %v1125_v60  ;;  %1630 = vmatprep.mubr.msk.bf16.mxu1 %vm387_vm4, %v1503_v50 }
  0x76   : > { %1641 = vmatmul.mubr.msk.bf16.gmra.mxu0 %vm387_vm4, %v1509_v63 }
  0x77   : > { %1656 = vmatprep.mubr.msk.bf16.mxu0 %vm387_vm4, %v2090_v10  ;;  %v1204_v10 = vsel %vm2045_vm7, %v1519_v11, %v1203_v53 }
  0x78   : > { %v1520_v15 = vcombine.low %v923_v13, %v1204_v10 }
  0x7c   : > { %1631 = vmatmul.mubr.msk.bf16.gmra.mxu1 %vm387_vm4, %v1504_v0 }
  0x7d   : > { %1646 = vmatprep.mubr.msk.bf16.mxu1 %vm387_vm4, %v2019_v27 }
  0x7e   : > { %1657 = vmatmul.mubr.msk.bf16.vlgmr.msra.gmra.mxu0 %vm387_vm4, %v2117_v9 }
  0x7f   : > { %1660 = vmatprep.mubr.msk.bf16.mxu0 %vm387_vm4, %v2147_v38 }
  0x84   : > { %1647 = vmatmul.mubr.msk.bf16.vlgmr.msra.gmra.mxu1 %vm387_vm4, %v2038_v2 }
  0x85   : > { %1650 = vmatprep.mubr.msk.bf16.mxu1 %vm387_vm4, %v2076_v48 }
  0x86   : > { %1661 = vmatmul.mubr.msk.bf16.gmra.mxu0 %vm387_vm4, %v1520_v15 }
  0x8c   : > { %1651 = vmatmul.mubr.msk.bf16.gmra.mxu1 %vm387_vm4, %v1514_v16 }
 0x104   : > { %v1578_v27 = vpop.f32.mrf.mxu0 }
 0x106   : > { %v438_v17 = vpop.f32.mrf.mxu0 }
 0x108   : > { %v1579_v18 = vpop.f32.mrf.mxu0 }
 0x10a   : > { %v441_v19 = vpop.f32.mrf.mxu0 }
 0x10c   : > { %v1582_v9 = vpop.f32.mrf.mxu1 }
 0x10e   : > { %v454_v20 = vpop.f32.mrf.mxu1  ;;  %v1598_v8 = vpop.f32.mrf.mxu0 }
 0x110   : > { %v1583_v22 = vpop.f32.mrf.mxu1  ;;  %v675_v23 = vpop.f32.mrf.mxu0 }
 0x112   : > { %v2230_v24 = vpop.f32.mrf.mxu1  ;;  %v1599_v2 = vpop.f32.mrf.mxu0 }
 0x114   : > { %v1588_v25 = vpop.f32.mrf.mxu1  ;;  %v678_v30 = vpop.f32.mrf.mxu0 }
 0x115   : > { %v547_v7 = vadd.f32 %v1588_v25, %v1578_v27 }
 0x116   : > { %v538_v48 = vpop.f32.mrf.mxu1  ;;  %v1602_v31 = vpop.f32.mrf.mxu0 }
 0x117   : > { %v539_v42 = vadd.f32 %v538_v48, %v438_v17  ;;  %v708_v26 = vadd.f32 %v1598_v8, %v547_v7 }
 0x118   : > { %v1589_v34 = vpop.f32.mrf.mxu1  ;;  %v691_v35 = vpop.f32.mrf.mxu0 }
 0x119   : > { %v550_v32 = vadd.f32 %v1589_v34, %v1579_v18  ;;  %v706_v62 = vadd.f32 %v675_v23, %v539_v42 }
 0x11a   : > { %v541_v36 = vpop.f32.mrf.mxu1  ;;  %v1603_v38 = vpop.f32.mrf.mxu0 }
 0x11b   : > { %v542_v59 = vadd.f32 %v541_v36, %v441_v19  ;;  %v709_v0 = vadd.f32 %v1599_v2, %v550_v32 }
 0x11c   : > { %v1592_v39 = vpop.f32.mrf.mxu1  ;;  %v2232_v40 = vpop.f32.mrf.mxu0 }
 0x11d   : > { %v563_v53 = vadd.f32 %v1592_v39, %v1582_v9  ;;  %v707_v27 = vadd.f32 %v678_v30, %v542_v59 }
 0x11e   : > { %v554_v43 = vpop.f32.mrf.mxu1  ;;  %v1618_v45 = vpop.f32.mrf.mxu0 }
 0x11f   : > { %v555_v10 = vadd.f32 %v554_v43, %v454_v20  ;;  %v712_v36 = vadd.f32 %v1602_v31, %v563_v53 }
 0x120   : > { %v1593_v46 = vpop.f32.mrf.mxu1  ;;  %v880_v5 = vpop.f32.mrf.mxu0 }
 0x121   : > { %v566_v18 = vadd.f32 %v1593_v46, %v1583_v22 }
 0x122   : > { %v557_v47 = vpop.f32.mrf.mxu1  ;;  %v1619_v49 = vpop.f32.mrf.mxu0 }
 0x123   : > { %v558_v7 = vadd.f32 %v557_v47, %v2230_v24  ;;  %v713_v39 = vadd.f32 %v1603_v38, %v566_v18 }
 0x124   : > { %v1608_v44 = vpop.f32.mrf.mxu1  ;;  %v883_v58 = vpop.f32.mrf.mxu0 }
 0x125   : > { %v804_v60 = vadd.f32 %v1608_v44, %v708_v26  ;;  %v710_v44 = vadd.f32 %v691_v35, %v555_v10 }
 0x126   : > { %v771_v54 = vpop.f32.mrf.mxu1  ;;  %v2234_v55 = vpop.f32.mrf.mxu0 }
 0x127   : > { %v802_v11 = vadd.f32 %v771_v54, %v706_v62  ;;  %v913_v17 = vadd.f32 %v1618_v45, %v804_v60 }
 0x128   : > { %v1609_v29 = vpop.f32.mrf.mxu1  ;;  %v2236_v33 = vpop.f32.mrf.mxu0 }
 0x129   : > { %v805_v8 = vadd.f32 %v1609_v29, %v709_v0  ;;  %v911_v34 = vadd.f32 %v880_v5, %v802_v11  ;;  %v711_v5 = vadd.f32 %v2232_v40, %v558_v7 }
 0x12a   : > { %v774_v52 = vpop.f32.mrf.mxu1  ;;  %v2238_v56 = vpop.f32.mrf.mxu0 }
 0x12b   : > { %v803_v23 = vadd.f32 %v774_v52, %v707_v27  ;;  %v914_v9 = vadd.f32 %v1619_v49, %v805_v8 }
 0x12c   : > { %v1612_v57 = vpop.f32.mrf.mxu1  ;;  %v2240_v1 = vpop.f32.mrf.mxu0 }
 0x12d   : > { %v808_v43 = vadd.f32 %v1612_v57, %v712_v36  ;;  %v912_v29 = vadd.f32 %v883_v58, %v803_v23  ;;  %v2256_v57 = vld [vmem:[#allocation4] ss:$0 sm:$0xff] }
 0x12e   : > { %v787_v41 = vpop.f32.mrf.mxu1  ;;  %v1638_v61 = vpop.f32.mrf.mxu0 }
 0x12f   : > { %v806_v42 = vadd.f32 %v787_v41, %v710_v44  ;;  %v917_v47 = vadd.f32 %v2234_v55, %v808_v43 }
 0x130   : > { %v1613_v3 = vpop.f32.mrf.mxu1  ;;  %v1064_v6 = vpop.f32.mrf.mxu0 }
 0x131   : > { %v809_v52 = vadd.f32 %v1613_v3, %v713_v39  ;;  %v915_v38 = vadd.f32 %v2236_v33, %v806_v42 }
 0x132   : > { %v790_v12 = vpop.f32.mrf.mxu1  ;;  %v1639_v4 = vpop.f32.mrf.mxu0 }
 0x133   : > { %v807_v49 = vadd.f32 %v790_v12, %v711_v5  ;;  %v918_v40 = vadd.f32 %v2238_v56, %v809_v52 }
 0x134   : > { %v1628_v14 = vpop.f32.mrf.mxu1  ;;  %v2242_v28 = vpop.f32.mrf.mxu0 }
 0x135   : > { %v1013_v19 = vadd.f32 %v1628_v14, %v913_v17  ;;  %v916_v12 = vadd.f32 %v2240_v1, %v807_v49 }
 0x136   : > { %v980_v51 = vpop.f32.mrf.mxu1  ;;  %v2244_v21 = vpop.f32.mrf.mxu0 }
 0x137   : > { %v1011_v20 = vadd.f32 %v980_v51, %v911_v34  ;;  %v1097_v22 = vadd.f32 %v1638_v61, %v1013_v19 }
 0x138   : > { %v1629_v37 = vpop.f32.mrf.mxu1  ;;  %v2246_v50 = vpop.f32.mrf.mxu0 }
 0x139   : > { %v1014_v46 = vadd.f32 %v1629_v37, %v914_v9  ;;  %v1095_v35 = vadd.f32 %v1064_v6, %v1011_v20 }
 0x13a   : > { %v983_v63 = vpop.f32.mrf.mxu1  ;;  %v2248_v13 = vpop.f32.mrf.mxu0 }
 0x13b   : > { %v1012_v26 = vadd.f32 %v983_v63, %v912_v29  ;;  %v1098_v58 = vadd.f32 %v1639_v4, %v1014_v46 }
 0x13c   : > { %v1632_v15 = vpop.f32.mrf.mxu1  ;;  %v2250_v16 = vpop.f32.mrf.mxu0 }
 0x13d   : > { %v1017_v3 = vadd.f32 %v1632_v15, %v917_v47  ;;  %v1096_v62 = vadd.f32 %v2242_v28, %v1012_v26 }
 0x13e   : > { %v996_v25 = vpop.f32.mrf.mxu1  ;;  %v1658_v48 = vpop.f32.mrf.mxu0 }
 0x13f   : > { %v1015_v32 = vadd.f32 %v996_v25, %v915_v38  ;;  %v1101_v53 = vadd.f32 %v2244_v21, %v1017_v3 }
 0x140   : > { %v1633_v2 = vpop.f32.mrf.mxu1  ;;  %v1249_v54 = vpop.f32.mrf.mxu0 }
 0x141   : > { %v1018_v60 = vadd.f32 %v1633_v2, %v918_v40  ;;  %v1099_v10 = vadd.f32 %v2246_v50, %v1015_v32 }
 0x142   : > { %v999_v30 = vpop.f32.mrf.mxu1  ;;  %v1659_v45 = vpop.f32.mrf.mxu0 }
 0x143   : > { %v1016_v15 = vadd.f32 %v999_v30, %v916_v12  ;;  %v1102_v21 = vadd.f32 %v2248_v13, %v1018_v60 }
 0x144   : > { %v1648_v14 = vpop.f32.mrf.mxu1  ;;  %v1252_v31 = vpop.f32.mrf.mxu0 }
 0x145   : > { %v1194_v24 = vadd.f32 %v1648_v14, %v1097_v22  ;;  %v1100_v36 = vadd.f32 %v2250_v16, %v1016_v15 }
 0x146   : > { %v1161_v41 = vpop.f32.mrf.mxu1  ;;  %v1662_v6 = vpop.f32.mrf.mxu0 }
 0x147   : > { %v1282_v61 = vadd.f32 %v1658_v48, %v1194_v24  ;;  %v1192_v51 = vadd.f32 %v1161_v41, %v1095_v35 }
 0x148   : > { %v1649_v37 = vpop.f32.mrf.mxu1  ;;  %v1265_v28 = vpop.f32.mrf.mxu0 }
 0x149   : > { %v1297_v55 = vadd.f32 %v2256_v57, %v1282_v61  ;;  %v1280_v59 = vadd.f32 %v1249_v54, %v1192_v51  ;;  %v1195_v33 = vadd.f32 %v1649_v37, %v1098_v58 }
 0x14a   : > { %v1164_v63 = vpop.f32.mrf.mxu1  ;;  %v1663_v2 = vpop.f32.mrf.mxu0 }
 0x14b   : > { %v1305_v4 = vmax.f32 %v1297_v55, 0.0  ;;  %v1295_v0 = vadd.f32 %v2256_v57, %v1280_v59  ;;  %v1283_v11 = vadd.f32 %v1659_v45, %v1195_v33  ;;  %v1193_v56 = vadd.f32 %v1164_v63, %v1096_v62 }
 0x14c   : > { %v1652_v1 = vpop.f32.mrf.mxu1  ;;  %v1268_v22 = vpop.f32.mrf.mxu0 }
 0x14d   : > { %v1313_v27 = vpack.c.bf16 %v1305_v4, %v1305_v4  ;;  %v1303_v17 = vmax.f32 %v1295_v0, 0.0  ;;  %v1298_v8 = vadd.f32 %v2256_v57, %v1283_v11  ;;  %v1281_v18 = vadd.f32 %v1252_v31, %v1193_v56 }
 0x14e   : > { %v1198_v25 = vadd.f32 %v1652_v1, %v1101_v53  ;;  %v1177_v50 = vpop.f32.mrf.mxu1 }
 0x14f   : > { %1322 = vst.msk [vmem:[%s2269_s15 + $0x8] sm:$0xf] %vm1319_vm8, %v1313_v27  ;;  %v1311_v48 = vpack.c.bf16 %v1303_v17, %v1303_v17  ;;  %v1306_v34 = vmax.f32 %v1298_v8, 0.0  ;;  %v1296_v23 = vadd.f32 %v2256_v57, %v1281_v18  ;;  %v1196_v19 = vadd.f32 %v1177_v50, %v1099_v10 }
 0x150   : > { %v1286_v44 = vadd.f32 %v1662_v6, %v1198_v25  ;;  %v1653_v7 = vpop.f32.mrf.mxu1 }
 0x151   : > { %1320 = vst.msk [vmem:[%s2269_s15] sm:$0xf] %vm1319_vm8, %v1311_v48  ;;  %v1314_v54 = vpack.c.bf16 %v1306_v34, %v1306_v34  ;;  %v1304_v13 = vmax.f32 %v1296_v23, 0.0  ;;  %v1284_v9 = vadd.f32 %v1265_v28, %v1196_v19  ;;  %v1199_v20 = vadd.f32 %v1653_v7, %v1102_v21 }
 0x152   : > { %v1301_v39 = vadd.f32 %v2256_v57, %v1286_v44  ;;  %v1180_v43 = vpop.f32.mrf.mxu1 }
 0x153   : > { %1323 = vst.msk [vmem:[%s2269_s15 + $0xc] sm:$0xf] %vm1319_vm8, %v1314_v54  ;;  %v1312_v42 = vpack.c.bf16 %v1304_v13, %v1304_v13  ;;  %v1299_v16 = vadd.f32 %v2256_v57, %v1284_v9  ;;  %v1287_v30 = vadd.f32 %v1663_v2, %v1199_v20  ;;  %v1197_v45 = vadd.f32 %v1180_v43, %v1100_v36 }
 0x154   : > { %v1309_v29 = vmax.f32 %v1301_v39, 0.0 }
 0x155   : > { %1321 = vst.msk [vmem:[%s2269_s15 + $0x4] sm:$0xf] %vm1319_vm8, %v1312_v42  ;;  %v1307_v46 = vmax.f32 %v1299_v16, 0.0  ;;  %v1302_v5 = vadd.f32 %v2256_v57, %v1287_v30  ;;  %v1285_v52 = vadd.f32 %v1268_v22, %v1197_v45 }
 0x156   : > { %v1317_v14 = vpack.c.bf16 %v1309_v29, %v1309_v29 }
 0x157   : > { %v1315_v31 = vpack.c.bf16 %v1307_v46, %v1307_v46  ;;  %v1310_v35 = vmax.f32 %v1302_v5, 0.0  ;;  %v1300_v26 = vadd.f32 %v2256_v57, %v1285_v52 }
 0x158   : > { %1326 = vst.msk [vmem:[%s2269_s15 + $0x18] sm:$0xf] %vm1319_vm8, %v1317_v14 }
 0x159   : > { %1324 = vst.msk [vmem:[%s2269_s15 + $0x10] sm:$0xf] %vm1319_vm8, %v1315_v31  ;;  %v1318_v24 = vpack.c.bf16 %v1310_v35, %v1310_v35  ;;  %v1308_v47 = vmax.f32 %v1300_v26, 0.0 }
 0x15b   : > { %1327 = vst.msk [vmem:[%s2269_s15 + $0x1c] sm:$0xf] %vm1319_vm8, %v1318_v24  ;;  %v1316_v38 = vpack.c.bf16 %v1308_v47, %v1308_v47 }
 0x15d   : > { %1325 = vst.msk [vmem:[%s2269_s15 + $0x14] sm:$0xf] %vm1319_vm8, %v1316_v38 }
 0x15e PF: > { %s15_s14 = sadd.s32 1, %s1815_s14   ;;  %s2315_s12 = smov %s1811_s13 }
 0x15f   : > { %p12_p3 = scmp.ge.s32.totalorder %s15_s14, 4   ;;  %s2316_s13 = smov %s2318_s16 }
 0x161   :  { %14 = sbr.rel (!%p12_p3) target bundleno = 3 (0x3), region = 79 }
 0x166   :  { %1358 = vsyncpa [#allocation3], 1 }
 0x167   :  { %1360 = vsyncpa [#allocation3 + $0x1], 1 }
 0x168   :  { %1361 = vsyncpa [#allocation5], 1 }

// kernel: vgg_forward.11
= control target key start
LH: loop header
LB: loop body
LE: loop exit
PB: predicated region body
PF: predicated region fallthrough
CT: control target
= control target key end

     0   :  { %8 = vsyncpa [#allocation4], 0  ;;  %s1579_s0 = inlined_call_operand.vmem [shape: bf16[8,256], index: 0, kind: input, shape index: {}]   ;;  %s1580_s1 = inlined_call_operand.hbm [shape: bf16[256,4096], index: 1, kind: input, shape index: {}]   ;;  %s1581_s2 = inlined_call_operand.hbm [shape: f32[1,4096], index: 2, kind: input, shape index: {}]   ;;  %s1582_s3 = inlined_call_operand.vmem [shape: bf16[8,4096], index: 3, kind: output, shape index: {}]  }
   0x1   :  { %10 = vsyncpa [#allocation4 + $0x1], 0 }
   0x2   :  { %11 = vsyncpa [#allocation6], 0 }
   0x3   :  { %13 = vsyncpa [#allocation6 + $0x1], 0  ;;  %s1382_s12 = smov 0   ;;  %s1384_s13 = smov 0  }
   0x4   :  { %s1386_s14 = smov 0   ;;  %s1388_s15 = smov 0  }
   0x5   :  { %s1390_s16 = smov 0   ;;  %s1392_s17 = smov 0  }
   0x6 LB: > { %s994_s18 = sadd.s32 4294967295, %s1355_s17   ;;  %s34_s19 = sadd.s32 1, %s1351_s16  ;;  %s1355_s17 = sphi %s1392_s17, %s19_s17   ;;  %s1351_s16 = sphi %s1390_s16, %s1591_s16   ;;  %s1347_s15 = sphi %s1388_s15, %s1590_s15   ;;  %s1343_s14 = sphi %s1386_s14, %s1589_s14   ;;  %s1339_s13 = sphi %s1384_s13, %s1588_s13   ;;  %s1335_s12 = sphi %s1382_s12, %s1587_s12  }
   0x7   : > { %p36_p0 = scmp.ge.s32.totalorder %s34_s19, 8  ;;  %s75_s20 = sadd.s32 1, %s1343_s14 }
   0x8   : > { %p82_p1 = scmp.ne.s32.totalorder %s1343_s14, %s1339_s13  ;;  %p83_p2 = scmp.eq.s32.totalorder %s1355_s17, 0 }
   0x9   : > { %s1593_s19 = smov (%p36_p0, %s34_s19), 0  ;;  %p88_p4 = scmp.ne.s32.totalorder %s1339_s13, %s1335_s12 }
   0xa   : > { %p1418_p3 = por %p83_p2, %p82_p1  ;;  %s71_s22 = ssub.s32 %s1351_s16, %s1593_s19 }
   0xb   : > { %p89_p5 = scmp.eq.s32.totalorder %s994_s18, 0  ;;  %p73_p6 = scmp.eq.s32.totalorder %s71_s22, 0 }
   0xc   : > { %p1095_p8 = scmp.lt.s32.totalorder %s1355_s17, 8  ;;  %s1434_s25 = sand.u32 1, %s1343_s14  }
   0xd   : > { %p1425_p7 = por %p89_p5, %p88_p4  ;;  %s1080_s26 = sshll.u32 %s1351_s16, 8 }
   0xe   : > { %s1431_s24 = scalar_select %p73_p6, %s1343_s14, %s75_s20  }
   0xf   : > { %s999_s27 = sshll.u32 %s1434_s25, 9  ;;  %s192_s30 = scalar_lea.hbm %s1580_s1, %s1080_s26 }
  0x10   : > { %s183_s4 = scalar_lea.vmem [#allocation3], %s999_s27  ;;  %p1443_p9 = pnand %p1095_p8, %p1418_p3 }
  0x11   : > { %s193_s5 = sshll.u32 %s183_s4, 4  ;;  %p1005_p10 = scmp.ge.s32.totalorder %s1355_s17, 1  ;;  %s194_s5 = int_to_ptr.vmem [resolvable:$true] %s193_s5 }
  0x12   : > { %s180_s7 = scalar_lea.sflag [#allocation4], %s1434_s25  ;;  %p1247_p11 = pneg %p1443_p9 }
  0x13   : > { %s1258_s8 = scalar_lea.vmem %s194_s5, 8192  ;;  %s1357_s9 = smov [#allocation3]  }
  0x14   : > { %p1259_p12 = scmp.ne.s32.totalorder %s194_s5, %s1258_s8  ;;  %s1263_s10 = sshll.u32 %s1357_s9, 4  ;;  %s1264_s10 = int_to_ptr.vmem [resolvable:$false] %s1263_s10 }
  0x15   : > { %s1265_s11 = scalar_lea.vmem %s1264_s10, 16384  ;;  %p1266_p1 = scmp.lt.s32.totalorder %s194_s5, %s1264_s10 }
  0x16   : > { %p1261_p13 = pnand %p1259_p12, %p1247_p11  ;;  %p1267_p2 = scmp.lt.s32.totalorder %s1265_s11, %s1258_s8 }
  0x18   : > { %p1262_p0 = pneg %p1261_p13  ;;  %p1268_p3 = por %p1267_p2, %p1266_p1 }
  0x1a   : > { %p1269_p4 = pnand %p1268_p3, %p1262_p0 }
  0x1c   : > { %1272 = shalt.err (!%p1269_p4)
}
  0x1d   : > { %s1358_s12 = smov 2048   ;;  %s1359_s18 = smov 256  }
  0x1e   : > { %s1360_s20 = smov 16   ;;  %p220_p5 = scmp.lt.s32.totalorder %s1355_s17, 9 }
  0x1f   : > { %1091 = dma.hbm_to_vmem [thread:$0]  (!%p1443_p9), %s192_s30, 8192, %s194_s5, %s180_s7, %s1358_s12, %s1359_s18, %s1360_s20  }
  0x20   : > { %s1002_s21 = sshll.u32 %s1434_s25, 2  ;;  %s1081_s22 = sshll.u32 %s1351_s16, 6 }
  0x21   : > { %p1461_p6 = pnand %p1005_p10, %p220_p5  ;;  %s213_s29 = scalar_lea.hbm %s1581_s2, %s1081_s22 }
  0x22   : > { %s207_s4 = scalar_lea.vmem [#allocation5], %s1002_s21  ;;  %s204_s9 = scalar_lea.sflag [#allocation6], %s1434_s25 }
  0x23   : > { %s215_s8 = sshll.u32 %s207_s4, 4  ;;  %s1361_s30 = smov [#allocation5]   ;;  %s216_s8 = int_to_ptr.vmem [resolvable:$true] %s215_s8 }
  0x24   : > { %s1286_s10 = scalar_lea.vmem %s216_s8, 64  ;;  %s1291_s5 = sshll.u32 %s1361_s30, 4  ;;  %s1292_s5 = int_to_ptr.vmem [resolvable:$false] %s1291_s5 }
  0x25   : > { %p1287_p8 = scmp.ne.s32.totalorder %s216_s8, %s1286_s10  ;;  %s1293_s7 = scalar_lea.vmem %s1292_s5, 128 }
  0x26   : > { %p1294_p10 = scmp.lt.s32.totalorder %s216_s8, %s1292_s5  ;;  %p1295_p0 = scmp.lt.s32.totalorder %s1293_s7, %s1286_s10 }
  0x27   : > { %p1289_p12 = pnand %p1287_p8, %p1247_p11 }
  0x28   : > { %p1296_p1 = por %p1295_p0, %p1294_p10 }
  0x29   : > { %p1290_p13 = pneg %p1289_p12 }
  0x2b   : > { %p1297_p2 = pnand %p1296_p1, %p1290_p13 }
  0x2d   : > { %1300 = shalt.err (!%p1297_p2)
}
  0x2e   : > { %1094 = dma.hbm_to_vmem [thread:$0]  (!%p1443_p9), %s213_s29, 64, %s216_s8, %s204_s9  }
  0x2f   : > { %224 = sbr.rel (%p1461_p6) target bundleno = 323 (0x143), region = 32  ;;  %s226_s25 = sand.u32 (!%p1461_p6), 1, %s1339_s13  }
  0x30   : > { %s1006_s11 = sshll.u32 (!%p1461_p6), %s226_s25, 9  ;;  %s227_s12 = scalar_lea.sflag (!%p1461_p6), [#allocation4], %s226_s25 }
  0x31   : > { %s1477_s18 = scalar_lea.vmem (!%p1461_p6), [#allocation3], %s1006_s11 }
  0x34   : > { %1326 = dma.done.wait (%p1425_p7), %s227_s12, 8192  }
  0x35   : > { %1328 = vsyncadd (%p1425_p7), %s227_s12, 4294959104  ;;  %s1007_s20 = sshll.u32 %s226_s25, 2  ;;  %s236_s21 = scalar_lea.sflag [#allocation6], %s226_s25 }
  0x36   : > { %s1483_s6 = scalar_lea.vmem [#allocation5], %s1007_s20 }
  0x37   : > { %1330 = dma.done.wait (%p1425_p7), %s236_s21, 64  }
  0x38   : > { %1332 = vsyncadd (%p1425_p7), %s236_s21, 4294967232  ;;  %v1147_v0 = vld [vmem:[%s1477_s18 + $0xe4] ss:$16 sps:$4 sm:$0xff]   ;;  %v1149_v1 = vld [vmem:[%s1477_s18 + $0xec] ss:$16 sps:$4 sm:$0xff]   ;;  %s1008_s26 = sshll.u32 %s1347_s15, 2 }
  0x39   : > { %707 = vmatprep.subr.bf16.mxu0 %v1147_v0  ;;  %v1151_v2 = vld [vmem:[%s1477_s18 + $0xe0] ss:$16 sps:$4 sm:$0xff]   ;;  %v1152_v3 = vld [vmem:[%s1477_s18 + $0xe8] ss:$16 sps:$4 sm:$0xff]   ;;  %748 = vmatprep.subr.bf16.mxu1 %v1149_v1  ;;  %v1153_v4 = vld [vmem:[%s1477_s18 + $0xc4] ss:$16 sps:$4 sm:$0xff]  }
  0x3a   : > { %708 = vmatpush1.bf16.msra.mxu0 %v1151_v2  ;;  %749 = vmatpush1.bf16.msra.mxu1 %v1152_v3  ;;  %v1155_v5 = vld [vmem:[%s1477_s18 + $0xcc] ss:$16 sps:$4 sm:$0xff]   ;;  %v1157_v6 = vld [vmem:[%s1477_s18 + $0xc0] ss:$16 sps:$4 sm:$0xff]   ;;  %v1158_v7 = vld [vmem:[%s1477_s18 + $0xc8] ss:$16 sps:$4 sm:$0xff]   ;;  %v806_v3 = vlaneseq }
  0x3b   : > { %709 = vmatprep.subr.bf16.mxu0 %v1153_v4  ;;  %750 = vmatprep.subr.bf16.mxu1 %v1155_v5  ;;  %v1159_v8 = vld [vmem:[%s1477_s18 + $0xa4] ss:$16 sps:$4 sm:$0xff]   ;;  %v1161_v9 = vld [vmem:[%s1477_s18 + $0xac] ss:$16 sps:$4 sm:$0xff]   ;;  %v1163_v10 = vld [vmem:[%s1477_s18 + $0xa0] ss:$16 sps:$4 sm:$0xff]  }
  0x3c   : > { %v1164_v11 = vld [vmem:[%s1477_s18 + $0xa8] ss:$16 sps:$4 sm:$0xff]   ;;  %v1165_v12 = vld [vmem:[%s1477_s18 + $0x84] ss:$16 sps:$4 sm:$0xff]   ;;  %v1167_v13 = vld [vmem:[%s1477_s18 + $0x8c] ss:$16 sps:$4 sm:$0xff]  }
  0x3d   : > { %v1169_v14 = vld [vmem:[%s1477_s18 + $0x80] ss:$16 sps:$4 sm:$0xff]   ;;  %v1170_v15 = vld [vmem:[%s1477_s18 + $0x88] ss:$16 sps:$4 sm:$0xff]   ;;  %v1171_v16 = vld [vmem:[%s1477_s18 + $0x64] ss:$16 sps:$4 sm:$0xff]  }
  0x3e   : > { %710 = vmatpush1.bf16.msra.mxu0 %v1157_v6  ;;  %751 = vmatpush1.bf16.msra.mxu1 %v1158_v7  ;;  %v1173_v17 = vld [vmem:[%s1477_s18 + $0x6c] ss:$16 sps:$4 sm:$0xff]   ;;  %v1175_v18 = vld [vmem:[%s1477_s18 + $0x60] ss:$16 sps:$4 sm:$0xff]   ;;  %v1176_v19 = vld [vmem:[%s1477_s18 + $0x68] ss:$16 sps:$4 sm:$0xff]  }
  0x3f   : > { %711 = vmatprep.subr.bf16.mxu0 %v1159_v8  ;;  %752 = vmatprep.subr.bf16.mxu1 %v1161_v9  ;;  %v1177_v20 = vld [vmem:[%s1477_s18 + $0x44] ss:$16 sps:$4 sm:$0xff]   ;;  %v1179_v21 = vld [vmem:[%s1477_s18 + $0x4c] ss:$16 sps:$4 sm:$0xff]   ;;  %v1181_v22 = vld [vmem:[%s1477_s18 + $0x40] ss:$16 sps:$4 sm:$0xff]  }
  0x40   : > { %v1182_v23 = vld [vmem:[%s1477_s18 + $0x48] ss:$16 sps:$4 sm:$0xff]   ;;  %v1183_v24 = vld [vmem:[%s1477_s18 + $0x24] ss:$16 sps:$4 sm:$0xff]   ;;  %v1185_v25 = vld [vmem:[%s1477_s18 + $0x2c] ss:$16 sps:$4 sm:$0xff]  }
  0x41   : > { %v1187_v26 = vld [vmem:[%s1477_s18 + $0x20] ss:$16 sps:$4 sm:$0xff]   ;;  %v1188_v27 = vld [vmem:[%s1477_s18 + $0x28] ss:$16 sps:$4 sm:$0xff]   ;;  %v1189_v28 = vld [vmem:[%s1477_s18 + $0x4] ss:$16 sps:$4 sm:$0xff]  }
  0x42   : > { %712 = vmatpush1.bf16.msra.mxu0 %v1163_v10  ;;  %753 = vmatpush1.bf16.msra.mxu1 %v1164_v11  ;;  %v1191_v29 = vld [vmem:[%s1477_s18 + $0xc] ss:$16 sps:$4 sm:$0xff]   ;;  %v1193_v30 = vld [vmem:[%s1477_s18] ss:$16 sps:$4 sm:$0xff]   ;;  %v1194_v31 = vld [vmem:[%s1477_s18 + $0x8] ss:$16 sps:$4 sm:$0xff]  }
  0x43   : > { %713 = vmatprep.subr.bf16.mxu0 %v1165_v12  ;;  %754 = vmatprep.subr.bf16.mxu1 %v1167_v13  ;;  %v1195_v32 = vld [vmem:[%s1477_s18 + $0x1e4] ss:$16 sps:$4 sm:$0xff]   ;;  %v1197_v33 = vld [vmem:[%s1477_s18 + $0x1ec] ss:$16 sps:$4 sm:$0xff]   ;;  %v1199_v34 = vld [vmem:[%s1477_s18 + $0x1e0] ss:$16 sps:$4 sm:$0xff]  }
  0x44   : > { %v1200_v35 = vld [vmem:[%s1477_s18 + $0x1e8] ss:$16 sps:$4 sm:$0xff]   ;;  %v1201_v36 = vld [vmem:[%s1477_s18 + $0x1c4] ss:$16 sps:$4 sm:$0xff]   ;;  %v1203_v37 = vld [vmem:[%s1477_s18 + $0x1cc] ss:$16 sps:$4 sm:$0xff]  }
  0x45   : > { %v1205_v38 = vld [vmem:[%s1477_s18 + $0x1c0] ss:$16 sps:$4 sm:$0xff]   ;;  %v1206_v39 = vld [vmem:[%s1477_s18 + $0x1c8] ss:$16 sps:$4 sm:$0xff]   ;;  %v1207_v40 = vld [vmem:[%s1477_s18 + $0x1a4] ss:$16 sps:$4 sm:$0xff]  }
  0x46   : > { %714 = vmatpush1.bf16.msra.mxu0 %v1169_v14  ;;  %755 = vmatpush1.bf16.msra.mxu1 %v1170_v15  ;;  %v1209_v41 = vld [vmem:[%s1477_s18 + $0x1ac] ss:$16 sps:$4 sm:$0xff]   ;;  %v1211_v42 = vld [vmem:[%s1477_s18 + $0x1a0] ss:$16 sps:$4 sm:$0xff]   ;;  %v1212_v43 = vld [vmem:[%s1477_s18 + $0x1a8] ss:$16 sps:$4 sm:$0xff]  }
  0x47   : > { %715 = vmatprep.subr.bf16.mxu0 %v1171_v16  ;;  %756 = vmatprep.subr.bf16.mxu1 %v1173_v17  ;;  %v1213_v44 = vld [vmem:[%s1477_s18 + $0x184] ss:$16 sps:$4 sm:$0xff]   ;;  %v1215_v45 = vld [vmem:[%s1477_s18 + $0x18c] ss:$16 sps:$4 sm:$0xff]   ;;  %v1217_v48 = vld [vmem:[%s1477_s18 + $0x180] ss:$16 sps:$4 sm:$0xff]  }
  0x48   : > { %v315_v46 = vld [vmem:[%s1579_s0] sm:$0xff]  ;;  %v1218_v49 = vld [vmem:[%s1477_s18 + $0x188] ss:$16 sps:$4 sm:$0xff]   ;;  %v1221_v51 = vld [vmem:[%s1477_s18 + $0x16c] ss:$16 sps:$4 sm:$0xff]   ;;  %v807_v4 = vshrl.u32 %v806_v3, 7 }
  0x49   : > { %v1011_v47 = vcombine.high %v315_v46, %v315_v46  ;;  %v1219_v50 = vld [vmem:[%s1477_s18 + $0x164] ss:$16 sps:$4 sm:$0xff]   ;;  %v1223_v52 = vld [vmem:[%s1477_s18 + $0x160] ss:$16 sps:$4 sm:$0xff]   ;;  %v1224_v53 = vld [vmem:[%s1477_s18 + $0x168] ss:$16 sps:$4 sm:$0xff]   ;;  %v1010_v2 = vcombine.low %v315_v46, %v315_v46 }
  0x4a   : > { %716 = vmatpush1.bf16.msra.mxu0 %v1175_v18  ;;  %757 = vmatpush1.bf16.msra.mxu1 %v1176_v19  ;;  %v1225_v54 = vld [vmem:[%s1477_s18 + $0x144] ss:$16 sps:$4 sm:$0xff]   ;;  %v1227_v55 = vld [vmem:[%s1477_s18 + $0x14c] ss:$16 sps:$4 sm:$0xff]   ;;  %v1229_v56 = vld [vmem:[%s1477_s18 + $0x140] ss:$16 sps:$4 sm:$0xff]  }
  0x4b   : > { %717 = vmatprep.subr.bf16.mxu0 %v1177_v20  ;;  %758 = vmatprep.subr.bf16.mxu1 %v1179_v21  ;;  %v1230_v57 = vld [vmem:[%s1477_s18 + $0x148] ss:$16 sps:$4 sm:$0xff]   ;;  %v1231_v58 = vld [vmem:[%s1477_s18 + $0x124] ss:$16 sps:$4 sm:$0xff]   ;;  %v1233_v59 = vld [vmem:[%s1477_s18 + $0x12c] ss:$16 sps:$4 sm:$0xff]  }
  0x4c   : > { %739 = vmatprep.mubr.bf16.mxu0 %v1011_v47  ;;  %780 = vmatprep.mubr.bf16.mxu1 %v1011_v47  ;;  %v1235_v60 = vld [vmem:[%s1477_s18 + $0x120] ss:$16 sps:$4 sm:$0xff]   ;;  %v1236_v61 = vld [vmem:[%s1477_s18 + $0x128] ss:$16 sps:$4 sm:$0xff]   ;;  %v1237_v62 = vld [vmem:[%s1477_s18 + $0x104] ss:$16 sps:$4 sm:$0xff]  }
  0x4d   : > { %v1239_v63 = vld [vmem:[%s1477_s18 + $0x10c] ss:$16 sps:$4 sm:$0xff]   ;;  %v1241_v0 = vld [vmem:[%s1477_s18 + $0x100] ss:$16 sps:$4 sm:$0xff]   ;;  %v1242_v1 = vld [vmem:[%s1477_s18 + $0x108] ss:$16 sps:$4 sm:$0xff]  }
  0x4e   : > { %718 = vmatpush1.bf16.msra.mxu0 %v1181_v22  ;;  %759 = vmatpush1.bf16.msra.mxu1 %v1182_v23  ;;  %v808_v5 = vsub.s32 0, %v807_v4  ;;  %v816_v6 = vsub.s32 2, %v807_v4  ;;  %v804_v7 = vld [vmem:[%s1483_s6] sm:$0xf]  ;;  %p296_p7 = scmp.lt.s32.totalorder %s1008_s26, 31  ;;  %v812_v8 = vsub.s32 1, %v807_v4 }
  0x4f   : > { %719 = vmatprep.subr.bf16.mxu0 %v1183_v24  ;;  %760 = vmatprep.subr.bf16.mxu1 %v1185_v25  ;;  %v820_v9 = vsub.s32 3, %v807_v4 }
  0x50   : > { %v809_v10 = vrot.slane %v804_v7, %v808_v5  ;;  %v817_v11 = vrot.slane %v804_v7, %v816_v6  ;;  %s1595_s26 = smov (!%p296_p7, %s1008_s26), 31  ;;  %v813_v12 = vrot.slane %v804_v7, %v812_v8 }
  0x51   : > { %v821_v13 = vrot.slane %v804_v7, %v820_v9  ;;  %s1009_s27 = sshll.u32 %s1595_s26, 2 }
  0x52   : > { %720 = vmatpush1.bf16.msra.mxu0 %v1187_v26  ;;  %761 = vmatpush1.bf16.msra.mxu1 %v1188_v27  ;;  %s301_s29 = scalar_lea.vmem %s1582_s3, %s1009_s27 }
  0x53   : > { %721 = vmatprep.subr.bf16.mxu0 %v1189_v28  ;;  %762 = vmatprep.subr.bf16.mxu1 %v1191_v29 }
  0x56   : > { %722 = vmatpush1.bf16.msra.mxu0 %v1193_v30  ;;  %763 = vmatpush1.bf16.msra.mxu1 %v1194_v31 }
  0x57   : > { %723 = vmatprep.subr.bf16.mxu0 %v1195_v32  ;;  %764 = vmatprep.subr.bf16.mxu1 %v1197_v33 }
  0x5a   : > { %724 = vmatpush2.bf16.msra.mxu0 %v1199_v34  ;;  %765 = vmatpush2.bf16.msra.mxu1 %v1200_v35 }
  0x5b   : > { %725 = vmatprep.subr.bf16.mxu0 %v1201_v36  ;;  %766 = vmatprep.subr.bf16.mxu1 %v1203_v37 }
  0x5e   : > { %726 = vmatpush2.bf16.msra.mxu0 %v1205_v38  ;;  %767 = vmatpush2.bf16.msra.mxu1 %v1206_v39 }
  0x5f   : > { %727 = vmatprep.subr.bf16.mxu0 %v1207_v40  ;;  %768 = vmatprep.subr.bf16.mxu1 %v1209_v41 }
  0x62   : > { %728 = vmatpush2.bf16.msra.mxu0 %v1211_v42  ;;  %769 = vmatpush2.bf16.msra.mxu1 %v1212_v43 }
  0x63   : > { %729 = vmatprep.subr.bf16.mxu0 %v1213_v44  ;;  %770 = vmatprep.subr.bf16.mxu1 %v1215_v45 }
  0x66   : > { %730 = vmatpush2.bf16.msra.mxu0 %v1217_v48  ;;  %771 = vmatpush2.bf16.msra.mxu1 %v1218_v49 }
  0x67   : > { %731 = vmatprep.subr.bf16.mxu0 %v1219_v50  ;;  %772 = vmatprep.subr.bf16.mxu1 %v1221_v51 }
  0x6a   : > { %732 = vmatpush2.bf16.msra.mxu0 %v1223_v52  ;;  %773 = vmatpush2.bf16.msra.mxu1 %v1224_v53 }
  0x6b   : > { %733 = vmatprep.subr.bf16.mxu0 %v1225_v54  ;;  %774 = vmatprep.subr.bf16.mxu1 %v1227_v55 }
  0x6e   : > { %734 = vmatpush2.bf16.msra.mxu0 %v1229_v56  ;;  %775 = vmatpush2.bf16.msra.mxu1 %v1230_v57 }
  0x6f   : > { %735 = vmatprep.subr.bf16.mxu0 %v1231_v58  ;;  %776 = vmatprep.subr.bf16.mxu1 %v1233_v59 }
  0x72   : > { %736 = vmatpush2.bf16.msra.mxu0 %v1235_v60  ;;  %777 = vmatpush2.bf16.msra.mxu1 %v1236_v61 }
  0x73   : > { %737 = vmatprep.subr.bf16.mxu0 %v1237_v62  ;;  %778 = vmatprep.subr.bf16.mxu1 %v1239_v63 }
  0x76   : > { %738 = vmatpush2.bf16.msra.mxu0 %v1241_v0  ;;  %779 = vmatpush2.bf16.msra.mxu1 %v1242_v1 }
  0x79   : > { %740 = vmatmul.mubr.bf16.vlgmr.msra.gmra.mxu0 %v1010_v2  ;;  %781 = vmatmul.mubr.bf16.vlgmr.msra.gmra.mxu1 %v1010_v2 }
 0x139   : > { %v741_v14 = vpop.f32.mrf.mxu0  ;;  %v782_v15 = vpop.f32.mrf.mxu1 }
 0x13a   : > { %v826_v16 = vadd.f32 %v809_v10, %v741_v14  ;;  %v828_v17 = vadd.f32 %v817_v11, %v782_v15 }
 0x13b   : > { %v743_v18 = vpop.f32.mrf.mxu0  ;;  %v784_v19 = vpop.f32.mrf.mxu1 }
 0x13c   : > { %v827_v20 = vadd.f32 %v813_v12, %v743_v18  ;;  %v829_v21 = vadd.f32 %v821_v13, %v784_v19  ;;  %v830_v24 = vmax.f32 %v826_v16, 0.0  ;;  %v832_v25 = vmax.f32 %v828_v17, 0.0 }
 0x13d   : > { %v745_v22 = vpop.f32.mrf.mxu0  ;;  %v786_v23 = vpop.f32.mrf.mxu1 }
 0x13e   : > { %v831_v26 = vmax.f32 %v827_v20, 0.0  ;;  %v833_v27 = vmax.f32 %v829_v21, 0.0 }
 0x13f   : > { %v746_v28 = vpop.f32.mrf.mxu0  ;;  %v787_v29 = vpop.f32.mrf.mxu1 }
 0x140   : > { %v1082_v30 = vpack.c.bf16 %v831_v26, %v830_v24  ;;  %v1083_v31 = vpack.c.bf16 %v833_v27, %v832_v25 }
 0x142   : > { %850 = vst [vmem:[%s301_s29] sm:$0xff] %v1082_v30  ;;  %851 = vst [vmem:[%s301_s29 + $0x8] sm:$0xff] %v1083_v31 }
 0x143 PF: > { %s19_s17 = sadd.s32 1, %s1355_s17   ;;  %s1587_s12 = smov %s1339_s13 }
 0x144   : > { %p16_p9 = scmp.ge.s32.totalorder %s19_s17, 10   ;;  %s1588_s13 = smov %s1343_s14 }
 0x145   : > { %s1589_s14 = smov %s1431_s24  ;;  %s1590_s15 = smov %s1351_s16 }
 0x146   : > { %s1591_s16 = smov %s1593_s19  ;;  %18 = sbr.rel (!%p16_p9) target bundleno = 6 (0x6), region = 96 }
 0x14b   :  { %882 = vsyncpa [#allocation4], 1 }
 0x14c   :  { %884 = vsyncpa [#allocation4 + $0x1], 1 }
 0x14d   :  { %885 = vsyncpa [#allocation6], 1 }
 0x14e   :  { %887 = vsyncpa [#allocation6 + $0x1], 1 }

// kernel: vgg_forward.7
= control target key start
LH: loop header
LB: loop body
LE: loop exit
PB: predicated region body
PF: predicated region fallthrough
CT: control target
= control target key end

     0   :  { %8 = vsyncpa [#allocation3], 0  ;;  %s5811_s0 = inlined_call_operand.vmem [shape: bf16[2,1,18,18,4], index: 0, kind: input, shape index: {}]   ;;  %s5812_s1 = inlined_call_operand.hbm [shape: bf16[3,3,4,8], index: 1, kind: input, shape index: {}]   ;;  %s5813_s2 = inlined_call_operand.hbm [shape: f32[1,8], index: 2, kind: input, shape index: {}]   ;;  %s5814_s3 = inlined_call_operand.vmem [shape: bf16[2,16,16,8], index: 3, kind: output, shape index: {}]  }
   0x1   :  { %9 = vsyncpa [#allocation5], 0  ;;  %s4245_s12 = smov 0   ;;  %s4247_s13 = smov 0  }
   0x2   :  { %s4249_s14 = smov 0  }
   0x3 LB: > { %s3304_s15 = sadd.s32 4294967295, %s4219_s14   ;;  %s27_s16 = sadd.s32 1, %s4215_s13  ;;  %s4219_s14 = sphi %s4249_s14, %s15_s14   ;;  %s4215_s13 = sphi %s4247_s13, %s6024_s13   ;;  %s4211_s12 = sphi %s4245_s12, %s6023_s12  }
   0x4   : > { %p29_p0 = scmp.ge.s32.totalorder %s27_s16, 2  ;;  %p3306_p1 = scmp.ge.s32.totalorder %s4219_s14, 1 }
   0x5   : > { %p130_p2 = scmp.lt.s32.totalorder %s4219_s14, 3  ;;  %p4270_p4 = scmp.eq.s32.totalorder %s3304_s15, 0 }
   0x6   : > { %s6026_s16 = smov (%p29_p0, %s27_s16), 0  ;;  %s4221_s19 = smov [#allocation2]  }
   0x7   : > { %p4266_p3 = pnand %p3306_p1, %p130_p2  ;;  %s142_s20 = sshll.u32 %s4221_s19, 4  ;;  %s143_s20 = int_to_ptr.vmem [resolvable:$true] %s142_s20 }
   0x8   : > { %s4222_s22 = smov [#allocation4]   ;;  %s4148_s24 = scalar_lea.vmem %s143_s20, 288 }
   0x9   : > { %p4080_p5 = pneg %p4266_p3  ;;  %s156_s23 = sshll.u32 %s4222_s22, 4  ;;  %s157_s23 = int_to_ptr.vmem [resolvable:$true] %s156_s23 }
   0xa   : > { %p4149_p8 = scmp.ne.s32.totalorder %s143_s20, %s4148_s24  ;;  %p4156_p11 = scmp.lt.s32.totalorder %s143_s20, %s143_s20 }
   0xb   : > { %p4278_p6 = pnand %p4270_p4, %p4080_p5  ;;  %p4157_p12 = scmp.lt.s32.totalorder %s4148_s24, %s4148_s24 }
   0xd   : > { %p4139_p7 = pneg %p4278_p6  ;;  %p4158_p13 = por %p4157_p12, %p4156_p11 }
   0xf   : > { %p4151_p9 = pnand %p4149_p8, %p4139_p7 }
  0x11   : > { %p4152_p10 = pneg %p4151_p9 }
  0x13   : > { %p4159_p0 = pnand %p4158_p13, %p4152_p10 }
  0x15   : > { %4162 = shalt.err (!%p4159_p0)
}
  0x16   : > { %s4223_s25 = smov 32   ;;  %s4224_s26 = smov 2  }
  0x17   : > { %4083 = dma.hbm_to_vmem [thread:$0]  (!%p4278_p6), %s5812_s1, 288, %s143_s20, [#allocation3], %s4223_s25, %s4223_s25, %s4224_s26  }
  0x18   : > { %s4174_s29 = scalar_lea.vmem %s157_s23, 16  ;;  %s4181_s30 = scalar_lea.vmem %s157_s23, 32 }
  0x19   : > { %p4175_p1 = scmp.ne.s32.totalorder %s157_s23, %s4174_s29  ;;  %p4182_p8 = scmp.lt.s32.totalorder %s157_s23, %s157_s23 }
  0x1a   : > { %p4183_p9 = scmp.lt.s32.totalorder %s4181_s30, %s4174_s29 }
  0x1b   : > { %p4177_p2 = pnand %p4175_p1, %p4139_p7 }
  0x1c   : > { %p4184_p10 = por %p4183_p9, %p4182_p8 }
  0x1d   : > { %p4178_p5 = pneg %p4177_p2 }
  0x1f   : > { %p4185_p11 = pnand %p4184_p10, %p4178_p5 }
  0x21   : > { %4188 = shalt.err (!%p4185_p11)
}
  0x22   : > { %4086 = dma.hbm_to_vmem [thread:$0]  (!%p4278_p6), %s5813_s2, 16, %s157_s23, [#allocation5]  }
  0x23   : > { %181 = sbr.rel (%p4266_p3) target bundleno = 590 (0x24e), region = 32 }
  0x28   : > { %4202 = dma.done.wait (%p4270_p4), [#allocation3], 288  }
  0x29   : > { %4204 = vsyncadd (%p4270_p4), [#allocation3], 4294967008 }
  0x2a   : > { %4206 = dma.done.wait (%p4270_p4), [#allocation5], 16  }
  0x2b   : > { %4208 = vsyncadd (%p4270_p4), [#allocation5], 4294967280  ;;  %p218_p7 = scmp.lt.s32.totalorder %s4211_s12, 1  ;;  %vm780_vm0 = vcmask 1041408   ;;  %vm294_vm1 = vsmask.f32 3328 }
  0x2c   : > { %vm295_vm2 = vsmask.f32 7440  ;;  %v682_v0 = vld [vmem:[#allocation2 + $0x2] sm:$0x3]  ;;  %vm731_vm3 = vcmask 31744   ;;  %v5861_v26 = vmov 0 }
  0x2d   : > { %s6028_s12 = smov (!%p218_p7, %s4211_s12), 1  ;;  %4062 = vmatprep.subr.msk.bf16.mxu1 %vm780_vm0, %v682_v0  ;;  %4061 = vmatprep.subr.msk.bf16.mxu0 %vm780_vm0, %v682_v0  ;;  %v782_v3 = vsel %vm780_vm0, %v682_v0, 0  ;;  %v293_v25 = vld [vmem:[#allocation2] sm:$0x3]  ;;  %vm4354_vm4 = vmor %vm294_vm1, %vm295_vm2  ;;  %v1369_v56 = vld [vmem:[#allocation2 + $0x4] sm:$0x3] }
  0x2e   : > { %s4071_s6 = smul.u32 216, %s6028_s12  ;;  %4060 = vmatpush3.bf16.msra.mxu1 %v782_v3  ;;  %3754 = vmatpush3.bf16.msra.mxu0 %v782_v3  ;;  %v5862_v26 = vsel %vm4354_vm4, 4294967295, %v5861_v26  ;;  %vm1253_vm5 = vcmask 1042432   ;;  %vm1254_vm6 = vcmask 1046532   ;;  %s3567_s10 = sshll.u32 %s6028_s12, 7  ;;  %vm3153_vm8 = vcmask 60416  }
  0x2f   : > { %5863 = vst [vmem:[#allocation8_spill] sm:$0xff] %v5862_v26  ;;  %4063 = vmatprep.subr.msk.bf16.mxu1 %vm780_vm0, %v293_v25  ;;  %4064 = vmatprep.subr.msk.bf16.mxu0 %vm780_vm0, %v1369_v56  ;;  %vm4677_vm7 = vmor %vm1253_vm5, %vm1254_vm6  ;;  %s5632_s15 = scalar_lea.vmem %s5814_s3, %s3567_s10 }
  0x30   : > { %s4318_s9 = scalar_lea.vmem %s5811_s0, %s4071_s6 }
  0x31   : > { %v4321_v1 = vld [vmem:[%s4318_s9] sm:$0xf]  ;;  %v4324_v2 = vld [vmem:[%s4318_s9 + $0x4] sm:$0xf]  ;;  %v4330_v4 = vld [vmem:[%s4318_s9 + $0x8] sm:$0x1] }
  0x32   : > { %v298_v5 = vshrl.u32 %v4321_v1, 16  ;;  %v301_v6 = vshll.u32 %v4321_v1, 16  ;;  %v307_v7 = vshll.u32 %v4324_v2, 16  ;;  %v311_v8 = vshrl.u32 %v4324_v2, 16  ;;  %v4338_v10 = vld [vmem:[%s4318_s9 + $0x60] sm:$0xf] }
  0x33   : > { %v317_v9 = vshll.u32 %v4330_v4, 16  ;;  %v4341_v14 = vld [vmem:[%s4318_s9 + $0x64] sm:$0xf]  ;;  %v490_v15 = vshrl.u32 %v4338_v10, 16  ;;  %v4346_v18 = vld [vmem:[%s4318_s9 + $0x68] sm:$0x1] }
  0x34   : > { %v300_v11 = vrot.slane %v298_v5, 4  ;;  %v303_v12 = vrot.slane %v301_v6, 5  ;;  %v309_v13 = vrot.slane %v307_v7, 5  ;;  %v313_v16 = vrot.slane %v311_v8, 4  ;;  %v4360_v31 = vld [vmem:[%s4318_s9 + $0xc] sm:$0xf] }
  0x35   : > { %v493_v19 = vshll.u32 %v4338_v10, 16  ;;  %v499_v20 = vshll.u32 %v4341_v14, 16  ;;  %v492_v22 = vrot.slane %v490_v15, 4  ;;  %v503_v23 = vshrl.u32 %v4341_v14, 16  ;;  %v4363_v35 = vld [vmem:[%s4318_s9 + $0x10] sm:$0xf] }
  0x36   : > { %v304_v21 = vor.u32 %v303_v12, %v300_v11  ;;  %v509_v24 = vshll.u32 %v4346_v18, 16  ;;  %v314_v27 = vor.u32 %v313_v16, %v309_v13  ;;  %v319_v28 = vrot.slane %v317_v9, 5  ;;  %v4367_v39 = vld [vmem:[%s4318_s9 + $0x14] sm:$0x1]  ;;  %v4375_v46 = vld [vmem:[%s4318_s9 + $0x6c] sm:$0xf] }
  0x37   : > { %v495_v29 = vrot.slane %v493_v19, 5  ;;  %v501_v30 = vrot.slane %v499_v20, 5  ;;  %v505_v33 = vrot.slane %v503_v23, 4  ;;  %v322_v36 = vshrl.u32 %v4360_v31, 16  ;;  %5864 = vst [vmem:[#allocation9_spill] sm:$0xff] %v4375_v46 }
  0x38   : > { %v305_v32 = vrot.slane %v304_v21, 4  ;;  %v511_v34 = vrot.slane %v509_v24, 5  ;;  %v315_v37 = vrot.slane %v314_v27, 4  ;;  %v325_v40 = vshll.u32 %v4360_v31, 16  ;;  %v4380_v51 = vld [vmem:[%s4318_s9 + $0x70] sm:$0xf] }
  0x39   : > { %v496_v38 = vor.u32 %v495_v29, %v492_v22  ;;  %v331_v41 = vshll.u32 %v4363_v35, 16  ;;  %v506_v43 = vor.u32 %v505_v33, %v501_v30  ;;  %v324_v44 = vrot.slane %v322_v36, 4  ;;  %v4388_v61 = vld [vmem:[%s4318_s9 + $0x74] sm:$0x1]  ;;  %v4400_v9 = vld [vmem:[%s4318_s9 + $0x18] sm:$0xf] }
  0x3a   : > { %v310_v42 = vsel %vm4354_vm4, %v305_v32, %v309_v13  ;;  %v335_v45 = vshrl.u32 %v4363_v35, 16  ;;  %v320_v47 = vsel %vm4354_vm4, %v315_v37, %v319_v28  ;;  %v327_v49 = vrot.slane %v325_v40, 5  ;;  %5865 = vst [vmem:[#allocation10_spill] sm:$0xff] %v4388_v61  ;;  %v4405_v16 = vld [vmem:[%s4318_s9 + $0x1c] sm:$0xf] }
  0x3b   : > { %v497_v48 = vrot.slane %v496_v38, 4  ;;  %v333_v50 = vrot.slane %v331_v41, 5  ;;  %v3316_v52 = vcombine.low %v310_v42, %v320_v47  ;;  %v507_v53 = vrot.slane %v506_v43, 4  ;;  %v4413_v23 = vld [vmem:[%s4318_s9 + $0x20] sm:$0x1] }
  0x3c   : > { %v337_v54 = vrot.slane %v335_v45, 4  ;;  %v341_v55 = vshll.u32 %v4367_v39, 16  ;;  %v328_v58 = vor.u32 %v327_v49, %v324_v44  ;;  %v514_v3 = vshrl.u32 %v4375_v46, 16  ;;  %v4431_v44 = vld [vmem:[%s4318_s9 + $0x7c] sm:$0xf] }
  0x3d   : > { %v502_v57 = vsel %vm4354_vm4, %v497_v48, %v501_v30  ;;  %3755 = vmatprep.mubr.msk.bf16.mxu0 %vm731_vm3, %v3316_v52  ;;  %v512_v62 = vsel %vm4354_vm4, %v507_v53, %v511_v34  ;;  %v517_v7 = vshll.u32 %v4375_v46, 16  ;;  %v523_v8 = vshll.u32 %v4380_v51, 16  ;;  %v4419_v30 = vld [vmem:[%s4318_s9 + $0x78] sm:$0xf]  ;;  %v4435_v52 = vld [vmem:[%s4318_s9 + $0x80] sm:$0x1] }
  0x3e   : > { %v338_v63 = vor.u32 %v337_v54, %v333_v50  ;;  %v343_v0 = vrot.slane %v341_v55, 5  ;;  %v4395_v5 = vcombine.low %v502_v57, %v512_v62  ;;  %v329_v6 = vrot.slane %v328_v58, 4  ;;  %5867 = vst [vmem:[#allocation12_spill] sm:$0xff] %v4419_v30  ;;  %5869 = vst [vmem:[#allocation14_spill] sm:$0xff] %v4435_v52  ;;  %v4441_v57 = vld [vmem:[%s4318_s9 + $0x24] sm:$0xf] }
  0x3f   : > { %v516_v12 = vrot.slane %v514_v3, 4  ;;  %v527_v13 = vshrl.u32 %v4380_v51, 16  ;;  %v533_v15 = vshll.u32 %v4388_v61, 16  ;;  %v519_v20 = vrot.slane %v517_v7, 5  ;;  %v4552_v17 = vld [vmem:[%s4318_s9 + $0x44] sm:$0x1] }
  0x40   : > { %5866 = vst [vmem:[#allocation11_spill] sm:$0xff] %v4395_v5  ;;  %v339_v11 = vrot.slane %v338_v63, 4  ;;  %3771 = vmatprep.mubr.msk.bf16.mxu1 %vm731_vm3, %v4395_v5  ;;  %v334_v19 = vsel %vm4354_vm4, %v329_v6, %v333_v50  ;;  %v525_v21 = vrot.slane %v523_v8, 5  ;;  %v1074_v22 = vsel %vm780_vm0, %v293_v25, 0  ;;  %v4640_v61 = vld [vmem:[%s4318_s9 + $0x5c] sm:$0x1] }
  0x41   : > { %v529_v27 = vrot.slane %v527_v13, 4  ;;  %v535_v28 = vrot.slane %v533_v15, 5  ;;  %v1467_v29 = vsel %vm780_vm0, %v1369_v56, 0  ;;  %v520_v33 = vor.u32 %v519_v20, %v516_v12 }
  0x42   : > { %v344_v24 = vsel %vm4354_vm4, %v339_v11, %v343_v0  ;;  %v346_v34 = vshrl.u32 %v4400_v9, 16  ;;  %v349_v36 = vshll.u32 %v4400_v9, 16  ;;  %v355_v37 = vshll.u32 %v4405_v16, 16  ;;  %v4451_v11 = vld [vmem:[%s4318_s9 + $0x28] sm:$0xf] }
  0x43   : > { %v4421_v32 = vcombine.low %v334_v19, %v344_v24  ;;  %v530_v25 = vor.u32 %v529_v27, %v525_v21  ;;  %v359_v38 = vshrl.u32 %v4405_v16, 16  ;;  %v365_v40 = vshll.u32 %v4413_v23, 16  ;;  %v4459_v27 = vld [vmem:[%s4318_s9 + $0x2c] sm:$0x1] }
  0x44   : > { %v521_v41 = vrot.slane %v520_v33, 4  ;;  %v348_v42 = vrot.slane %v346_v34, 4  ;;  %v351_v43 = vrot.slane %v349_v36, 5  ;;  %v538_v45 = vshrl.u32 %v4419_v30, 16 }
  0x45   : > { %5868 = vst [vmem:[#allocation13_spill] sm:$0xff] %v4421_v32  ;;  %3756 = vmatmul.mubr.msk.bf16.vlgmr.msra.gmra.mxu0 %vm731_vm3, %v4421_v32  ;;  %v531_v47 = vrot.slane %v530_v25, 4  ;;  %v357_v48 = vrot.slane %v355_v37, 5  ;;  %v361_v49 = vrot.slane %v359_v38, 4  ;;  %v367_v50 = vrot.slane %v365_v40, 5 }
  0x46   : > { %3822 = vmatpush3.bf16.msra.mxu0 %v1467_v29  ;;  %v526_v53 = vsel %vm4354_vm4, %v521_v41, %v525_v21  ;;  %v352_v54 = vor.u32 %v351_v43, %v348_v42  ;;  %v540_v55 = vrot.slane %v538_v45, 4  ;;  %v541_v56 = vshll.u32 %v4419_v30, 16  ;;  %v4463_v29 = vld [vmem:[%s4318_s9 + $0x84] sm:$0xf]  ;;  %v4472_v42 = vld [vmem:[%s4318_s9 + $0x88] sm:$0xf] }
  0x47   : > { %v536_v58 = vsel %vm4354_vm4, %v531_v47, %v535_v28  ;;  %v362_v62 = vor.u32 %v361_v49, %v357_v48  ;;  %v547_v63 = vshll.u32 %v4431_v44, 16  ;;  %v551_v0 = vshrl.u32 %v4431_v44, 16 }
  0x48   : > { %v4447_v3 = vcombine.low %v526_v53, %v536_v58  ;;  %v353_v6 = vrot.slane %v352_v54, 4  ;;  %v543_v7 = vrot.slane %v541_v56, 5  ;;  %v557_v8 = vshll.u32 %v4435_v52, 16  ;;  %v4481_v53 = vld [vmem:[%s4318_s9 + $0x8c] sm:$0x1] }
  0x49   : > { %v363_v12 = vrot.slane %v362_v62, 4  ;;  %v549_v13 = vrot.slane %v547_v63, 5  ;;  %v553_v15 = vrot.slane %v551_v0, 4  ;;  %v370_v19 = vshrl.u32 %v4441_v57, 16 }
  0x4a   : > { %5870 = vst [vmem:[#allocation15_spill] sm:$0xff] %v4447_v3  ;;  %3772 = vmatmul.mubr.msk.bf16.vlgmr.msra.gmra.mxu1 %vm731_vm3, %v4447_v3  ;;  %v358_v20 = vsel %vm4354_vm4, %v353_v6, %v357_v48  ;;  %v544_v21 = vor.u32 %v543_v7, %v540_v55  ;;  %v559_v24 = vrot.slane %v557_v8, 5  ;;  %v373_v28 = vshll.u32 %v4441_v57, 16  ;;  %v4485_v55 = vld [vmem:[%s4318_s9 + $0x30] sm:$0xf] }
  0x4b   : > { %3788 = vmatpush3.bf16.msra.mxu1 %v1074_v22  ;;  %v368_v33 = vsel %vm4354_vm4, %v363_v12, %v367_v50  ;;  %v554_v34 = vor.u32 %v553_v15, %v549_v13  ;;  %v372_v36 = vrot.slane %v370_v19, 4  ;;  %v379_v25 = vshll.u32 %v4451_v11, 16  ;;  %v4493_v12 = vld [vmem:[%s4318_s9 + $0x34] sm:$0xf] }
  0x4c   : > { %v4468_v37 = vcombine.low %v358_v20, %v368_v33  ;;  %v545_v38 = vrot.slane %v544_v21, 4  ;;  %v375_v40 = vrot.slane %v373_v28, 5  ;;  %v383_v41 = vshrl.u32 %v4451_v11, 16  ;;  %v4503_v33 = vld [vmem:[%s4318_s9 + $0x38] sm:$0x1] }
  0x4d   : > { %v555_v43 = vrot.slane %v554_v34, 4  ;;  %v381_v45 = vrot.slane %v379_v25, 5  ;;  %v389_v22 = vshll.u32 %v4459_v27, 16  ;;  %v562_v47 = vshrl.u32 %v4463_v29, 16 }
  0x4e   : > { %5871 = vst [vmem:[#allocation16_spill] sm:$0xff] %v4468_v37  ;;  %3759 = vmatprep.mubr.msk.bf16.mxu0 %vm731_vm3, %v4468_v37  ;;  %v550_v48 = vsel %vm4354_vm4, %v545_v38, %v549_v13  ;;  %v376_v49 = vor.u32 %v375_v40, %v372_v36  ;;  %v385_v50 = vrot.slane %v383_v41, 4  ;;  %v565_v54 = vshll.u32 %v4463_v29, 16  ;;  %v4508_v41 = vld [vmem:[%s4318_s9 + $0x90] sm:$0xf] }
  0x4f   : > { %v560_v56 = vsel %vm4354_vm4, %v555_v43, %v559_v24  ;;  %v391_v58 = vrot.slane %v389_v22, 5  ;;  %v564_v62 = vrot.slane %v562_v47, 4  ;;  %v571_v63 = vshll.u32 %v4472_v42, 16 }
  0x50   : > { %v4490_v0 = vcombine.low %v550_v48, %v560_v56  ;;  %v377_v6 = vrot.slane %v376_v49, 4  ;;  %v386_v7 = vor.u32 %v385_v50, %v381_v45  ;;  %v567_v8 = vrot.slane %v565_v54, 5  ;;  %v4514_v48 = vld [vmem:[%s4318_s9 + $0x94] sm:$0xf] }
  0x51   : > { %v573_v13 = vrot.slane %v571_v63, 5  ;;  %v575_v15 = vshrl.u32 %v4472_v42, 16  ;;  %v581_v19 = vshll.u32 %v4481_v53, 16  ;;  %v394_v20 = vshrl.u32 %v4485_v55, 16 }
  0x52   : > { %5872 = vst [vmem:[#allocation17_spill] sm:$0xff] %v4490_v0  ;;  %3775 = vmatprep.mubr.msk.bf16.mxu1 %vm731_vm3, %v4490_v0  ;;  %v382_v21 = vsel %vm4354_vm4, %v377_v6, %v381_v45  ;;  %v387_v24 = vrot.slane %v386_v7, 4  ;;  %v568_v28 = vor.u32 %v567_v8, %v564_v62  ;;  %v397_v34 = vshll.u32 %v4485_v55, 16  ;;  %v4519_v62 = vld [vmem:[#allocation2 + $0x6] sm:$0x3] }
  0x53   : > { %v577_v36 = vrot.slane %v575_v15, 4  ;;  %v583_v25 = vrot.slane %v581_v19, 5  ;;  %v396_v38 = vrot.slane %v394_v20, 4  ;;  %v403_v40 = vshll.u32 %v4493_v12, 16  ;;  %v4524_v7 = vld [vmem:[%s4318_s9 + $0x98] sm:$0x1]  ;;  %4065 = vmatprep.subr.msk.bf16.mxu1 %vm780_vm0, %v4519_v62 }
  0x54   : > { %v392_v43 = vsel %vm4354_vm4, %v387_v24, %v391_v58  ;;  %v569_v22 = vrot.slane %v568_v28, 4  ;;  %v399_v47 = vrot.slane %v397_v34, 5  ;;  %v407_v45 = vshrl.u32 %v4493_v12, 16  ;;  %v4529_v15 = vld [vmem:[#allocation2 + $0x8] sm:$0x3] }
  0x55   : > { %v4516_v49 = vcombine.low %v382_v21, %v392_v43  ;;  %v578_v50 = vor.u32 %v577_v36, %v573_v13  ;;  %v405_v54 = vrot.slane %v403_v40, 5  ;;  %v413_v56 = vshll.u32 %v4503_v33, 16  ;;  %4066 = vmatprep.subr.msk.bf16.mxu0 %vm780_vm0, %v4529_v15 }
  0x56   : > { %v574_v63 = vsel %vm4354_vm4, %v569_v22, %v573_v13  ;;  %v400_v6 = vor.u32 %v399_v47, %v396_v38  ;;  %v409_v58 = vrot.slane %v407_v45, 4  ;;  %v586_v8 = vshrl.u32 %v4508_v41, 16  ;;  %v4539_v38 = vld [vmem:[%s4318_s9 + $0x3c] sm:$0xf]  ;;  %v4545_v45 = vld [vmem:[%s4318_s9 + $0x40] sm:$0xf] }
  0x57   : > { %5873 = vst [vmem:[#allocation18_spill] sm:$0xff] %v4516_v49  ;;  %3760 = vmatmul.mubr.msk.bf16.gmra.mxu0 %vm731_vm3, %v4516_v49  ;;  %v579_v19 = vrot.slane %v578_v50, 4  ;;  %v415_v20 = vrot.slane %v413_v56, 5  ;;  %v589_v13 = vshll.u32 %v4508_v41, 16  ;;  %v595_v21 = vshll.u32 %v4514_v48, 16 }
  0x58   : > { %v401_v24 = vrot.slane %v400_v6, 4  ;;  %v410_v28 = vor.u32 %v409_v58, %v405_v54  ;;  %v588_v34 = vrot.slane %v586_v8, 4  ;;  %v599_v36 = vshrl.u32 %v4514_v48, 16 }
  0x59   : > { %v584_v40 = vsel %vm4354_vm4, %v579_v19, %v583_v25  ;;  %v591_v43 = vrot.slane %v589_v13, 5  ;;  %v597_v22 = vrot.slane %v595_v21, 5  ;;  %v605_v47 = vshll.u32 %v4524_v7, 16 }
  0x5a   : > { %v4547_v50 = vcombine.low %v574_v63, %v584_v40  ;;  %v406_v56 = vsel %vm4354_vm4, %v401_v24, %v405_v54  ;;  %v411_v6 = vrot.slane %v410_v28, 4  ;;  %v601_v58 = vrot.slane %v599_v36, 4  ;;  %v4563_v24 = vld [vmem:[%s4318_s9 + $0x9c] sm:$0xf] }
  0x5b   : > { %v592_v8 = vor.u32 %v591_v43, %v588_v34  ;;  %v607_v60 = vrot.slane %v605_v47, 5  ;;  %v418_v25 = vshrl.u32 %v4539_v38, 16  ;;  %v421_v19 = vshll.u32 %v4539_v38, 16  ;;  %5875 = vst [vmem:[#allocation20_spill] sm:$0xff] %v4563_v24  ;;  %v4568_v43 = vld [vmem:[%s4318_s9 + $0xa0] sm:$0xf] }
  0x5c   : > { %5874 = vst [vmem:[#allocation19_spill] sm:$0xff] %v4547_v50  ;;  %3776 = vmatmul.mubr.msk.bf16.gmra.mxu1 %vm731_vm3, %v4547_v50  ;;  %v416_v63 = vsel %vm4354_vm4, %v411_v6, %v415_v20  ;;  %v602_v13 = vor.u32 %v601_v58, %v597_v22  ;;  %v427_v54 = vshll.u32 %v4545_v45, 16  ;;  %v431_v21 = vshrl.u32 %v4545_v45, 16  ;;  %v4576_v58 = vld [vmem:[%s4318_s9 + $0xa4] sm:$0x1] }
  0x5d   : > { %v4565_v28 = vcombine.low %v406_v56, %v416_v63  ;;  %v593_v34 = vrot.slane %v592_v8, 4  ;;  %v420_v36 = vrot.slane %v418_v25, 4  ;;  %v423_v40 = vrot.slane %v421_v19, 5  ;;  %5877 = vst [vmem:[#allocation22_spill] sm:$0xff] %v4576_v58 }
  0x5e   : > { %v603_v47 = vrot.slane %v602_v13, 4  ;;  %v429_v59 = vrot.slane %v427_v54, 5  ;;  %v433_v50 = vrot.slane %v431_v21, 4  ;;  %v437_v20 = vshll.u32 %v4552_v17, 16  ;;  %v4584_v21 = vld [vmem:[%s4318_s9 + $0x48] sm:$0xf] }
  0x5f   : > { %5876 = vst [vmem:[#allocation21_spill] sm:$0xff] %v4565_v28  ;;  %3763 = vmatprep.mubr.msk.bf16.mxu0 %vm731_vm3, %v4565_v28  ;;  %v598_v6 = vsel %vm4354_vm4, %v593_v34, %v597_v22  ;;  %v424_v56 = vor.u32 %v423_v40, %v420_v36  ;;  %v610_v8 = vshrl.u32 %v4563_v24, 16  ;;  %v613_v25 = vshll.u32 %v4563_v24, 16  ;;  %v4589_v40 = vld [vmem:[%s4318_s9 + $0x4c] sm:$0xf] }
  0x60   : > { %v608_v19 = vsel %vm4354_vm4, %v603_v47, %v607_v60  ;;  %v434_v63 = vor.u32 %v433_v50, %v429_v59  ;;  %v439_v13 = vrot.slane %v437_v20, 5  ;;  %v619_v54 = vshll.u32 %v4568_v43, 16  ;;  %v4598_v20 = vld [vmem:[%s4318_s9 + $0x50] sm:$0x1]  ;;  %v4662_v24 = vld [vmem:[%s4318_s9 + $0xbc] sm:$0x1] }
  0x61   : > { %v4586_v0 = vcombine.low %v598_v6, %v608_v19  ;;  %v425_v22 = vrot.slane %v424_v56, 4  ;;  %v612_v34 = vrot.slane %v610_v8, 4  ;;  %v615_v36 = vrot.slane %v613_v25, 5 }
  0x62   : > { %v435_v3 = vrot.slane %v434_v63, 4  ;;  %v621_v5 = vrot.slane %v619_v54, 5  ;;  %v623_v28 = vshrl.u32 %v4568_v43, 16  ;;  %v629_v60 = vshll.u32 %v4576_v58, 16  ;;  %v4606_v54 = vld [vmem:[%s4318_s9 + $0xa8] sm:$0xf] }
  0x63   : > { %5878 = vst [vmem:[#allocation23_spill] sm:$0xff] %v4586_v0  ;;  %3779 = vmatprep.mubr.msk.bf16.mxu1 %vm731_vm3, %v4586_v0  ;;  %v430_v50 = vsel %vm4354_vm4, %v425_v22, %v429_v59  ;;  %v616_v47 = vor.u32 %v615_v36, %v612_v34  ;;  %v442_v6 = vshrl.u32 %v4584_v21, 16  ;;  %v445_v56 = vshll.u32 %v4584_v21, 16  ;;  %5879 = vst [vmem:[#allocation24_spill] sm:$0xff] %v4606_v54  ;;  %v4611_v36 = vld [vmem:[%s4318_s9 + $0xac] sm:$0xf] }
  0x64   : > { %v440_v8 = vsel %vm4354_vm4, %v435_v3, %v439_v13  ;;  %v625_v25 = vrot.slane %v623_v28, 4  ;;  %v631_v19 = vrot.slane %v629_v60, 5  ;;  %v451_v63 = vshll.u32 %v4589_v40, 16  ;;  %5881 = vst [vmem:[#allocation26_spill] sm:$0xff] %v4611_v36  ;;  %v4620_v60 = vld [vmem:[%s4318_s9 + $0xb0] sm:$0x1] }
  0x65   : > { %v4608_v0 = vcombine.low %v430_v50, %v440_v8  ;;  %v617_v59 = vrot.slane %v616_v47, 4  ;;  %v444_v22 = vrot.slane %v442_v6, 4  ;;  %v447_v34 = vrot.slane %v445_v56, 5  ;;  %5882 = vst [vmem:[#allocation27_spill] sm:$0xff] %v4620_v60 }
  0x66   : > { %v626_v49 = vor.u32 %v625_v25, %v621_v5  ;;  %v453_v37 = vrot.slane %v451_v63, 5  ;;  %v455_v32 = vshrl.u32 %v4589_v40, 16  ;;  %v461_v3 = vshll.u32 %v4598_v20, 16 }
  0x67   : > { %5880 = vst [vmem:[#allocation25_spill] sm:$0xff] %v4608_v0  ;;  %3764 = vmatmul.mubr.msk.bf16.gmra.mxu0 %vm731_vm3, %v4608_v0  ;;  %v622_v28 = vsel %vm4354_vm4, %v617_v59, %v621_v5  ;;  %v448_v13 = vor.u32 %v447_v34, %v444_v22  ;;  %v634_v50 = vshrl.u32 %v4606_v54, 16  ;;  %v637_v47 = vshll.u32 %v4606_v54, 16  ;;  %v4627_v59 = vld [vmem:[%s4318_s9 + $0x54] sm:$0xf] }
  0x68   : > { %v627_v6 = vrot.slane %v626_v49, 4  ;;  %v457_v56 = vrot.slane %v455_v32, 4  ;;  %v463_v8 = vrot.slane %v461_v3, 5  ;;  %v643_v25 = vshll.u32 %v4611_v36, 16  ;;  %v4633_v49 = vld [vmem:[%s4318_s9 + $0x58] sm:$0xf] }
  0x69   : > { %v449_v63 = vrot.slane %v448_v13, 4  ;;  %v636_v0 = vrot.slane %v634_v50, 4  ;;  %v639_v52 = vrot.slane %v637_v47, 5  ;;  %v647_v5 = vshrl.u32 %v4611_v36, 16 }
  0x6a   : > { %v632_v22 = vsel %vm4354_vm4, %v627_v6, %v631_v19  ;;  %v458_v34 = vor.u32 %v457_v56, %v453_v37  ;;  %v645_v30 = vrot.slane %v643_v25, 5  ;;  %v653_v32 = vshll.u32 %v4620_v60, 16 }
  0x6b   : > { %v4635_v3 = vcombine.low %v622_v28, %v632_v22  ;;  %v454_v13 = vsel %vm4354_vm4, %v449_v63, %v453_v37  ;;  %v640_v50 = vor.u32 %v639_v52, %v636_v0  ;;  %v649_v47 = vrot.slane %v647_v5, 4  ;;  %v4649_v37 = vld [vmem:[%s4318_s9 + $0xb4] sm:$0xf] }
  0x6c   : > { %v459_v46 = vrot.slane %v458_v34, 4  ;;  %v655_v54 = vrot.slane %v653_v32, 5  ;;  %v466_v19 = vshrl.u32 %v4627_v59, 16  ;;  %v469_v6 = vshll.u32 %v4627_v59, 16  ;;  %v4655_v34 = vld [vmem:[%s4318_s9 + $0xb8] sm:$0xf] }
  0x6d   : > { %5883 = vst [vmem:[#allocation28_spill] sm:$0xff] %v4635_v3  ;;  %3780 = vmatmul.mubr.msk.bf16.gmra.mxu1 %vm731_vm3, %v4635_v3  ;;  %v641_v56 = vrot.slane %v640_v50, 4  ;;  %v650_v28 = vor.u32 %v649_v47, %v645_v30  ;;  %v475_v25 = vshll.u32 %v4633_v49, 16  ;;  %v479_v52 = vshrl.u32 %v4633_v49, 16 }
  0x6e   : > { %v464_v0 = vsel %vm4354_vm4, %v459_v46, %v463_v8  ;;  %v468_v63 = vrot.slane %v466_v19, 4  ;;  %v471_v5 = vrot.slane %v469_v6, 5  ;;  %v485_v22 = vshll.u32 %v4640_v61, 16 }
  0x6f   : > { %v4657_v32 = vcombine.low %v454_v13, %v464_v0  ;;  %v646_v50 = vsel %vm4354_vm4, %v641_v56, %v645_v30  ;;  %v651_v47 = vrot.slane %v650_v28, 4  ;;  %v477_v3 = vrot.slane %v475_v25, 5 }
  0x70   : > { %v472_v60 = vor.u32 %v471_v5, %v468_v63  ;;  %v481_v36 = vrot.slane %v479_v52, 4  ;;  %v487_v58 = vrot.slane %v485_v22, 5  ;;  %v658_v46 = vshrl.u32 %v4649_v37, 16 }
  0x71   : > { %5884 = vst [vmem:[#allocation29_spill] sm:$0xff] %v4657_v32  ;;  %3767 = vmatprep.mubr.msk.bf16.mxu0 %vm731_vm3, %v4657_v32  ;;  %v656_v8 = vsel %vm4354_vm4, %v651_v47, %v655_v54  ;;  %v661_v13 = vshll.u32 %v4649_v37, 16  ;;  %v667_v19 = vshll.u32 %v4655_v34, 16  ;;  %v671_v30 = vshrl.u32 %v4655_v34, 16 }
  0x72   : > { %v4672_v6 = vcombine.low %v646_v50, %v656_v8  ;;  %v473_v56 = vrot.slane %v472_v60, 4  ;;  %v482_v28 = vor.u32 %v481_v36, %v477_v3  ;;  %v660_v25 = vrot.slane %v658_v46, 4 }
  0x73   : > { %v663_v52 = vrot.slane %v661_v13, 5  ;;  %v669_v0 = vrot.slane %v667_v19, 5  ;;  %v673_v63 = vrot.slane %v671_v30, 4  ;;  %v677_v5 = vshll.u32 %v4662_v24, 16 }
  0x74   : > { %5885 = vst [vmem:[#allocation30_spill] sm:$0xff] %v4672_v6  ;;  %3783 = vmatprep.mubr.msk.bf16.mxu1 %vm731_vm3, %v4672_v6  ;;  %v478_v22 = vsel %vm4354_vm4, %v473_v56, %v477_v3  ;;  %v483_v60 = vrot.slane %v482_v28, 4  ;;  %v3380_v36 = vrot.slane %v4321_v1, 9  ;;  %v1258_v50 = vrot.slane %v4324_v2, 5 }
  0x75   : > { %v664_v47 = vor.u32 %v663_v52, %v660_v25  ;;  %v674_v46 = vor.u32 %v673_v63, %v669_v0  ;;  %v679_v8 = vrot.slane %v677_v5, 5  ;;  %v4689_v13 = vcombine.low %v4360_v31, %v4363_v35 }
  0x76   : > { %v488_v19 = vsel %vm4354_vm4, %v483_v60, %v487_v58  ;;  %v1259_v30 = vsel %vm4677_vm7, %v3380_v36, %v1258_v50  ;;  %v1260_v6 = vrot.slane %v1258_v50, 4  ;;  %v3381_v3 = vrot.slane %v4360_v31, 9 }
  0x77   : > { %v4696_v56 = vcombine.low %v478_v22, %v488_v19  ;;  %v665_v28 = vrot.slane %v664_v47, 4  ;;  %v675_v32 = vrot.slane %v674_v46, 4  ;;  %v5888_v25 = vrot.slane %v4363_v35, 5 }
  0x78   : > { %v3348_v63 = vcombine.low %v4321_v1, %v4324_v2  ;;  %v5889_v5 = vrot.slane %v4330_v4, 5  ;;  %v5891_v2 = vrot.slane %v4367_v39, 5  ;;  %v4726_v50 = vcombine.low %v4400_v9, %v4405_v16 }
  0x79   : > { %v1267_v52 = vrot.slane %v5888_v25, 4  ;;  %v5890_v60 = vmov %v5888_v25  ;;  %3768 = vmatmul.mubr.msk.bf16.gmra.mxu0 %vm731_vm3, %v4696_v56  ;;  %v670_v22 = vsel %vm4354_vm4, %v665_v28, %v669_v0  ;;  %v680_v36 = vsel %vm4354_vm4, %v675_v32, %v679_v8 }
  0x7a   : > { %v1262_v58 = vsel %vm4677_vm7, %v1260_v6, %v5889_v5  ;;  %v1266_v31 = vsel %vm4677_vm7, %v3381_v3, %v5890_v60  ;;  %v4720_v6 = vcombine.low %v670_v22, %v680_v36  ;;  %v3382_v47 = vrot.slane %v4400_v9, 9 }
  0x7b   : > { %v3396_v1 = vcombine.low %v1259_v30, %v1262_v58  ;;  %v1269_v4 = vsel %vm4677_vm7, %v1267_v52, %v5891_v2  ;;  %v1272_v32 = vrot.slane %v4405_v16, 5  ;;  %v1275_v0 = vrot.slane %v4413_v23, 5  ;;  %v4750_v58 = vld [vmem:[#allocation2 + $0xc] sm:$0x3] }
  0x7c   : > { %5892 = vst [vmem:[#allocation31_spill] sm:$0xff] %v4720_v6  ;;  %v4722_v35 = vcombine.low %v1266_v31, %v1269_v4  ;;  %3784 = vmatmul.mubr.msk.bf16.gmra.mxu1 %vm731_vm3, %v4720_v6  ;;  %v1279_v39 = vrot.slane %v4451_v11, 5  ;;  %v3383_v19 = vrot.slane %v4441_v57, 9  ;;  %v1286_v9 = vrot.slane %v4493_v12, 5  ;;  %v4770_v4 = vld [vmem:[#allocation2 + $0xa] sm:$0x3] }
  0x7d   : > { %3823 = vmatprep.mubr.msk.bf16.mxu0 %vm731_vm3, %v3396_v1  ;;  %3789 = vmatprep.mubr.msk.bf16.mxu1 %vm731_vm3, %v3348_v63  ;;  %v1273_v46 = vsel %vm4677_vm7, %v3382_v47, %v1272_v32  ;;  %v1274_v8 = vrot.slane %v1272_v32, 4  ;;  %v1901_v16 = vsel %vm780_vm0, %v4529_v15, 0  ;;  %v1282_v23 = vrot.slane %v4459_v27, 5 }
  0x7e   : > { %v1281_v30 = vrot.slane %v1279_v39, 4  ;;  %v3384_v3 = vrot.slane %v4485_v55, 9  ;;  %v1288_v25 = vrot.slane %v1286_v9, 4  ;;  %v1289_v52 = vrot.slane %v4503_v33, 5 }
  0x7f   : > { %v1276_v28 = vsel %vm4677_vm7, %v1274_v8, %v1275_v0  ;;  %v1293_v63 = vrot.slane %v4545_v45, 5  ;;  %v1673_v27 = vsel %vm780_vm0, %v4519_v62, 0  ;;  %v1280_v15 = vsel %vm4677_vm7, %v3383_v19, %v1279_v39 }
  0x80   : > { %v4748_v5 = vcombine.low %v1273_v46, %v1276_v28  ;;  %v1283_v33 = vsel %vm4677_vm7, %v1281_v30, %v1282_v23  ;;  %v1287_v60 = vsel %vm4677_vm7, %v3384_v3, %v1286_v9  ;;  %v3385_v31 = vrot.slane %v4539_v38, 9 }
  0x81   : > { %3824 = vmatmul.mubr.msk.bf16.vlgmr.msra.gmra.mxu0 %vm731_vm3, %v4722_v35  ;;  %v1300_v22 = vrot.slane %v4589_v40, 5  ;;  %v1290_v62 = vsel %vm4677_vm7, %v1288_v25, %v1289_v52  ;;  %v1295_v36 = vrot.slane %v1293_v63, 4  ;;  %v1296_v1 = vrot.slane %v4552_v17, 5 }
  0x82   : > { %3890 = vmatpush3.bf16.msra.mxu0 %v1901_v16  ;;  %3827 = vmatprep.mubr.msk.bf16.mxu0 %vm731_vm3, %v4748_v5  ;;  %v1307_v2 = vrot.slane %v4633_v49, 5  ;;  %v3386_v47 = vrot.slane %v4584_v21, 9  ;;  %v1303_v0 = vrot.slane %v4598_v20, 5  ;;  %v4780_v17 = vcombine.low %v1280_v15, %v1283_v33 }
  0x83   : > { %4068 = vmatprep.subr.msk.bf16.mxu0 %vm780_vm0, %v4750_v58  ;;  %v1302_v32 = vrot.slane %v1300_v22, 4  ;;  %v4782_v39 = vcombine.low %v1287_v60, %v1290_v62  ;;  %v1294_v46 = vsel %vm4677_vm7, %v3385_v31, %v1293_v63  ;;  %v1314_v8 = vrot.slane %v4341_v14, 5 }
  0x84   : > { %3790 = vmatmul.mubr.msk.bf16.vlgmr.msra.gmra.mxu1 %vm731_vm3, %v4689_v13  ;;  %v1297_v19 = vsel %vm4677_vm7, %v1295_v36, %v1296_v1  ;;  %v3387_v20 = vrot.slane %v4627_v59, 9  ;;  %v1309_v9 = vrot.slane %v1307_v2, 4  ;;  %v1310_v16 = vrot.slane %v4640_v61, 5  ;;  %v5893_v36 = vld [vmem:[#allocation20_spill] sm:$0xff] }
  0x85   : > { %3856 = vmatpush3.bf16.msra.mxu1 %v1673_v27  ;;  %3793 = vmatprep.mubr.msk.bf16.mxu1 %vm731_vm3, %v4726_v50  ;;  %v4795_v30 = vcombine.low %v4441_v57, %v4451_v11  ;;  %v1301_v23 = vsel %vm4677_vm7, %v3386_v47, %v1300_v22  ;;  %v1304_v3 = vsel %vm4677_vm7, %v1302_v32, %v1303_v0  ;;  %v3388_v28 = vrot.slane %v4338_v10, 9  ;;  %v5894_v32 = vld [vmem:[#allocation22_spill] sm:$0xff] }
  0x86   : > { %4067 = vmatprep.subr.msk.bf16.mxu1 %vm780_vm0, %v4770_v4  ;;  %v1317_v25 = vrot.slane %v4346_v18, 5  ;;  %v4807_v61 = vcombine.low %v4485_v55, %v4493_v12  ;;  %v4811_v57 = vcombine.low %v4539_v38, %v4545_v45  ;;  %v4815_v11 = vcombine.low %v4584_v21, %v4589_v40 }
  0x87   : > { %v4819_v52 = vcombine.low %v1294_v46, %v1297_v19  ;;  %v1316_v18 = vrot.slane %v1314_v8, 4  ;;  %v4823_v63 = vcombine.low %v4463_v29, %v4472_v42  ;;  %v3391_v55 = vrot.slane %v4463_v29, 9  ;;  %v5895_v46 = vld [vmem:[#allocation26_spill] sm:$0xff] }
  0x88   : > { %v4826_v12 = vcombine.low %v1301_v23, %v1304_v3  ;;  %v1308_v38 = vsel %vm4677_vm7, %v3387_v20, %v1307_v2  ;;  %v1311_v45 = vsel %vm4677_vm7, %v1309_v9, %v1310_v16  ;;  %v1321_v21 = vrot.slane %v4380_v51, 5 }
  0x89   : > { %3828 = vmatmul.mubr.msk.bf16.gmra.mxu0 %vm731_vm3, %v4780_v17  ;;  %v1315_v40 = vsel %vm4677_vm7, %v3388_v28, %v1314_v8  ;;  %v1335_v27 = vrot.slane %v4472_v42, 5  ;;  %v1338_v29 = vrot.slane %v4481_v53, 5  ;;  %v4841_v15 = vcombine.low %v4508_v41, %v4514_v48  ;;  %v5896_v8 = vld [vmem:[#allocation24_spill] sm:$0xff] }
  0x8a   : > { %3831 = vmatprep.mubr.msk.bf16.mxu0 %vm731_vm3, %v4782_v39  ;;  %v1328_v33 = vrot.slane %v4431_v44, 5  ;;  %v3392_v60 = vrot.slane %v4508_v41, 9  ;;  %v1342_v31 = vrot.slane %v4514_v48, 5  ;;  %v1345_v22 = vrot.slane %v4524_v7, 5 }
  0x8b   : > { %v1318_v42 = vsel %vm4677_vm7, %v1316_v18, %v1317_v25  ;;  %v1336_v53 = vsel %vm4677_vm7, %v3391_v55, %v1335_v27  ;;  %v1337_v62 = vrot.slane %v1335_v27, 4  ;;  %v4855_v1 = vcombine.low %v5893_v36, %v4568_v43  ;;  %v5897_v25 = vld [vmem:[#allocation27_spill] sm:$0xff] }
  0x8c   : > { %3794 = vmatmul.mubr.msk.bf16.gmra.mxu1 %vm731_vm3, %v4795_v30  ;;  %v1343_v2 = vsel %vm4677_vm7, %v3392_v60, %v1342_v31  ;;  %v1344_v47 = vrot.slane %v1342_v31, 4  ;;  %v3393_v41 = vrot.slane %v5893_v36, 9  ;;  %v1349_v48 = vrot.slane %v4568_v43, 5 }
  0x8d   : > { %3797 = vmatprep.mubr.msk.bf16.mxu1 %vm731_vm3, %v4807_v61  ;;  %v1339_v7 = vsel %vm4677_vm7, %v1337_v62, %v1338_v29  ;;  %v1352_v0 = vrot.slane %v5894_v32, 5  ;;  %v4866_v19 = vcombine.low %v5896_v8, %v5895_v46  ;;  %v3394_v20 = vrot.slane %v5896_v8, 9  ;;  %v5900_v32 = vld [vmem:[#allocation12_spill] sm:$0xff] }
  0x8e   : > { %v4871_v9 = vcombine.low %v1336_v53, %v1339_v7  ;;  %v1346_v16 = vsel %vm4677_vm7, %v1344_v47, %v1345_v22  ;;  %v1350_v43 = vsel %vm4677_vm7, %v3393_v41, %v1349_v48  ;;  %v1351_v23 = vrot.slane %v1349_v48, 4  ;;  %v5898_v22 = vld [vmem:[#allocation9_spill] sm:$0xff] }
  0x8f   : > { %v4879_v3 = vcombine.low %v1343_v2, %v1346_v16  ;;  %v1356_v28 = vrot.slane %v5895_v46, 5  ;;  %v1359_v18 = vrot.slane %v5897_v25, 5  ;;  %v4885_v55 = vcombine.low %v4649_v37, %v4655_v34  ;;  %v4983_v25 = vld [vmem:[%s4318_s9 + $0xc0] sm:$0xf] }
  0x90   : > { %v1353_v27 = vsel %vm4677_vm7, %v1351_v23, %v1352_v0  ;;  %v3395_v29 = vrot.slane %v4649_v37, 9  ;;  %v1363_v60 = vrot.slane %v4655_v34, 5  ;;  %v1366_v31 = vrot.slane %v4662_v24, 5  ;;  %v5899_v37 = vld [vmem:[#allocation10_spill] sm:$0xff] }
  0x91   : > { %3832 = vmatmul.mubr.msk.bf16.gmra.mxu0 %vm731_vm3, %v4819_v52  ;;  %v3389_v53 = vrot.slane %v5898_v22, 9  ;;  %v4895_v62 = vcombine.low %v1350_v43, %v1353_v27  ;;  %v1357_v36 = vsel %vm4677_vm7, %v3394_v20, %v1356_v28  ;;  %v1358_v2 = vrot.slane %v1356_v28, 4  ;;  %v5901_v20 = vld [vmem:[#allocation14_spill] sm:$0xff] }
  0x92   : > { %3835 = vmatprep.mubr.msk.bf16.mxu0 %vm731_vm3, %v4826_v12  ;;  %v4901_v47 = vcombine.low %v1308_v38, %v1311_v45  ;;  %v1324_v34 = vrot.slane %v5899_v37, 5  ;;  %v1364_v24 = vsel %vm4677_vm7, %v3395_v29, %v1363_v60  ;;  %v1365_v41 = vrot.slane %v1363_v60, 4  ;;  %v2751_v37 = vld [vmem:[#allocation2 + $0x10] sm:$0x3] }
  0x93   : > { %v4906_v48 = vcombine.low %v1315_v40, %v1318_v42  ;;  %v1323_v7 = vrot.slane %v1321_v21, 4  ;;  %v3390_v0 = vrot.slane %v5900_v32, 9  ;;  %v1360_v46 = vsel %vm4677_vm7, %v1358_v2, %v1359_v18  ;;  %v289_v18 = vld [vmem:[%s4318_s9 + $0xc8] sm:$0x1] }
  0x94   : > { %3798 = vmatmul.mubr.msk.bf16.gmra.mxu1 %vm731_vm3, %v4811_v57  ;;  %v1330_v8 = vrot.slane %v1328_v33, 4  ;;  %v1331_v16 = vrot.slane %v5901_v20, 5  ;;  %v4912_v43 = vcombine.low %v1357_v36, %v1360_v46  ;;  %v1367_v38 = vsel %vm4677_vm7, %v1365_v41, %v1366_v31  ;;  %v5904_v41 = vld [vmem:[#allocation18_spill] sm:$0xff]  ;;  %v5910_v46 = vld [vmem:[#allocation17_spill] sm:$0xff] }
  0x95   : > { %3801 = vmatprep.mubr.msk.bf16.mxu1 %vm731_vm3, %v4815_v11  ;;  %v4918_v45 = vcombine.low %v4627_v59, %v4633_v49  ;;  %v4920_v40 = vcombine.low %v1364_v24, %v1367_v38  ;;  %v4926_v42 = vcombine.low %v4338_v10, %v4341_v14  ;;  %v1322_v23 = vsel %vm4677_vm7, %v3389_v53, %v1321_v21  ;;  %v5902_v53 = vld [vmem:[#allocation13_spill] sm:$0xff] }
  0x96   : > { %v1325_v28 = vsel %vm4677_vm7, %v1323_v7, %v1324_v34  ;;  %v1329_v59 = vsel %vm4677_vm7, %v3390_v0, %v1328_v33  ;;  %v1332_v49 = vsel %vm4677_vm7, %v1330_v8, %v1331_v16  ;;  %v4948_v21 = vcombine.low %v5898_v22, %v4380_v51  ;;  %v4977_v51 = vld [vmem:[%s4318_s9 + $0xc4] sm:$0xf]  ;;  %v5903_v34 = vld [vmem:[#allocation16_spill] sm:$0xff]  ;;  %v2539_v7 = vld [vmem:[#allocation2 + $0xe] sm:$0x3] }
  0x97   : > { %v4942_v10 = vcombine.low %v1322_v23, %v1325_v28  ;;  %v4944_v14 = vcombine.low %v1329_v59, %v1332_v49  ;;  %v4954_v33 = vcombine.low %v5900_v32, %v4431_v44  ;;  %v2099_v44 = vrot.slane %v4977_v51, 5  ;;  %v5908_v32 = vld [vmem:[#allocation11_spill] sm:$0xff] }
  0x98   : > { %v3462_v27 = vrot.slane %v4983_v25, 9  ;;  %v2102_v60 = vrot.slane %v289_v18, 5  ;;  %v2319_v2 = vsel %vm780_vm0, %v4750_v58, 0  ;;  %v2113_v24 = vsel %vm780_vm0, %v4770_v4, 0  ;;  %v5906_v58 = vld [vmem:[#allocation25_spill] sm:$0xff]  ;;  %v5909_v0 = vld [vmem:[#allocation15_spill] sm:$0xff] }
  0x99   : > { %3836 = vmatmul.mubr.msk.bf16.gmra.mxu0 %vm731_vm3, %v4901_v47  ;;  %v2101_v29 = vrot.slane %v2099_v44, 4  ;;  %v5907_v4 = vld [vmem:[#allocation29_spill] sm:$0xff]  ;;  %v5911_v8 = vld [vmem:[#allocation19_spill] sm:$0xff]  ;;  %v1869_v20 = vshrl.u32 %v4983_v25, 16  ;;  %v1872_v16 = vshll.u32 %v4983_v25, 16  ;;  %v1882_v38 = vshrl.u32 %v4977_v51, 16 }
  0x9a   : > { %3839 = vmatprep.mubr.msk.bf16.mxu0 %vm731_vm3, %v4906_v48  ;;  %v2100_v31 = vsel %vm4677_vm7, %v3462_v27, %v2099_v44  ;;  %v1878_v23 = vshll.u32 %v4977_v51, 16  ;;  %v5912_v27 = vld [vmem:[#allocation23_spill] sm:$0xff] }
  0x9b   : > { %v2103_v22 = vsel %vm4677_vm7, %v2101_v29, %v2102_v60  ;;  %v1871_v28 = vrot.slane %v1869_v20, 4  ;;  %v1874_v59 = vrot.slane %v1872_v16, 5  ;;  %v1884_v44 = vrot.slane %v1882_v38, 4  ;;  %v5913_v29 = vld [vmem:[#allocation28_spill] sm:$0xff]  ;;  %v5914_v20 = vld [vmem:[#allocation30_spill] sm:$0xff] }
  0x9c   : > { %3802 = vmatmul.mubr.msk.bf16.gmra.mxu1 %vm731_vm3, %v4918_v45  ;;  %v4995_v36 = vcombine.low %v2100_v31, %v2103_v22  ;;  %v1880_v49 = vrot.slane %v1878_v23, 5  ;;  %v1888_v22 = vshll.u32 %v289_v18, 16  ;;  %v3428_v23 = vcombine.low %v4983_v25, %v4977_v51 }
  0x9d   : > { %3805 = vmatprep.mubr.msk.bf16.mxu1 %vm731_vm3, %v4926_v42  ;;  %v1875_v60 = vor.u32 %v1874_v59, %v1871_v28  ;;  %v2759_v28 = vsel %vm780_vm0, %v2751_v37, 0  ;;  %v2547_v59 = vsel %vm780_vm0, %v2539_v7, 0 }
  0x9e   : > { %v1885_v31 = vor.u32 %v1884_v44, %v1880_v49 }
  0xa1   : > { %3840 = vmatmul.mubr.msk.bf16.gmra.mxu0 %vm731_vm3, %v4942_v10 }
  0xa2   : > { %3843 = vmatprep.mubr.msk.bf16.mxu0 %vm731_vm3, %v4944_v14 }
  0xa4   : > { %3806 = vmatmul.mubr.msk.bf16.gmra.mxu1 %vm731_vm3, %v4948_v21 }
  0xa5   : > { %3809 = vmatprep.mubr.msk.bf16.mxu1 %vm731_vm3, %v4954_v33 }
  0xa9   : > { %3844 = vmatmul.mubr.msk.bf16.gmra.mxu0 %vm731_vm3, %v4871_v9 }
  0xaa   : > { %3847 = vmatprep.mubr.msk.bf16.mxu0 %vm731_vm3, %v4879_v3 }
  0xac   : > { %3810 = vmatmul.mubr.msk.bf16.gmra.mxu1 %vm731_vm3, %v4823_v63 }
  0xad   : > { %3813 = vmatprep.mubr.msk.bf16.mxu1 %vm731_vm3, %v4841_v15 }
  0xb1   : > { %3848 = vmatmul.mubr.msk.bf16.gmra.mxu0 %vm731_vm3, %v4895_v62 }
  0xb2   : > { %3851 = vmatprep.mubr.msk.bf16.mxu0 %vm731_vm3, %v4912_v43 }
  0xb4   : > { %3814 = vmatmul.mubr.msk.bf16.gmra.mxu1 %vm731_vm3, %v4855_v1 }
  0xb5   : > { %3817 = vmatprep.mubr.msk.bf16.mxu1 %vm731_vm3, %v4866_v19 }
  0xb9   : > { %3852 = vmatmul.mubr.msk.bf16.gmra.mxu0 %vm731_vm3, %v4920_v40 }
  0xba   : > { %3891 = vmatprep.mubr.msk.bf16.mxu0 %vm731_vm3, %v5902_v53  ;;  %v1876_v53 = vrot.slane %v1875_v60, 4 }
  0xbc   : > { %3818 = vmatmul.mubr.msk.bf16.gmra.mxu1 %vm731_vm3, %v4885_v55  ;;  %v1881_v16 = vsel %vm4354_vm4, %v1876_v53, %v1880_v49 }
  0xbd   : > { %3857 = vmatprep.mubr.msk.bf16.mxu1 %vm731_vm3, %v4689_v13  ;;  %v5905_v13 = vld [vmem:[#allocation21_spill] sm:$0xff] }
  0xc1   : > { %3892 = vmatmul.mubr.msk.bf16.vlgmr.msra.gmra.mxu0 %vm731_vm3, %v5903_v34 }
  0xc2   : > { %3958 = vmatpush3.bf16.msra.mxu0 %v2319_v2  ;;  %3895 = vmatprep.mubr.msk.bf16.mxu0 %vm731_vm3, %v5904_v41  ;;  %v1886_v2 = vrot.slane %v1885_v31, 4 }
  0xc3   : > { %4070 = vmatprep.subr.msk.bf16.mxu0 %vm780_vm0, %v2751_v37 }
  0xc4   : > { %3858 = vmatmul.mubr.msk.bf16.vlgmr.msra.gmra.mxu1 %vm731_vm3, %v4726_v50 }
  0xc5   : > { %3924 = vmatpush3.bf16.msra.mxu1 %v2113_v24  ;;  %3861 = vmatprep.mubr.msk.bf16.mxu1 %vm731_vm3, %v4795_v30  ;;  %v1890_v24 = vrot.slane %v1888_v22, 5  ;;  %v5181_v22 = vld [vmem:[%s4318_s9 + $0xd0] sm:$0xf] }
  0xc6   : > { %4069 = vmatprep.subr.msk.bf16.mxu1 %vm780_vm0, %v2539_v7 }
  0xc7   : > { %v1891_v18 = vsel %vm4354_vm4, %v1886_v2, %v1890_v24 }
  0xc8   : > { %v5071_v38 = vcombine.low %v1881_v16, %v1891_v18 }
  0xc9   : > { %3896 = vmatmul.mubr.msk.bf16.gmra.mxu0 %vm731_vm3, %v5905_v13 }
  0xca   : > { %3899 = vmatprep.mubr.msk.bf16.mxu0 %vm731_vm3, %v5906_v58  ;;  %5915 = vst [vmem:[#allocation20_spill] sm:$0xff] %v5071_v38 }
  0xcc   : > { %3862 = vmatmul.mubr.msk.bf16.gmra.mxu1 %vm731_vm3, %v4807_v61 }
  0xcd   : > { %3865 = vmatprep.mubr.msk.bf16.mxu1 %vm731_vm3, %v4811_v57 }
  0xd1   : > { %3900 = vmatmul.mubr.msk.bf16.gmra.mxu0 %vm731_vm3, %v5907_v4 }
  0xd2   : > { %3903 = vmatprep.mubr.msk.bf16.mxu0 %vm731_vm3, %v4696_v56 }
  0xd4   : > { %3866 = vmatmul.mubr.msk.bf16.gmra.mxu1 %vm731_vm3, %v4815_v11 }
  0xd5   : > { %3869 = vmatprep.mubr.msk.bf16.mxu1 %vm731_vm3, %v4918_v45 }
  0xd9   : > { %3904 = vmatmul.mubr.msk.bf16.gmra.mxu0 %vm731_vm3, %v5908_v32 }
  0xda   : > { %3907 = vmatprep.mubr.msk.bf16.mxu0 %vm731_vm3, %v5909_v0 }
  0xdc   : > { %3870 = vmatmul.mubr.msk.bf16.gmra.mxu1 %vm731_vm3, %v4926_v42 }
  0xdd   : > { %3873 = vmatprep.mubr.msk.bf16.mxu1 %vm731_vm3, %v4948_v21 }
  0xe1   : > { %3908 = vmatmul.mubr.msk.bf16.gmra.mxu0 %vm731_vm3, %v5910_v46 }
  0xe2   : > { %3911 = vmatprep.mubr.msk.bf16.mxu0 %vm731_vm3, %v5911_v8 }
  0xe4   : > { %3874 = vmatmul.mubr.msk.bf16.gmra.mxu1 %vm731_vm3, %v4954_v33 }
  0xe5   : > { %3877 = vmatprep.mubr.msk.bf16.mxu1 %vm731_vm3, %v4823_v63 }
  0xe9   : > { %3912 = vmatmul.mubr.msk.bf16.gmra.mxu0 %vm731_vm3, %v5912_v27 }
  0xea   : > { %3915 = vmatprep.mubr.msk.bf16.mxu0 %vm731_vm3, %v5913_v29 }
  0xec   : > { %3878 = vmatmul.mubr.msk.bf16.gmra.mxu1 %vm731_vm3, %v4841_v15 }
  0xed   : > { %3881 = vmatprep.mubr.msk.bf16.mxu1 %vm731_vm3, %v4855_v1 }
  0xf1   : > { %3916 = vmatmul.mubr.msk.bf16.gmra.mxu0 %vm731_vm3, %v5914_v20 }
  0xf2   : > { %3919 = vmatprep.mubr.msk.bf16.mxu0 %vm731_vm3, %v4720_v6 }
  0xf4   : > { %3882 = vmatmul.mubr.msk.bf16.gmra.mxu1 %vm731_vm3, %v4866_v19 }
  0xf5   : > { %3885 = vmatprep.mubr.msk.bf16.mxu1 %vm731_vm3, %v4885_v55 }
  0xf9   : > { %3920 = vmatmul.mubr.msk.bf16.gmra.mxu0 %vm731_vm3, %v5071_v38 }
  0xfa   : > { %3959 = vmatprep.mubr.msk.bf16.mxu0 %vm731_vm3, %v4726_v50 }
  0xfc   : > { %3886 = vmatmul.mubr.msk.bf16.gmra.mxu1 %vm731_vm3, %v3428_v23 }
  0xfd   : > { %3925 = vmatprep.mubr.msk.bf16.mxu1 %vm731_vm3, %v4722_v35 }
 0x101   : > { %3960 = vmatmul.mubr.msk.bf16.vlgmr.msra.gmra.mxu0 %vm731_vm3, %v4795_v30 }
 0x102   : > { %4026 = vmatpush3.bf16.msra.mxu0 %v2759_v28  ;;  %3963 = vmatprep.mubr.msk.bf16.mxu0 %vm731_vm3, %v4807_v61 }
 0x104   : > { %3926 = vmatmul.mubr.msk.bf16.vlgmr.msra.gmra.mxu1 %vm731_vm3, %v4748_v5 }
 0x105   : > { %3992 = vmatpush3.bf16.msra.mxu1 %v2547_v59  ;;  %3929 = vmatprep.mubr.msk.bf16.mxu1 %vm731_vm3, %v4780_v17  ;;  %v5094_v35 = vpop.f32.mrf.mxu0 }
 0x107   : > { %v5104_v30 = vpop.f32.mrf.mxu0 }
 0x109   : > { %3964 = vmatmul.mubr.msk.bf16.gmra.mxu0 %vm731_vm3, %v4811_v57  ;;  %v5110_v57 = vpop.f32.mrf.mxu0 }
 0x10a   : > { %3967 = vmatprep.mubr.msk.bf16.mxu0 %vm731_vm3, %v4815_v11  ;;  %v5102_v50 = vpop.f32.mrf.mxu1 }
 0x10b   : > { %v5120_v51 = vpop.f32.mrf.mxu0 }
 0x10c   : > { %3930 = vmatmul.mubr.msk.bf16.gmra.mxu1 %vm731_vm3, %v4782_v39  ;;  %v5108_v61 = vpop.f32.mrf.mxu1 }
 0x10d   : > { %3933 = vmatprep.mubr.msk.bf16.mxu1 %vm731_vm3, %v4819_v52 }
 0x10e   : > { %v5118_v11 = vpop.f32.mrf.mxu1 }
 0x111   : > { %3968 = vmatmul.mubr.msk.bf16.gmra.mxu0 %vm731_vm3, %v4918_v45  ;;  %v5124_v45 = vpop.f32.mrf.mxu1 }
 0x112   : > { %3971 = vmatprep.mubr.msk.bf16.mxu0 %vm731_vm3, %v4926_v42 }
 0x114   : > { %3934 = vmatmul.mubr.msk.bf16.gmra.mxu1 %vm731_vm3, %v4826_v12 }
 0x115   : > { %3937 = vmatprep.mubr.msk.bf16.mxu1 %vm731_vm3, %v4901_v47 }
 0x117   : > { %v5126_v25 = vpop.f32.mrf.mxu0 }
 0x119   : > { %3972 = vmatmul.mubr.msk.bf16.gmra.mxu0 %vm731_vm3, %v4948_v21  ;;  %v5136_v37 = vpop.f32.mrf.mxu0 }
 0x11a   : > { %3975 = vmatprep.mubr.msk.bf16.mxu0 %vm731_vm3, %v4954_v33 }
 0x11b   : > { %v5142_v7 = vpop.f32.mrf.mxu0 }
 0x11c   : > { %3938 = vmatmul.mubr.msk.bf16.gmra.mxu1 %vm731_vm3, %v4906_v48  ;;  %v5134_v42 = vpop.f32.mrf.mxu1 }
 0x11d   : > { %3941 = vmatprep.mubr.msk.bf16.mxu1 %vm731_vm3, %v4942_v10  ;;  %v5152_v49 = vpop.f32.mrf.mxu0 }
 0x11e   : > { %v5140_v21 = vpop.f32.mrf.mxu1 }
 0x120   : > { %v5150_v33 = vpop.f32.mrf.mxu1 }
 0x121   : > { %3976 = vmatmul.mubr.msk.bf16.gmra.mxu0 %vm731_vm3, %v4823_v63 }
 0x122   : > { %3979 = vmatprep.mubr.msk.bf16.mxu0 %vm731_vm3, %v4841_v15  ;;  %v5156_v63 = vpop.f32.mrf.mxu1 }
 0x124   : > { %3942 = vmatmul.mubr.msk.bf16.gmra.mxu1 %vm731_vm3, %v4944_v14 }
 0x125   : > { %3945 = vmatprep.mubr.msk.bf16.mxu1 %vm731_vm3, %v4871_v9 }
 0x127   : > { %v5158_v44 = vpop.f32.mrf.mxu0 }
 0x129   : > { %3980 = vmatmul.mubr.msk.bf16.gmra.mxu0 %vm731_vm3, %v4855_v1  ;;  %v5168_v60 = vpop.f32.mrf.mxu0 }
 0x12a   : > { %3983 = vmatprep.mubr.msk.bf16.mxu0 %vm731_vm3, %v4866_v19  ;;  %v5178_v19 = vld [vmem:[%s4318_s9 + $0xcc] sm:$0xf] }
 0x12b   : > { %v5174_v1 = vpop.f32.mrf.mxu0 }
 0x12c   : > { %3946 = vmatmul.mubr.msk.bf16.gmra.mxu1 %vm731_vm3, %v4879_v3 }
 0x12d   : > { %3949 = vmatprep.mubr.msk.bf16.mxu1 %vm731_vm3, %v4895_v62  ;;  %v5166_v15 = vpop.f32.mrf.mxu1  ;;  %v5187_v2 = vpop.f32.mrf.mxu0 }
 0x12e   : > { %5916 = vst [vmem:[#allocation22_spill] sm:$0xff] %v5166_v15 }
 0x12f   : > { %v5170_v31 = vpop.f32.mrf.mxu1 }
 0x130   : > { %5917 = vst [vmem:[#allocation26_spill] sm:$0xff] %v5170_v31 }
 0x131   : > { %3984 = vmatmul.mubr.msk.bf16.gmra.mxu0 %vm731_vm3, %v4885_v55  ;;  %v5185_v53 = vpop.f32.mrf.mxu1  ;;  %v3480_v55 = vcombine.low %v5178_v19, %v5181_v22 }
 0x132   : > { %3987 = vmatprep.mubr.msk.bf16.mxu0 %vm731_vm3, %v3428_v23  ;;  %5918 = vst [vmem:[#allocation24_spill] sm:$0xff] %v5185_v53 }
 0x133   : > { %v5193_v24 = vpop.f32.mrf.mxu1 }
 0x134   : > { %3950 = vmatmul.mubr.msk.bf16.gmra.mxu1 %vm731_vm3, %v4912_v43  ;;  %5919 = vst [vmem:[#allocation27_spill] sm:$0xff] %v5193_v24 }
 0x135   : > { %3953 = vmatprep.mubr.msk.bf16.mxu1 %vm731_vm3, %v4920_v40 }
 0x139   : > { %v5195_v16 = vpop.f32.mrf.mxu0  ;;  %3988 = vmatmul.mubr.msk.bf16.gmra.mxu0 %vm731_vm3, %v3480_v55 }
 0x13a   : > { %4027 = vmatprep.mubr.msk.bf16.mxu0 %vm731_vm3, %v4748_v5 }
 0x13b   : > { %v5200_v18 = vpop.f32.mrf.mxu0 }
 0x13c   : > { %v5202_v23 = vpop.f32.mrf.mxu1  ;;  %3954 = vmatmul.mubr.msk.bf16.gmra.mxu1 %vm731_vm3, %v4995_v36 }
 0x13d   : > { %5920 = vst [vmem:[#allocation9_spill] sm:$0xff] %v5202_v23  ;;  %v5206_v28 = vpop.f32.mrf.mxu0  ;;  %3993 = vmatprep.mubr.msk.bf16.mxu1 %vm731_vm3, %v5903_v34 }
 0x13e   : > { %v5210_v59 = vpop.f32.mrf.mxu1 }
 0x13f   : > { %5921 = vst [vmem:[#allocation10_spill] sm:$0xff] %v5210_v59  ;;  %v5212_v24 = vpop.f32.mrf.mxu0 }
 0x140   : > { %v5214_v55 = vpop.f32.mrf.mxu1 }
 0x141   : > { %5922 = vst [vmem:[#allocation12_spill] sm:$0xff] %v5214_v55  ;;  %v3825_v53 = vpop.f32.mrf.mxu0  ;;  %4028 = vmatmul.mubr.msk.bf16.vlgmr.msra.gmra.mxu0 %vm731_vm3, %v4780_v17 }
 0x142   : > { %v5218_v5 = vpop.f32.mrf.mxu1  ;;  %4031 = vmatprep.mubr.msk.bf16.mxu0 %vm731_vm3, %v4782_v39 }
 0x143   : > { %5923 = vst [vmem:[#allocation14_spill] sm:$0xff] %v5218_v5  ;;  %v1503_v23 = vpop.f32.mrf.mxu0 }
 0x144   : > { %v3791_v31 = vpop.f32.mrf.mxu1  ;;  %3994 = vmatmul.mubr.msk.bf16.vlgmr.msra.gmra.mxu1 %vm731_vm3, %v5904_v41 }
 0x145   : > { %v1119_v34 = vadd.f32 %v3791_v31, %v5094_v35  ;;  %v3826_v59 = vpop.f32.mrf.mxu0  ;;  %3997 = vmatprep.mubr.msk.bf16.mxu1 %vm731_vm3, %v5905_v13 }
 0x146   : > { %v1110_v55 = vpop.f32.mrf.mxu1 }
 0x147   : > { %v5227_v38 = vadd.f32 %v3825_v53, %v1119_v34  ;;  %v1111_v17 = vadd.f32 %v1110_v55, %v5104_v30  ;;  %v1506_v5 = vpop.f32.mrf.mxu0 }
 0x148   : > { %v3792_v15 = vpop.f32.mrf.mxu1 }
 0x149   : > { %v5230_v26 = vadd.f32 %v1503_v23, %v1111_v17  ;;  %v1122_v39 = vadd.f32 %v3792_v15, %v5110_v57  ;;  %v3829_v6 = vpop.f32.mrf.mxu0  ;;  %4032 = vmatmul.mubr.msk.bf16.gmra.mxu0 %vm731_vm3, %v4819_v52 }
 0x14a   : > { %v1113_v41 = vpop.f32.mrf.mxu1  ;;  %4035 = vmatprep.mubr.msk.bf16.mxu0 %vm731_vm3, %v4826_v12 }
 0x14b   : > { %v5237_v13 = vadd.f32 %v3826_v59, %v1122_v39  ;;  %v1114_v35 = vadd.f32 %v1113_v41, %v5120_v51  ;;  %v1519_v31 = vpop.f32.mrf.mxu0 }
 0x14c   : > { %v3795_v30 = vpop.f32.mrf.mxu1  ;;  %3998 = vmatmul.mubr.msk.bf16.gmra.mxu1 %vm731_vm3, %v5906_v58 }
 0x14d   : > { %v5242_v53 = vadd.f32 %v1506_v5, %v1114_v35  ;;  %v1135_v57 = vadd.f32 %v3795_v30, %v5126_v25  ;;  %v3830_v15 = vpop.f32.mrf.mxu0  ;;  %4001 = vmatprep.mubr.msk.bf16.mxu1 %vm731_vm3, %v5907_v4 }
 0x14e   : > { %v1126_v52 = vpop.f32.mrf.mxu1 }
 0x14f   : > { %v5247_v23 = vadd.f32 %v3829_v6, %v1135_v57  ;;  %v1127_v12 = vadd.f32 %v1126_v52, %v5136_v37  ;;  %v1522_v59 = vpop.f32.mrf.mxu0 }
 0x150   : > { %v3796_v51 = vpop.f32.mrf.mxu1 }
 0x151   : > { %v5250_v55 = vadd.f32 %v1519_v31, %v1127_v12  ;;  %v1138_v34 = vadd.f32 %v3796_v51, %v5142_v7  ;;  %v3833_v58 = vpop.f32.mrf.mxu0  ;;  %4036 = vmatmul.mubr.msk.bf16.gmra.mxu0 %vm731_vm3, %v4901_v47 }
 0x152   : > { %v1129_v25 = vpop.f32.mrf.mxu1  ;;  %4039 = vmatprep.mubr.msk.bf16.mxu0 %vm731_vm3, %v4906_v48 }
 0x153   : > { %v5257_v4 = vadd.f32 %v3830_v15, %v1138_v34  ;;  %v1130_v6 = vadd.f32 %v1129_v25, %v5152_v49  ;;  %v1535_v5 = vpop.f32.mrf.mxu0 }
 0x154   : > { %v3799_v37 = vpop.f32.mrf.mxu1  ;;  %4002 = vmatmul.mubr.msk.bf16.gmra.mxu1 %vm731_vm3, %v4696_v56 }
 0x155   : > { %v5262_v17 = vadd.f32 %v1522_v59, %v1130_v6  ;;  %v1151_v7 = vadd.f32 %v3799_v37, %v5158_v44  ;;  %v3834_v39 = vpop.f32.mrf.mxu0  ;;  %4005 = vmatprep.mubr.msk.bf16.mxu1 %vm731_vm3, %v5908_v32 }
 0x156   : > { %v1142_v47 = vpop.f32.mrf.mxu1 }
 0x157   : > { %v5267_v41 = vadd.f32 %v3833_v58, %v1151_v7  ;;  %v1143_v48 = vadd.f32 %v1142_v47, %v5168_v60  ;;  %v1538_v35 = vpop.f32.mrf.mxu0 }
 0x158   : > { %v3800_v49 = vpop.f32.mrf.mxu1 }
 0x159   : > { %v5270_v31 = vadd.f32 %v1535_v5, %v1143_v48  ;;  %v1154_v30 = vadd.f32 %v3800_v49, %v5174_v1  ;;  %v3837_v56 = vpop.f32.mrf.mxu0  ;;  %4040 = vmatmul.mubr.msk.bf16.gmra.mxu0 %vm731_vm3, %v4942_v10  ;;  %v2518_v5 = vshll.u32 %v5178_v19, 16 }
 0x15a   : > { %v1145_v44 = vpop.f32.mrf.mxu1  ;;  %4043 = vmatprep.mubr.msk.bf16.mxu0 %vm731_vm3, %v4944_v14 }
 0x15b   : > { %v5277_v32 = vadd.f32 %v3834_v39, %v1154_v30  ;;  %v1146_v57 = vadd.f32 %v1145_v44, %v5187_v2  ;;  %v1551_v15 = vpop.f32.mrf.mxu0  ;;  %v2520_v49 = vrot.slane %v2518_v5, 5 }
 0x15c   : > { %v3803_v60 = vpop.f32.mrf.mxu1  ;;  %4006 = vmatmul.mubr.msk.bf16.gmra.mxu1 %vm731_vm3, %v5909_v0 }
 0x15d   : > { %v5282_v52 = vadd.f32 %v1538_v35, %v1146_v57  ;;  %v1167_v1 = vadd.f32 %v3803_v60, %v5195_v16  ;;  %v3838_v12 = vpop.f32.mrf.mxu0  ;;  %4009 = vmatprep.mubr.msk.bf16.mxu1 %vm731_vm3, %v5910_v46 }
 0x15e   : > { %v1158_v10 = vpop.f32.mrf.mxu1 }
 0x15f   : > { %v5287_v59 = vadd.f32 %v3837_v56, %v1167_v1  ;;  %v1159_v14 = vadd.f32 %v1158_v10, %v5200_v18  ;;  %v1554_v51 = vpop.f32.mrf.mxu0  ;;  %v2515_v18 = vshrl.u32 %v5178_v19, 16 }
 0x160   : > { %v3804_v2 = vpop.f32.mrf.mxu1 }
 0x161   : > { %v5290_v34 = vadd.f32 %v1551_v15, %v1159_v14  ;;  %v1170_v58 = vadd.f32 %v3804_v2, %v5206_v28  ;;  %v3841_v0 = vpop.f32.mrf.mxu0  ;;  %4044 = vmatmul.mubr.msk.bf16.gmra.mxu0 %vm731_vm3, %v4871_v9  ;;  %v2524_v28 = vshll.u32 %v5181_v22, 16  ;;  %v2528_v9 = vshrl.u32 %v5181_v22, 16 }
 0x162   : > { %v1161_v16 = vpop.f32.mrf.mxu1  ;;  %4047 = vmatprep.mubr.msk.bf16.mxu0 %vm731_vm3, %v4879_v3 }
 0x163   : > { %v5297_v46 = vadd.f32 %v3838_v12, %v1170_v58  ;;  %v1162_v25 = vadd.f32 %v1161_v16, %v5212_v24  ;;  %v1567_v6 = vpop.f32.mrf.mxu0  ;;  %v2526_v56 = vrot.slane %v2524_v28, 5  ;;  %v2530_v44 = vrot.slane %v2528_v9, 4 }
 0x164   : > { %v3807_v37 = vpop.f32.mrf.mxu1  ;;  %4010 = vmatmul.mubr.msk.bf16.gmra.mxu1 %vm731_vm3, %v5911_v8  ;;  %v2517_v8 = vrot.slane %v2515_v18, 4  ;;  %v3514_v58 = vrot.slane %v5178_v19, 9 }
 0x165   : > { %v5306_v7 = vadd.f32 %v1554_v51, %v1162_v25  ;;  %v1183_v3 = vadd.f32 %v3807_v37, %v5102_v50  ;;  %v3842_v39 = vpop.f32.mrf.mxu0  ;;  %4013 = vmatprep.mubr.msk.bf16.mxu1 %vm731_vm3, %v5912_v27  ;;  %v2745_v27 = vrot.slane %v5181_v22, 5 }
 0x166   : > { %v1174_v24 = vpop.f32.mrf.mxu1 }
 0x167   : > { %v5311_v47 = vadd.f32 %v3841_v0, %v1183_v3  ;;  %v1175_v48 = vadd.f32 %v1174_v24, %v5108_v61  ;;  %v1570_v35 = vpop.f32.mrf.mxu0  ;;  %v292_v61 = vld [vmem:[%s4318_s9 + $0xd4] sm:$0x1] }
 0x168   : > { %v3808_v30 = vpop.f32.mrf.mxu1  ;;  %v2534_v2 = vshll.u32 %v292_v61, 16  ;;  %v2748_v16 = vrot.slane %v292_v61, 5 }
 0x169   : > { %v5314_v57 = vadd.f32 %v1567_v6, %v1175_v48  ;;  %v1186_v50 = vadd.f32 %v3808_v30, %v5118_v11  ;;  %v3845_v15 = vpop.f32.mrf.mxu0  ;;  %4048 = vmatmul.mubr.msk.bf16.gmra.mxu0 %vm731_vm3, %v4895_v62  ;;  %v2521_v11 = vor.u32 %v2520_v49, %v2517_v8 }
 0x16a   : > { %v1177_v60 = vpop.f32.mrf.mxu1  ;;  %4051 = vmatprep.mubr.msk.bf16.mxu0 %vm731_vm3, %v4912_v43  ;;  %v2531_v43 = vor.u32 %v2530_v44, %v2526_v56  ;;  %v2536_v19 = vrot.slane %v2534_v2, 5 }
 0x16b   : > { %v5323_v1 = vadd.f32 %v3842_v39, %v1186_v50  ;;  %v1178_v12 = vadd.f32 %v1177_v60, %v5124_v45  ;;  %v1583_v10 = vpop.f32.mrf.mxu0  ;;  %v2747_v45 = vrot.slane %v2745_v27, 4  ;;  %v2522_v5 = vrot.slane %v2521_v11, 4  ;;  %v5927_v50 = vld [vmem:[#allocation20_spill] sm:$0xff]  ;;  %v5928_v60 = vld [vmem:[#allocation26_spill] sm:$0xff] }
 0x16c   : > { %v3811_v14 = vpop.f32.mrf.mxu1  ;;  %4014 = vmatmul.mubr.msk.bf16.gmra.mxu1 %vm731_vm3, %v5913_v29  ;;  %v5929_v11 = vld [vmem:[#allocation24_spill] sm:$0xff] }
 0x16d   : > { %v5328_v51 = vadd.f32 %v1570_v35, %v1178_v12  ;;  %v1199_v62 = vadd.f32 %v3811_v14, %v5134_v42  ;;  %v3846_v22 = vpop.f32.mrf.mxu0  ;;  %4017 = vmatprep.mubr.msk.bf16.mxu1 %vm731_vm3, %v5914_v20  ;;  %v2532_v20 = vrot.slane %v2531_v43, 4  ;;  %v2749_v3 = vsel %vm4677_vm7, %v2747_v45, %v2748_v16  ;;  %v5924_v35 = vld [vmem:[#allocation31_spill] sm:$0xff] }
 0x16e   : > { %v1190_v0 = vpop.f32.mrf.mxu1  ;;  %v2527_v8 = vsel %vm4354_vm4, %v2522_v5, %v2526_v56 }
 0x16f   : > { %v5334_v25 = vadd.f32 %v3845_v15, %v1199_v62  ;;  %v1191_v29 = vadd.f32 %v1190_v0, %v5140_v21  ;;  %v1586_v6 = vpop.f32.mrf.mxu0  ;;  %v2746_v21 = vsel %vm4677_vm7, %v3514_v58, %v2745_v27  ;;  %v2537_v54 = vsel %vm4354_vm4, %v2532_v20, %v2536_v19  ;;  %v5930_v58 = vld [vmem:[#allocation27_spill] sm:$0xff]  ;;  %v5932_v20 = vld [vmem:[#allocation10_spill] sm:$0xff] }
 0x170   : > { %v3812_v18 = vpop.f32.mrf.mxu1  ;;  %v3497_v56 = vcombine.low %v2527_v8, %v2537_v54  ;;  %v5934_v8 = vld [vmem:[#allocation14_spill] sm:$0xff] }
 0x171   : > { %v5337_v37 = vadd.f32 %v1583_v10, %v1191_v29  ;;  %v1202_v42 = vadd.f32 %v3812_v18, %v5150_v33  ;;  %v3849_v28 = vpop.f32.mrf.mxu0  ;;  %4052 = vmatmul.mubr.msk.bf16.gmra.mxu0 %vm731_vm3, %v4920_v40 }
 0x172   : > { %v1193_v9 = vpop.f32.mrf.mxu1  ;;  %4055 = vmatprep.mubr.msk.bf16.mxu0 %vm731_vm3, %v4995_v36  ;;  %v5926_v36 = vld [vmem:[#allocation22_spill] sm:$0xff] }
 0x173   : > { %v5348_v39 = vadd.f32 %v3846_v22, %v1202_v42  ;;  %v1194_v33 = vadd.f32 %v1193_v9, %v5156_v63  ;;  %v1599_v24 = vpop.f32.mrf.mxu0  ;;  %v3515_v63 = vcombine.low %v2746_v21, %v2749_v3 }
 0x174   : > { %v3815_v48 = vpop.f32.mrf.mxu1  ;;  %4018 = vmatmul.mubr.msk.bf16.gmra.mxu1 %vm731_vm3, %v5924_v35 }
 0x175   : > { %v5355_v49 = vadd.f32 %v1586_v6, %v1194_v33  ;;  %v1215_v30 = vadd.f32 %v3815_v48, %v5926_v36  ;;  %v3850_v44 = vpop.f32.mrf.mxu0  ;;  %4021 = vmatprep.mubr.msk.bf16.mxu1 %vm731_vm3, %v5927_v50  ;;  %v5931_v6 = vld [vmem:[#allocation9_spill] sm:$0xff]  ;;  %v5933_v33 = vld [vmem:[#allocation12_spill] sm:$0xff] }
 0x176   : > { %v1206_v15 = vpop.f32.mrf.mxu1 }
 0x177   : > { %v5362_v27 = vadd.f32 %v3849_v28, %v1215_v30  ;;  %v1207_v61 = vadd.f32 %v1206_v15, %v5928_v60  ;;  %v1602_v12 = vpop.f32.mrf.mxu0 }
 0x178   : > { %v3816_v10 = vpop.f32.mrf.mxu1 }
 0x179   : > { %v5365_v14 = vadd.f32 %v1599_v24, %v1207_v61  ;;  %v1218_v62 = vadd.f32 %v3816_v10, %v5929_v11  ;;  %v3853_v22 = vpop.f32.mrf.mxu0  ;;  %4056 = vmatmul.mubr.msk.bf16.gmra.mxu0 %vm731_vm3, %v3515_v63 }
 0x17a   : > { %v1209_v43 = vpop.f32.mrf.mxu1 }
 0x17b   : > { %v5369_v2 = vadd.f32 %v3850_v44, %v1218_v62  ;;  %v1210_v0 = vadd.f32 %v1209_v43, %v5930_v58  ;;  %v1615_v45 = vpop.f32.mrf.mxu0 }
 0x17c   : > { %v3819_v16 = vpop.f32.mrf.mxu1  ;;  %4022 = vmatmul.mubr.msk.bf16.gmra.mxu1 %vm731_vm3, %v3497_v56 }
 0x17d   : > { %v5373_v29 = vadd.f32 %v1602_v12, %v1210_v0  ;;  %v1231_v18 = vadd.f32 %v3819_v16, %v5931_v6  ;;  %v3854_v5 = vpop.f32.mrf.mxu0 }
 0x17e   : > { %v1222_v42 = vpop.f32.mrf.mxu1 }
 0x17f   : > { %v5376_v28 = vadd.f32 %v3853_v22, %v1231_v18  ;;  %v1223_v19 = vadd.f32 %v1222_v42, %v5932_v20  ;;  %v1618_v9 = vpop.f32.mrf.mxu0 }
 0x180   : > { %v3820_v21 = vpop.f32.mrf.mxu1 }
 0x181   : > { %v5379_v3 = vadd.f32 %v1615_v45, %v1223_v19  ;;  %v1234_v24 = vadd.f32 %v3820_v21, %v5933_v33  ;;  %v3893_v48 = vpop.f32.mrf.mxu0 }
 0x182   : > { %v1225_v35 = vpop.f32.mrf.mxu1 }
 0x183   : > { %v5382_v40 = vadd.f32 %v3854_v5, %v1234_v24  ;;  %v1226_v36 = vadd.f32 %v1225_v35, %v5934_v8  ;;  %v1937_v30 = vpop.f32.mrf.mxu0 }
 0x184   : > { %v3859_v44 = vpop.f32.mrf.mxu1 }
 0x185   : > { %v5385_v50 = vadd.f32 %v1618_v9, %v1226_v36  ;;  %v1838_v54 = vadd.f32 %v3859_v44, %v5227_v38  ;;  %v3894_v63 = vpop.f32.mrf.mxu0 }
 0x186   : > { %v1709_v15 = vpop.f32.mrf.mxu1 }
 0x187   : > { %v5388_v60 = vadd.f32 %v3893_v48, %v1838_v54  ;;  %v1836_v61 = vadd.f32 %v1709_v15, %v5230_v26  ;;  %v1940_v12 = vpop.f32.mrf.mxu0 }
 0x188   : > { %v3860_v10 = vpop.f32.mrf.mxu1 }
 0x189   : > { %v5391_v56 = vadd.f32 %v1937_v30, %v1836_v61  ;;  %v1839_v11 = vadd.f32 %v3860_v10, %v5237_v13  ;;  %v3897_v62 = vpop.f32.mrf.mxu0 }
 0x18a   : > { %v1712_v22 = vpop.f32.mrf.mxu1 }
 0x18b   : > { %v5394_v43 = vadd.f32 %v3894_v63, %v1839_v11  ;;  %v1837_v58 = vadd.f32 %v1712_v22, %v5242_v53  ;;  %v1953_v0 = vpop.f32.mrf.mxu0 }
 0x18c   : > { %v3863_v38 = vpop.f32.mrf.mxu1 }
 0x18d   : > { %v5397_v45 = vadd.f32 %v1940_v12, %v1837_v58  ;;  %v1842_v16 = vadd.f32 %v3863_v38, %v5247_v23  ;;  %v3898_v6 = vpop.f32.mrf.mxu0 }
 0x18e   : > { %v1725_v26 = vpop.f32.mrf.mxu1 }
 0x18f   : > { %v5400_v18 = vadd.f32 %v3897_v62, %v1842_v16  ;;  %v1840_v5 = vadd.f32 %v1725_v26, %v5250_v55  ;;  %v1956_v42 = vpop.f32.mrf.mxu0 }
 0x190   : > { %v3864_v13 = vpop.f32.mrf.mxu1 }
 0x191   : > { %v5403_v20 = vadd.f32 %v1953_v0, %v1840_v5  ;;  %v1843_v19 = vadd.f32 %v3864_v13, %v5257_v4  ;;  %v3901_v9 = vpop.f32.mrf.mxu0 }
 0x192   : > { %v1728_v53 = vpop.f32.mrf.mxu1 }
 0x193   : > { %v5406_v21 = vadd.f32 %v3898_v6, %v1843_v19  ;;  %v1841_v33 = vadd.f32 %v1728_v53, %v5262_v17  ;;  %v1969_v24 = vpop.f32.mrf.mxu0 }
 0x194   : > { %v3867_v23 = vpop.f32.mrf.mxu1 }
 0x195   : > { %v5409_v48 = vadd.f32 %v1956_v42, %v1841_v33  ;;  %v1846_v35 = vadd.f32 %v3867_v23, %v5267_v41  ;;  %v3902_v8 = vpop.f32.mrf.mxu0 }
 0x196   : > { %v1741_v55 = vpop.f32.mrf.mxu1 }
 0x197   : > { %v5412_v36 = vadd.f32 %v3901_v9, %v1846_v35  ;;  %v1844_v30 = vadd.f32 %v1741_v55, %v5270_v31  ;;  %v1972_v44 = vpop.f32.mrf.mxu0 }
 0x198   : > { %v3868_v4 = vpop.f32.mrf.mxu1 }
 0x199   : > { %v5415_v54 = vadd.f32 %v1969_v24, %v1844_v30  ;;  %v1847_v63 = vadd.f32 %v3868_v4, %v5277_v32  ;;  %v3905_v15 = vpop.f32.mrf.mxu0 }
 0x19a   : > { %v1744_v17 = vpop.f32.mrf.mxu1 }
 0x19b   : > { %v5418_v61 = vadd.f32 %v3902_v8, %v1847_v63  ;;  %v1845_v12 = vadd.f32 %v1744_v17, %v5282_v52  ;;  %v1985_v10 = vpop.f32.mrf.mxu0 }
 0x19c   : > { %v3871_v41 = vpop.f32.mrf.mxu1 }
 0x19d   : > { %v5421_v11 = vadd.f32 %v1972_v44, %v1845_v12  ;;  %v1850_v62 = vadd.f32 %v3871_v41, %v5287_v59  ;;  %v3906_v22 = vpop.f32.mrf.mxu0 }
 0x19e   : > { %v1757_v31 = vpop.f32.mrf.mxu1 }
 0x19f   : > { %v5424_v58 = vadd.f32 %v3905_v15, %v1850_v62  ;;  %v1848_v0 = vadd.f32 %v1757_v31, %v5290_v34  ;;  %v1988_v38 = vpop.f32.mrf.mxu0 }
 0x1a0   : > { %v3872_v32 = vpop.f32.mrf.mxu1 }
 0x1a1   : > { %v5427_v16 = vadd.f32 %v1985_v10, %v1848_v0  ;;  %v1851_v6 = vadd.f32 %v3872_v32, %v5297_v46  ;;  %v3909_v26 = vpop.f32.mrf.mxu0 }
 0x1a2   : > { %v1760_v52 = vpop.f32.mrf.mxu1 }
 0x1a3   : > { %v5430_v5 = vadd.f32 %v3906_v22, %v1851_v6  ;;  %v1849_v42 = vadd.f32 %v1760_v52, %v5306_v7  ;;  %v2001_v13 = vpop.f32.mrf.mxu0 }
 0x1a4   : > { %v3875_v59 = vpop.f32.mrf.mxu1 }
 0x1a5   : > { %v5433_v19 = vadd.f32 %v1988_v38, %v1849_v42  ;;  %v1854_v9 = vadd.f32 %v3875_v59, %v5311_v47  ;;  %v3910_v53 = vpop.f32.mrf.mxu0 }
 0x1a6   : > { %v1773_v34 = vpop.f32.mrf.mxu1 }
 0x1a7   : > { %v5436_v33 = vadd.f32 %v3909_v26, %v1854_v9  ;;  %v1852_v24 = vadd.f32 %v1773_v34, %v5314_v57  ;;  %v2004_v23 = vpop.f32.mrf.mxu0 }
 0x1a8   : > { %v3876_v46 = vpop.f32.mrf.mxu1 }
 0x1a9   : > { %v5439_v35 = vadd.f32 %v2001_v13, %v1852_v24  ;;  %v1855_v8 = vadd.f32 %v3876_v46, %v5323_v1  ;;  %v3913_v55 = vpop.f32.mrf.mxu0 }
 0x1aa   : > { %v1776_v7 = vpop.f32.mrf.mxu1 }
 0x1ab   : > { %v5442_v30 = vadd.f32 %v3910_v53, %v1855_v8  ;;  %v1853_v44 = vadd.f32 %v1776_v7, %v5328_v51  ;;  %v2017_v4 = vpop.f32.mrf.mxu0 }
 0x1ac   : > { %v3879_v47 = vpop.f32.mrf.mxu1 }
 0x1ad   : > { %5935 = vst [vmem:[#allocation13_spill] sm:$0xff] %v5442_v30  ;;  %v5445_v63 = vadd.f32 %v2004_v23, %v1853_v44  ;;  %v1858_v15 = vadd.f32 %v3879_v47, %v5334_v25  ;;  %v3914_v17 = vpop.f32.mrf.mxu0 }
 0x1ae   : > { %v1789_v57 = vpop.f32.mrf.mxu1 }
 0x1af   : > { %5936 = vst [vmem:[#allocation16_spill] sm:$0xff] %v5445_v63  ;;  %v5448_v12 = vadd.f32 %v3913_v55, %v1858_v15  ;;  %v1856_v10 = vadd.f32 %v1789_v57, %v5337_v37  ;;  %v2020_v41 = vpop.f32.mrf.mxu0 }
 0x1b0   : > { %v3880_v1 = vpop.f32.mrf.mxu1 }
 0x1b1   : > { %5937 = vst [vmem:[#allocation18_spill] sm:$0xff] %v5448_v12  ;;  %v5451_v62 = vadd.f32 %v2017_v4, %v1856_v10  ;;  %v1859_v22 = vadd.f32 %v3880_v1, %v5348_v39  ;;  %v3917_v31 = vpop.f32.mrf.mxu0 }
 0x1b2   : > { %v1792_v51 = vpop.f32.mrf.mxu1 }
 0x1b3   : > { %5938 = vst [vmem:[#allocation21_spill] sm:$0xff] %v5451_v62  ;;  %v5454_v0 = vadd.f32 %v3914_v17, %v1859_v22  ;;  %v1857_v38 = vadd.f32 %v1792_v51, %v5355_v49  ;;  %v2033_v32 = vpop.f32.mrf.mxu0 }
 0x1b4   : > { %v3883_v25 = vpop.f32.mrf.mxu1 }
 0x1b5   : > { %5939 = vst [vmem:[#allocation25_spill] sm:$0xff] %v5454_v0  ;;  %v5457_v6 = vadd.f32 %v2020_v41, %v1857_v38  ;;  %v1862_v26 = vadd.f32 %v3883_v25, %v5362_v27  ;;  %v3918_v52 = vpop.f32.mrf.mxu0 }
 0x1b6   : > { %v1805_v37 = vpop.f32.mrf.mxu1 }
 0x1b7   : > { %5940 = vst [vmem:[#allocation29_spill] sm:$0xff] %v5457_v6  ;;  %v5460_v42 = vadd.f32 %v3917_v31, %v1862_v26  ;;  %v1860_v13 = vadd.f32 %v1805_v37, %v5365_v14  ;;  %v2036_v59 = vpop.f32.mrf.mxu0 }
 0x1b8   : > { %v3884_v39 = vpop.f32.mrf.mxu1 }
 0x1b9   : > { %5941 = vst [vmem:[#allocation11_spill] sm:$0xff] %v5460_v42  ;;  %v5463_v9 = vadd.f32 %v2033_v32, %v1860_v13  ;;  %v1863_v53 = vadd.f32 %v3884_v39, %v5369_v2  ;;  %v3921_v34 = vpop.f32.mrf.mxu0 }
 0x1ba   : > { %v1808_v49 = vpop.f32.mrf.mxu1 }
 0x1bb   : > { %5942 = vst [vmem:[#allocation15_spill] sm:$0xff] %v5463_v9  ;;  %v5466_v24 = vadd.f32 %v3918_v52, %v1863_v53  ;;  %v1861_v23 = vadd.f32 %v1808_v49, %v5373_v29  ;;  %v2049_v46 = vpop.f32.mrf.mxu0 }
 0x1bc   : > { %v3887_v27 = vpop.f32.mrf.mxu1 }
 0x1bd   : > { %5943 = vst [vmem:[#allocation17_spill] sm:$0xff] %v5466_v24  ;;  %v5469_v8 = vadd.f32 %v2036_v59, %v1861_v23  ;;  %v1866_v55 = vadd.f32 %v3887_v27, %v5376_v28  ;;  %v3922_v7 = vpop.f32.mrf.mxu0 }
 0x1be   : > { %v1821_v14 = vpop.f32.mrf.mxu1 }
 0x1bf   : > { %5944 = vst [vmem:[#allocation19_spill] sm:$0xff] %v5469_v8  ;;  %v5472_v44 = vadd.f32 %v3921_v34, %v1866_v55  ;;  %v1864_v4 = vadd.f32 %v1821_v14, %v5379_v3  ;;  %v2052_v47 = vpop.f32.mrf.mxu0 }
 0x1c0   : > { %v3888_v2 = vpop.f32.mrf.mxu1 }
 0x1c1   : > { %5945 = vst [vmem:[#allocation23_spill] sm:$0xff] %v5472_v44  ;;  %v5475_v15 = vadd.f32 %v2049_v46, %v1864_v4  ;;  %v1867_v17 = vadd.f32 %v3888_v2, %v5382_v40  ;;  %v5478_v57 = vpop.f32.mrf.mxu0 }
 0x1c2   : > { %v1824_v29 = vpop.f32.mrf.mxu1 }
 0x1c3   : > { %5946 = vst [vmem:[#allocation28_spill] sm:$0xff] %v5475_v15  ;;  %v5480_v10 = vadd.f32 %v3922_v7, %v1867_v17  ;;  %v1865_v41 = vadd.f32 %v1824_v29, %v5385_v50  ;;  %v5483_v28 = vpop.f32.mrf.mxu0 }
 0x1c4   : > { %v3927_v1 = vpop.f32.mrf.mxu1 }
 0x1c5   : > { %5947 = vst [vmem:[#allocation30_spill] sm:$0xff] %v5480_v10  ;;  %v5485_v22 = vadd.f32 %v2052_v47, %v1865_v41  ;;  %v5487_v31 = vpop.f32.mrf.mxu0 }
 0x1c6   : > { %v2149_v3 = vpop.f32.mrf.mxu1 }
 0x1c7   : > { %5948 = vst [vmem:[#allocation31_spill] sm:$0xff] %v5485_v22  ;;  %v5489_v51 = vpop.f32.mrf.mxu0 }
 0x1c8   : > { %v3928_v38 = vpop.f32.mrf.mxu1 }
 0x1c9   : > { %v5491_v32 = vpop.f32.mrf.mxu0 }
 0x1ca   : > { %v5493_v40 = vpop.f32.mrf.mxu1 }
 0x1cb   : > { %v5495_v25 = vpop.f32.mrf.mxu0 }
 0x1cc   : > { %v5497_v26 = vpop.f32.mrf.mxu1 }
 0x1cd   : > { %v5499_v50 = vpop.f32.mrf.mxu0 }
 0x1ce   : > { %v5501_v52 = vpop.f32.mrf.mxu1 }
 0x1cf   : > { %v5503_v37 = vpop.f32.mrf.mxu0 }
 0x1d0   : > { %v5505_v13 = vpop.f32.mrf.mxu1 }
 0x1d1   : > { %v5507_v59 = vpop.f32.mrf.mxu0 }
 0x1d2   : > { %v5509_v39 = vpop.f32.mrf.mxu1 }
 0x1d3   : > { %v5511_v53 = vpop.f32.mrf.mxu0 }
 0x1d4   : > { %v5513_v34 = vpop.f32.mrf.mxu1 }
 0x1d5   : > { %v5515_v49 = vpop.f32.mrf.mxu0 }
 0x1d6   : > { %v5517_v23 = vpop.f32.mrf.mxu1 }
 0x1d7   : > { %v5519_v46 = vpop.f32.mrf.mxu0 }
 0x1d8   : > { %v5521_v27 = vpop.f32.mrf.mxu1 }
 0x1d9   : > { %v5523_v55 = vpop.f32.mrf.mxu0 }
 0x1da   : > { %v5525_v7 = vpop.f32.mrf.mxu1 }
 0x1db   : > { %v5527_v14 = vpop.f32.mrf.mxu0 }
 0x1dc   : > { %v5529_v4 = vpop.f32.mrf.mxu1 }
 0x1dd   : > { %v5531_v47 = vpop.f32.mrf.mxu0 }
 0x1de   : > { %v5533_v2 = vpop.f32.mrf.mxu1 }
 0x1df   : > { %v5535_v17 = vpop.f32.mrf.mxu0 }
 0x1e0   : > { %v5537_v29 = vpop.f32.mrf.mxu1 }
 0x1e1   : > { %v5539_v41 = vpop.f32.mrf.mxu0 }
 0x1e2   : > { %5949 = vst [vmem:[#allocation8_spill] sm:$0xff] %v5539_v41  ;;  %v5541_v22 = vpop.f32.mrf.mxu1 }
 0x1e3   : > { %v5543_v10 = vpop.f32.mrf.mxu0 }
 0x1e4   : > { %5950 = vst [vmem:[#allocation22_spill] sm:$0xff] %v5543_v10  ;;  %v5545_v15 = vpop.f32.mrf.mxu1 }
 0x1e5   : > { %v5547_v44 = vpop.f32.mrf.mxu0 }
 0x1e6   : > { %5951 = vst [vmem:[#allocation20_spill] sm:$0xff] %v5547_v44  ;;  %v5549_v8 = vpop.f32.mrf.mxu1 }
 0x1e7   : > { %v5551_v24 = vpop.f32.mrf.mxu0 }
 0x1e8   : > { %5952 = vst [vmem:[#allocation26_spill] sm:$0xff] %v5551_v24  ;;  %v5553_v9 = vpop.f32.mrf.mxu1 }
 0x1e9   : > { %5953 = vst [vmem:[#allocation24_spill] sm:$0xff] %v5553_v9  ;;  %v5555_v42 = vpop.f32.mrf.mxu0 }
 0x1ea   : > { %5954 = vst [vmem:[#allocation27_spill] sm:$0xff] %v5555_v42  ;;  %v5557_v6 = vpop.f32.mrf.mxu1 }
 0x1eb   : > { %5955 = vst [vmem:[#allocation9_spill] sm:$0xff] %v5557_v6  ;;  %v5559_v0 = vpop.f32.mrf.mxu0 }
 0x1ec   : > { %5956 = vst [vmem:[#allocation10_spill] sm:$0xff] %v5559_v0  ;;  %v5561_v62 = vpop.f32.mrf.mxu1 }
 0x1ed   : > { %5957 = vst [vmem:[#allocation12_spill] sm:$0xff] %v5561_v62  ;;  %v5563_v12 = vpop.f32.mrf.mxu0 }
 0x1ee   : > { %5958 = vst [vmem:[#allocation14_spill] sm:$0xff] %v5563_v12  ;;  %v5565_v63 = vpop.f32.mrf.mxu1 }
 0x1ef   : > { %5959 = vst [vmem:[#allocation32_spill] sm:$0xff] %v5565_v63  ;;  %v5567_v10 = vpop.f32.mrf.mxu0 }
 0x1f0   : > { %5960 = vst [vmem:[#allocation33_spill] sm:$0xff] %v5567_v10  ;;  %v5569_v44 = vpop.f32.mrf.mxu1 }
 0x1f1   : > { %5961 = vst [vmem:[#allocation34_spill] sm:$0xff] %v5569_v44  ;;  %v5571_v30 = vpop.f32.mrf.mxu0 }
 0x1f2   : > { %5962 = vst [vmem:[#allocation35_spill] sm:$0xff] %v5571_v30  ;;  %v5573_v24 = vpop.f32.mrf.mxu1 }
 0x1f3   : > { %5963 = vst [vmem:[#allocation36_spill] sm:$0xff] %v5573_v24  ;;  %v5575_v9 = vpop.f32.mrf.mxu0 }
 0x1f4   : > { %5964 = vst [vmem:[#allocation37_spill] sm:$0xff] %v5575_v9  ;;  %v5577_v42 = vpop.f32.mrf.mxu1 }
 0x1f5   : > { %5965 = vst [vmem:[#allocation38_spill] sm:$0xff] %v5577_v42  ;;  %v5579_v6 = vpop.f32.mrf.mxu0 }
 0x1f6   : > { %5966 = vst [vmem:[#allocation39_spill] sm:$0xff] %v5579_v6  ;;  %v5581_v0 = vpop.f32.mrf.mxu1  ;;  %v2278_v6 = vadd.f32 %v3927_v1, %v5388_v60  ;;  %v2277_v60 = vadd.f32 %v5493_v40, %v5397_v45 }
 0x1f7   : > { %5967 = vst [vmem:[#allocation40_spill] sm:$0xff] %v5581_v0  ;;  %v5583_v62 = vpop.f32.mrf.mxu0 }
 0x1f8   : > { %5968 = vst [vmem:[#allocation41_spill] sm:$0xff] %v5583_v62  ;;  %v5585_v12 = vpop.f32.mrf.mxu1  ;;  %v2276_v62 = vadd.f32 %v2149_v3, %v5391_v56 }
 0x1f9   : > { %5969 = vst [vmem:[#allocation42_spill] sm:$0xff] %v5585_v12  ;;  %v5587_v63 = vpop.f32.mrf.mxu0 }
 0x1fa   : > { %5970 = vst [vmem:[#allocation43_spill] sm:$0xff] %v5587_v63  ;;  %v5589_v10 = vpop.f32.mrf.mxu1 }
 0x1fb   : > { %5971 = vst [vmem:[#allocation44_spill] sm:$0xff] %v5589_v10  ;;  %v5591_v44 = vpop.f32.mrf.mxu0  ;;  %v2484_v10 = vadd.f32 %v5478_v57, %v2278_v6  ;;  %v2280_v57 = vadd.f32 %v5501_v52, %v5403_v20 }
 0x1fc   : > { %5972 = vst [vmem:[#allocation45_spill] sm:$0xff] %v5591_v44  ;;  %v5593_v30 = vpop.f32.mrf.mxu1  ;;  %v2279_v44 = vadd.f32 %v3928_v38, %v5394_v43  ;;  %v2282_v43 = vadd.f32 %v5497_v26, %v5400_v18 }
 0x1fd   : > { %5973 = vst [vmem:[#allocation46_spill] sm:$0xff] %v5593_v30  ;;  %v5595_v24 = vpop.f32.mrf.mxu0 }
 0x1fe   : > { %5974 = vst [vmem:[#allocation47_spill] sm:$0xff] %v5595_v24  ;;  %v5597_v9 = vpop.f32.mrf.mxu1  ;;  %v2485_v3 = vadd.f32 %v5487_v31, %v2279_v44  ;;  %v2488_v20 = vadd.f32 %v5491_v32, %v2282_v43 }
 0x1ff   : > { %5975 = vst [vmem:[#allocation48_spill] sm:$0xff] %v5597_v9  ;;  %v5600_v42 = vpop.f32.mrf.mxu0  ;;  %v2482_v9 = vadd.f32 %v5483_v28, %v2276_v62  ;;  %v2483_v28 = vadd.f32 %v5489_v51, %v2277_v60  ;;  %v2486_v51 = vadd.f32 %v5495_v25, %v2280_v57 }
 0x200   : > { %5976 = vst [vmem:[#allocation49_spill] sm:$0xff] %v5600_v42  ;;  %v5602_v0 = vpop.f32.mrf.mxu1 }
 0x201   : > { %5977 = vst [vmem:[#allocation50_spill] sm:$0xff] %v5602_v0  ;;  %v4029_v12 = vpop.f32.mrf.mxu0  ;;  %v5612_v0 = vld [vmem:[#allocation4] ss:$0 sm:$0xff] }
 0x202   : > { %v5605_v63 = vpop.f32.mrf.mxu1 }
 0x203   : > { %5978 = vst [vmem:[#allocation51_spill] sm:$0xff] %v5605_v63  ;;  %v2795_v30 = vpop.f32.mrf.mxu0 }
 0x204   : > { %v3995_v24 = vpop.f32.mrf.mxu1 }
 0x205   : > { %v2712_v1 = vadd.f32 %v3995_v24, %v2484_v10  ;;  %v4030_v42 = vpop.f32.mrf.mxu0 }
 0x206   : > { %v2583_v56 = vpop.f32.mrf.mxu1 }
 0x207   : > { %v2924_v63 = vadd.f32 %v4029_v12, %v2712_v1  ;;  %v2710_v41 = vadd.f32 %v2583_v56, %v2482_v9  ;;  %v2798_v6 = vpop.f32.mrf.mxu0  ;;  %v2283_v12 = vadd.f32 %v5505_v13, %v5406_v21 }
 0x208   : > { %v3996_v62 = vpop.f32.mrf.mxu1 }
 0x209   : > { %v2963_v45 = vadd.f32 %v5612_v0, %v2924_v63  ;;  %v2922_v24 = vadd.f32 %v2795_v30, %v2710_v41  ;;  %v2713_v10 = vadd.f32 %v3996_v62, %v2485_v3  ;;  %v4033_v38 = vpop.f32.mrf.mxu0  ;;  %v2281_v63 = vadd.f32 %v5509_v39, %v5409_v48 }
 0x20a   : > { %v2586_v9 = vpop.f32.mrf.mxu1  ;;  %v2489_v25 = vadd.f32 %v5499_v50, %v2283_v12  ;;  %v2286_v48 = vadd.f32 %v5513_v34, %v5412_v36  ;;  %v2287_v12 = vadd.f32 %v5521_v27, %v5418_v61 }
 0x20b   : > { %v2995_v44 = vmax.f32 %v2963_v45, 0.0  ;;  %v2961_v31 = vadd.f32 %v5612_v0, %v2922_v24  ;;  %v2925_v18 = vadd.f32 %v4030_v42, %v2713_v10  ;;  %v2711_v40 = vadd.f32 %v2586_v9, %v2483_v28  ;;  %v2811_v26 = vpop.f32.mrf.mxu0 }
 0x20c   : > { %v3999_v21 = vpop.f32.mrf.mxu1  ;;  %v2487_v57 = vadd.f32 %v5503_v37, %v2281_v63  ;;  %v2492_v24 = vadd.f32 %v5507_v59, %v2286_v48  ;;  %v2284_v10 = vadd.f32 %v5517_v23, %v5415_v54  ;;  %v2285_v59 = vadd.f32 %v5525_v7, %v5421_v11 }
 0x20d   : > { %v3570_v30 = vpack.c.bf16 %v2995_v44, %v2995_v44  ;;  %v2993_v52 = vmax.f32 %v2961_v31, 0.0  ;;  %v2964_v42 = vadd.f32 %v5612_v0, %v2925_v18  ;;  %v2923_v13 = vadd.f32 %v2798_v6, %v2711_v40  ;;  %v4034_v32 = vpop.f32.mrf.mxu0 }
 0x20e   : > { %v2716_v39 = vadd.f32 %v3999_v21, %v2488_v20  ;;  %v2599_v41 = vpop.f32.mrf.mxu1  ;;  %v2490_v63 = vadd.f32 %v5511_v53, %v2284_v10  ;;  %v2493_v21 = vadd.f32 %v5515_v49, %v2287_v12  ;;  %v2491_v48 = vadd.f32 %v5519_v46, %v2285_v59 }
 0x20f   : > { %3156 = vst.msk [vmem:[%s5632_s15 + $0x8] sm:$0xf] %vm3153_vm8, %v3570_v30  ;;  %v3568_v60 = vpack.c.bf16 %v2993_v52, %v2993_v52  ;;  %v2996_v1 = vmax.f32 %v2964_v42, 0.0  ;;  %v2962_v56 = vadd.f32 %v5612_v0, %v2923_v13  ;;  %v2714_v3 = vadd.f32 %v2599_v41, %v2486_v51  ;;  %v2814_v43 = vpop.f32.mrf.mxu0 }
 0x210   : > { %v2928_v6 = vadd.f32 %v4033_v38, %v2716_v39  ;;  %v4000_v62 = vpop.f32.mrf.mxu1  ;;  %v2290_v30 = vadd.f32 %v5529_v4, %v5424_v58  ;;  %v2288_v39 = vadd.f32 %v5533_v2, %v5427_v16 }
 0x211   : > { %3154 = vst.msk [vmem:[%s5632_s15] sm:$0xf] %vm3153_vm8, %v3568_v60  ;;  %v3571_v50 = vpack.c.bf16 %v2996_v1, %v2996_v1  ;;  %v2994_v28 = vmax.f32 %v2962_v56, 0.0  ;;  %v2926_v36 = vadd.f32 %v2811_v26, %v2714_v3  ;;  %v2717_v34 = vadd.f32 %v4000_v62, %v2489_v25  ;;  %v4037_v45 = vpop.f32.mrf.mxu0 }
 0x212   : > { %v2967_v37 = vadd.f32 %v5612_v0, %v2928_v6  ;;  %v2602_v38 = vpop.f32.mrf.mxu1  ;;  %v2496_v56 = vadd.f32 %v5523_v55, %v2290_v30  ;;  %v2494_v62 = vadd.f32 %v5527_v14, %v2288_v39  ;;  %v2294_v14 = vadd.f32 %v5545_v15, %v5436_v33 }
 0x213   : > { %3157 = vst.msk [vmem:[%s5632_s15 + $0xc] sm:$0xf] %vm3153_vm8, %v3571_v50  ;;  %v3569_v9 = vpack.c.bf16 %v2994_v28, %v2994_v28  ;;  %v2965_v44 = vadd.f32 %v5612_v0, %v2926_v36  ;;  %v2929_v31 = vadd.f32 %v4034_v32, %v2717_v34  ;;  %v2715_v18 = vadd.f32 %v2602_v38, %v2487_v57  ;;  %v2827_v40 = vpop.f32.mrf.mxu0 }
 0x214   : > { %v2999_v26 = vmax.f32 %v2967_v37, 0.0  ;;  %v4003_v20 = vpop.f32.mrf.mxu1  ;;  %v2291_v50 = vadd.f32 %v5537_v29, %v5430_v5  ;;  %v2289_v28 = vadd.f32 %v5541_v22, %v5433_v19 }
 0x215   : > { %3155 = vst.msk [vmem:[%s5632_s15 + $0x4] sm:$0xf] %vm3153_vm8, %v3569_v9  ;;  %v2997_v54 = vmax.f32 %v2965_v44, 0.0  ;;  %v2968_v61 = vadd.f32 %v5612_v0, %v2929_v31  ;;  %v2927_v23 = vadd.f32 %v2814_v43, %v2715_v18  ;;  %v2720_v27 = vadd.f32 %v4003_v20, %v2492_v24  ;;  %v4038_v51 = vpop.f32.mrf.mxu0 }
 0x216   : > { %v3574_v11 = vpack.c.bf16 %v2999_v26, %v2999_v26  ;;  %v2615_v7 = vpop.f32.mrf.mxu1  ;;  %v2497_v44 = vadd.f32 %v5531_v47, %v2291_v50  ;;  %v2495_v31 = vadd.f32 %v5535_v17, %v2289_v28  ;;  %v2292_v18 = vadd.f32 %v5549_v8, %v5439_v35  ;;  %v5988_v50 = vld [vmem:[#allocation21_spill] sm:$0xff]  ;;  %v5989_v28 = vld [vmem:[#allocation32_spill] sm:$0xff] }
 0x217   : > { %v3572_v52 = vpack.c.bf16 %v2997_v54, %v2997_v54  ;;  %v3000_v42 = vmax.f32 %v2968_v61, 0.0  ;;  %v2966_v13 = vadd.f32 %v5612_v0, %v2927_v23  ;;  %v2932_v32 = vadd.f32 %v4037_v45, %v2720_v27  ;;  %v2830_v25 = vpop.f32.mrf.mxu0  ;;  %v5979_v61 = vld [vmem:[#allocation8_spill] sm:$0xff]  ;;  %v5980_v27 = vld [vmem:[#allocation13_spill] sm:$0xff] }
 0x218   : > { %3160 = vst.msk [vmem:[%s5632_s15 + $0x18] sm:$0xf] %vm3153_vm8, %v3574_v11  ;;  %v2718_v53 = vadd.f32 %v2615_v7, %v2490_v63  ;;  %v4004_v49 = vpop.f32.mrf.mxu1  ;;  %v2500_v23 = vadd.f32 %v5979_v61, %v2294_v14  ;;  %v5982_v7 = vld [vmem:[#allocation22_spill] sm:$0xff]  ;;  %v5996_v61 = vld [vmem:[#allocation36_spill] sm:$0xff] }
 0x219   : > { %3158 = vst.msk [vmem:[%s5632_s15 + $0x10] sm:$0xf] %vm3153_vm8, %v3572_v52  ;;  %v3575_v58 = vpack.c.bf16 %v3000_v42, %v3000_v42  ;;  %v2998_v4 = vmax.f32 %v2966_v13, 0.0  ;;  %v2971_v41 = vadd.f32 %v5612_v0, %v2932_v32  ;;  %v2721_v60 = vadd.f32 %v4004_v49, %v2493_v21  ;;  %v4041_v1 = vpop.f32.mrf.mxu0  ;;  %v5983_v49 = vld [vmem:[#allocation20_spill] sm:$0xff] }
 0x21a   : > { %v2930_v3 = vadd.f32 %v2827_v40, %v2718_v53  ;;  %v2618_v46 = vpop.f32.mrf.mxu1  ;;  %v2498_v52 = vadd.f32 %v5982_v7, %v2292_v18 }
 0x21b   : > { %3161 = vst.msk [vmem:[%s5632_s15 + $0x1c] sm:$0xf] %vm3153_vm8, %v3575_v58  ;;  %v3573_v16 = vpack.c.bf16 %v2998_v4, %v2998_v4  ;;  %v3003_v2 = vmax.f32 %v2971_v41, 0.0  ;;  %v2933_v43 = vadd.f32 %v4038_v51, %v2721_v60  ;;  %v2719_v57 = vadd.f32 %v2618_v46, %v2491_v48  ;;  %v2843_v6 = vpop.f32.mrf.mxu0  ;;  %v5981_v51 = vld [vmem:[#allocation24_spill] sm:$0xff]  ;;  %v5985_v41 = vld [vmem:[#allocation9_spill] sm:$0xff] }
 0x21c   : > { %v2969_v55 = vadd.f32 %v5612_v0, %v2930_v3  ;;  %v4007_v36 = vpop.f32.mrf.mxu1  ;;  %v2295_v63 = vadd.f32 %v5981_v51, %v5980_v27  ;;  %v5984_v4 = vld [vmem:[#allocation16_spill] sm:$0xff] }
 0x21d   : > { %3159 = vst.msk [vmem:[%s5632_s15 + $0x14] sm:$0xf] %vm3153_vm8, %v3573_v16  ;;  %v3578_v34 = vpack.c.bf16 %v3003_v2, %v3003_v2  ;;  %v2972_v45 = vadd.f32 %v5612_v0, %v2933_v43  ;;  %v2931_v24 = vadd.f32 %v2830_v25, %v2719_v57  ;;  %v2724_v10 = vadd.f32 %v4007_v36, %v2496_v56  ;;  %v4042_v12 = vpop.f32.mrf.mxu0  ;;  %v5987_v56 = vld [vmem:[#allocation12_spill] sm:$0xff] }
 0x21e   : > { %v3001_v37 = vmax.f32 %v2969_v55, 0.0  ;;  %v2631_v38 = vpop.f32.mrf.mxu1  ;;  %v2501_v58 = vadd.f32 %v5983_v49, %v2295_v63  ;;  %v2293_v60 = vadd.f32 %v5985_v41, %v5984_v4  ;;  %v2296_v55 = vadd.f32 %v5989_v28, %v5988_v50  ;;  %v6000_v49 = vld [vmem:[#allocation38_spill] sm:$0xff]  ;;  %v6001_v4 = vld [vmem:[#allocation15_spill] sm:$0xff]  ;;  %v6002_v41 = vld [vmem:[#allocation40_spill] sm:$0xff] }
 0x21f   : > { %3164 = vst.msk [vmem:[%s5632_s15 + $0x28] sm:$0xf] %vm3153_vm8, %v3578_v34  ;;  %v3004_v5 = vmax.f32 %v2972_v45, 0.0  ;;  %v2970_v19 = vadd.f32 %v5612_v0, %v2931_v24  ;;  %v2936_v22 = vadd.f32 %v4041_v1, %v2724_v10  ;;  %v2722_v29 = vadd.f32 %v2631_v38, %v2494_v62  ;;  %v2846_v9 = vpop.f32.mrf.mxu0  ;;  %v5986_v1 = vld [vmem:[#allocation18_spill] sm:$0xff] }
 0x220   : > { %v3576_v33 = vpack.c.bf16 %v3001_v37, %v3001_v37  ;;  %v4008_v15 = vpop.f32.mrf.mxu1  ;;  %v2298_v3 = vadd.f32 %v5987_v56, %v5986_v1  ;;  %v5990_v37 = vld [vmem:[#allocation26_spill] sm:$0xff] }
 0x221   : > { %v3579_v40 = vpack.c.bf16 %v3004_v5, %v3004_v5  ;;  %v3002_v59 = vmax.f32 %v2970_v19, 0.0  ;;  %v2975_v26 = vadd.f32 %v5612_v0, %v2936_v22  ;;  %v2934_v20 = vadd.f32 %v2843_v6, %v2722_v29  ;;  %v4045_v54 = vpop.f32.mrf.mxu0  ;;  %v5991_v5 = vld [vmem:[#allocation27_spill] sm:$0xff]  ;;  %v5992_v22 = vld [vmem:[#allocation25_spill] sm:$0xff]  ;;  %v5993_v29 = vld [vmem:[#allocation34_spill] sm:$0xff] }
 0x222   : > { %3162 = vst.msk [vmem:[%s5632_s15 + $0x20] sm:$0xf] %vm3153_vm8, %v3576_v33  ;;  %v2725_v47 = vadd.f32 %v4008_v15, %v2497_v44  ;;  %v2634_v17 = vpop.f32.mrf.mxu1  ;;  %v2499_v38 = vadd.f32 %v5990_v37, %v2293_v60  ;;  %v2504_v19 = vadd.f32 %v5991_v5, %v2298_v3  ;;  %v2300_v60 = vadd.f32 %v6002_v41, %v6001_v4  ;;  %v6008_v5 = vld [vmem:[#allocation44_spill] sm:$0xff] }
 0x223   : > { %3165 = vst.msk [vmem:[%s5632_s15 + $0x2c] sm:$0xf] %vm3153_vm8, %v3579_v40  ;;  %v3577_v35 = vpack.c.bf16 %v3002_v59, %v3002_v59  ;;  %v3007_v8 = vmax.f32 %v2975_v26, 0.0  ;;  %v2973_v21 = vadd.f32 %v5612_v0, %v2934_v20  ;;  %v2723_v30 = vadd.f32 %v2634_v17, %v2495_v31  ;;  %v2859_v11 = vpop.f32.mrf.mxu0  ;;  %v5994_v26 = vld [vmem:[#allocation10_spill] sm:$0xff] }
 0x224   : > { %v2937_v42 = vadd.f32 %v4042_v12, %v2725_v47  ;;  %v4011_v13 = vpop.f32.mrf.mxu1  ;;  %v2502_v20 = vadd.f32 %v5994_v26, %v2296_v55  ;;  %v6011_v26 = vld [vmem:[#allocation46_spill] sm:$0xff] }
 0x225   : > { %3163 = vst.msk [vmem:[%s5632_s15 + $0x24] sm:$0xf] %vm3153_vm8, %v3577_v35  ;;  %v3582_v32 = vpack.c.bf16 %v3007_v8, %v3007_v8  ;;  %v3005_v25 = vmax.f32 %v2973_v21, 0.0  ;;  %v2935_v48 = vadd.f32 %v2846_v9, %v2723_v30  ;;  %v2728_v39 = vadd.f32 %v4011_v13, %v2500_v23  ;;  %v4046_v53 = vpop.f32.mrf.mxu0  ;;  %v5997_v21 = vld [vmem:[#allocation14_spill] sm:$0xff] }
 0x226   : > { %v2976_v46 = vadd.f32 %v5612_v0, %v2937_v42  ;;  %v2647_v16 = vpop.f32.mrf.mxu1  ;;  %v2299_v9 = vadd.f32 %v5993_v29, %v5992_v22 }
 0x227   : > { %3168 = vst.msk [vmem:[%s5632_s15 + $0x38] sm:$0xf] %vm3153_vm8, %v3582_v32  ;;  %v3580_v2 = vpack.c.bf16 %v3005_v25, %v3005_v25  ;;  %v2974_v43 = vadd.f32 %v5612_v0, %v2935_v48  ;;  %v2940_v57 = vadd.f32 %v4045_v54, %v2728_v39  ;;  %v2726_v6 = vadd.f32 %v2647_v16, %v2498_v52  ;;  %v2862_v62 = vpop.f32.mrf.mxu0  ;;  %v5995_v54 = vld [vmem:[#allocation29_spill] sm:$0xff] }
 0x228   : > { %v3008_v36 = vmax.f32 %v2976_v46, 0.0  ;;  %v4012_v34 = vpop.f32.mrf.mxu1  ;;  %v2297_v23 = vadd.f32 %v5996_v61, %v5995_v54  ;;  %v2505_v30 = vadd.f32 %v5997_v21, %v2299_v9  ;;  %v5998_v48 = vld [vmem:[#allocation33_spill] sm:$0xff] }
 0x229   : > { %3166 = vst.msk [vmem:[%s5632_s15 + $0x30] sm:$0xf] %vm3153_vm8, %v3580_v2  ;;  %v3006_v45 = vmax.f32 %v2974_v43, 0.0  ;;  %v2979_v24 = vadd.f32 %v5612_v0, %v2940_v57  ;;  %v2938_v10 = vadd.f32 %v2859_v11, %v2726_v6  ;;  %v2729_v12 = vadd.f32 %v4012_v34, %v2501_v58  ;;  %v4049_v14 = vpop.f32.mrf.mxu0  ;;  %v6003_v57 = vld [vmem:[#allocation17_spill] sm:$0xff]  ;;  %v6004_v6 = vld [vmem:[#allocation42_spill] sm:$0xff] }
 0x22a   : > { %v3583_v44 = vpack.c.bf16 %v3008_v36, %v3008_v36  ;;  %v2650_v31 = vpop.f32.mrf.mxu1  ;;  %v2503_v39 = vadd.f32 %v5998_v48, %v2297_v23  ;;  %v6015_v48 = vld [vmem:[#allocation48_spill] sm:$0xff] }
 0x22b   : > { %v3581_v18 = vpack.c.bf16 %v3006_v45, %v3006_v45  ;;  %v3011_v33 = vmax.f32 %v2979_v24, 0.0  ;;  %v2977_v15 = vadd.f32 %v5612_v0, %v2938_v10  ;;  %v2941_v40 = vadd.f32 %v4046_v53, %v2729_v12  ;;  %v2875_v59 = vpop.f32.mrf.mxu0  ;;  %v5999_v53 = vld [vmem:[#allocation11_spill] sm:$0xff] }
 0x22c   : > { %3169 = vst.msk [vmem:[%s5632_s15 + $0x3c] sm:$0xf] %vm3153_vm8, %v3583_v44  ;;  %v2727_v27 = vadd.f32 %v2650_v31, %v2499_v38  ;;  %v4015_v51 = vpop.f32.mrf.mxu1  ;;  %v2302_v58 = vadd.f32 %v6000_v49, %v5999_v53  ;;  %v6005_v10 = vld [vmem:[#allocation35_spill] sm:$0xff]  ;;  %v6016_v53 = vld [vmem:[#allocation30_spill] sm:$0xff] }
 0x22d   : > { %3167 = vst.msk [vmem:[%s5632_s15 + $0x34] sm:$0xf] %vm3153_vm8, %v3581_v18  ;;  %v3586_v63 = vpack.c.bf16 %v3011_v33, %v3011_v33  ;;  %v3009_v47 = vmax.f32 %v2977_v15, 0.0  ;;  %v2980_v17 = vadd.f32 %v5612_v0, %v2941_v40  ;;  %v2732_v35 = vadd.f32 %v4015_v51, %v2504_v19  ;;  %v4050_v8 = vpop.f32.mrf.mxu0  ;;  %v6007_v38 = vld [vmem:[#allocation19_spill] sm:$0xff]  ;;  %v6017_v49 = vld [vmem:[#allocation50_spill] sm:$0xff] }
 0x22e   : > { %v2939_v11 = vadd.f32 %v2862_v62, %v2727_v27  ;;  %v2663_v7 = vpop.f32.mrf.mxu1  ;;  %v2303_v62 = vadd.f32 %v6004_v6, %v6003_v57  ;;  %v2508_v12 = vadd.f32 %v6005_v10, %v2302_v58  ;;  %v2301_v19 = vadd.f32 %v6008_v5, %v6007_v38  ;;  %v6009_v15 = vld [vmem:[#allocation39_spill] sm:$0xff] }
 0x22f   : > { %3172 = vst.msk [vmem:[%s5632_s15 + $0x48] sm:$0xf] %vm3153_vm8, %v3586_v63  ;;  %v3584_v52 = vpack.c.bf16 %v3009_v47, %v3009_v47  ;;  %v3012_v42 = vmax.f32 %v2980_v17, 0.0  ;;  %v2944_v13 = vadd.f32 %v4049_v14, %v2732_v35  ;;  %v2730_v32 = vadd.f32 %v2663_v7, %v2502_v20  ;;  %v2878_v25 = vpop.f32.mrf.mxu0  ;;  %v6006_v14 = vld [vmem:[#allocation37_spill] sm:$0xff] }
 0x230   : > { %v2978_v1 = vadd.f32 %v5612_v0, %v2939_v11  ;;  %v4016_v56 = vpop.f32.mrf.mxu1  ;;  %v2506_v37 = vadd.f32 %v6006_v14, %v2300_v60  ;;  %v2509_v40 = vadd.f32 %v6009_v15, %v2303_v62  ;;  %v6012_v17 = vld [vmem:[#allocation41_spill] sm:$0xff]  ;;  %v2307_v58 = vadd.f32 %v6017_v49, %v6016_v53 }
 0x231   : > { %3170 = vst.msk [vmem:[%s5632_s15 + $0x40] sm:$0xf] %vm3153_vm8, %v3584_v52  ;;  %v3587_v3 = vpack.c.bf16 %v3012_v42, %v3012_v42  ;;  %v2983_v46 = vadd.f32 %v5612_v0, %v2944_v13  ;;  %v2942_v16 = vadd.f32 %v2875_v59, %v2730_v32  ;;  %v2733_v2 = vadd.f32 %v4016_v56, %v2505_v30  ;;  %v4053_v43 = vpop.f32.mrf.mxu0  ;;  %v6010_v59 = vld [vmem:[#allocation23_spill] sm:$0xff] }
 0x232   : > { %v3010_v50 = vmax.f32 %v2978_v1, 0.0  ;;  %v2666_v28 = vpop.f32.mrf.mxu1  ;;  %v2306_v20 = vadd.f32 %v6011_v26, %v6010_v59  ;;  %v2507_v35 = vadd.f32 %v6012_v17, %v2301_v19  ;;  %v6013_v13 = vld [vmem:[#allocation43_spill] sm:$0xff]  ;;  %v6022_v19 = vld [vmem:[#allocation49_spill] sm:$0xff] }
 0x233   : > { %3173 = vst.msk [vmem:[%s5632_s15 + $0x4c] sm:$0xf] %vm3153_vm8, %v3587_v3  ;;  %v3015_v55 = vmax.f32 %v2983_v46, 0.0  ;;  %v2981_v36 = vadd.f32 %v5612_v0, %v2942_v16  ;;  %v2945_v34 = vadd.f32 %v4050_v8, %v2733_v2  ;;  %v2731_v45 = vadd.f32 %v2666_v28, %v2503_v39  ;;  %v2891_v24 = vpop.f32.mrf.mxu0  ;;  %v6018_v46 = vld [vmem:[#allocation31_spill] sm:$0xff] }
 0x234   : > { %v3585_v22 = vpack.c.bf16 %v3010_v50, %v3010_v50  ;;  %v4019_v29 = vpop.f32.mrf.mxu1  ;;  %v2512_v32 = vadd.f32 %v6013_v13, %v2306_v20  ;;  %v6019_v16 = vld [vmem:[#allocation51_spill] sm:$0xff] }
 0x235   : > { %v3590_v9 = vpack.c.bf16 %v3015_v55, %v3015_v55  ;;  %v3013_v44 = vmax.f32 %v2981_v36, 0.0  ;;  %v2984_v31 = vadd.f32 %v5612_v0, %v2945_v34  ;;  %v2943_v18 = vadd.f32 %v2878_v25, %v2731_v45  ;;  %v4054_v33 = vpop.f32.mrf.mxu0  ;;  %v6014_v25 = vld [vmem:[#allocation28_spill] sm:$0xff]  ;;  %v6020_v36 = vld [vmem:[#allocation45_spill] sm:$0xff]  ;;  %v6021_v45 = vld [vmem:[#allocation47_spill] sm:$0xff] }
 0x236   : > { %3171 = vst.msk [vmem:[%s5632_s15 + $0x44] sm:$0xf] %vm3153_vm8, %v3585_v22  ;;  %v2736_v54 = vadd.f32 %v4019_v29, %v2508_v12  ;;  %v2679_v61 = vpop.f32.mrf.mxu1  ;;  %v2304_v39 = vadd.f32 %v6015_v48, %v6014_v25  ;;  %v2305_v2 = vadd.f32 %v6019_v16, %v6018_v46 }
 0x237   : > { %3176 = vst.msk [vmem:[%s5632_s15 + $0x58] sm:$0xf] %vm3153_vm8, %v3590_v9  ;;  %v3588_v23 = vpack.c.bf16 %v3013_v44, %v3013_v44  ;;  %v3016_v27 = vmax.f32 %v2984_v31, 0.0  ;;  %v2982_v51 = vadd.f32 %v5612_v0, %v2943_v18  ;;  %v2734_v63 = vadd.f32 %v2679_v61, %v2506_v37  ;;  %v2894_v47 = vpop.f32.mrf.mxu0 }
 0x238   : > { %v2948_v8 = vadd.f32 %v4053_v43, %v2736_v54  ;;  %v4020_v21 = vpop.f32.mrf.mxu1  ;;  %v2510_v34 = vadd.f32 %v6020_v36, %v2304_v39  ;;  %v2511_v22 = vadd.f32 %v6022_v19, %v2305_v2 }
 0x239   : > { %3174 = vst.msk [vmem:[%s5632_s15 + $0x50] sm:$0xf] %vm3153_vm8, %v3588_v23  ;;  %v3591_v30 = vpack.c.bf16 %v3016_v27, %v3016_v27  ;;  %v3014_v11 = vmax.f32 %v2982_v51, 0.0  ;;  %v2946_v7 = vadd.f32 %v2891_v24, %v2734_v63  ;;  %v2737_v52 = vadd.f32 %v4020_v21, %v2509_v40  ;;  %v4057_v42 = vpop.f32.mrf.mxu0 }
 0x23a   : > { %v2987_v4 = vadd.f32 %v5612_v0, %v2948_v8  ;;  %v2682_v41 = vpop.f32.mrf.mxu1  ;;  %v2513_v24 = vadd.f32 %v6021_v45, %v2307_v58 }
 0x23b   : > { %3177 = vst.msk [vmem:[%s5632_s15 + $0x5c] sm:$0xf] %vm3153_vm8, %v3591_v30  ;;  %v3589_v60 = vpack.c.bf16 %v3014_v11, %v3014_v11  ;;  %v2985_v1 = vadd.f32 %v5612_v0, %v2946_v7  ;;  %v2949_v56 = vadd.f32 %v4054_v33, %v2737_v52  ;;  %v2735_v3 = vadd.f32 %v2682_v41, %v2507_v35  ;;  %v2907_v6 = vpop.f32.mrf.mxu0 }
 0x23c   : > { %v3019_v43 = vmax.f32 %v2987_v4, 0.0  ;;  %v4023_v57 = vpop.f32.mrf.mxu1 }
 0x23d   : > { %3175 = vst.msk [vmem:[%s5632_s15 + $0x54] sm:$0xf] %vm3153_vm8, %v3589_v60  ;;  %v3017_v62 = vmax.f32 %v2985_v1, 0.0  ;;  %v2988_v50 = vadd.f32 %v5612_v0, %v2949_v56  ;;  %v2947_v28 = vadd.f32 %v2894_v47, %v2735_v3  ;;  %v2740_v55 = vadd.f32 %v4023_v57, %v2512_v32  ;;  %v4058_v44 = vpop.f32.mrf.mxu0 }
 0x23e   : > { %v3594_v10 = vpack.c.bf16 %v3019_v43, %v3019_v43  ;;  %v2695_v12 = vpop.f32.mrf.mxu1 }
 0x23f   : > { %v3592_v14 = vpack.c.bf16 %v3017_v62, %v3017_v62  ;;  %v3020_v37 = vmax.f32 %v2988_v50, 0.0  ;;  %v2986_v38 = vadd.f32 %v5612_v0, %v2947_v28  ;;  %v2952_v5 = vadd.f32 %v4057_v42, %v2740_v55  ;;  %v2910_v27 = vpop.f32.mrf.mxu0 }
 0x240   : > { %3180 = vst.msk [vmem:[%s5632_s15 + $0x68] sm:$0xf] %vm3153_vm8, %v3594_v10  ;;  %v2738_v29 = vadd.f32 %v2695_v12, %v2510_v34  ;;  %v4024_v9 = vpop.f32.mrf.mxu1 }
 0x241   : > { %3178 = vst.msk [vmem:[%s5632_s15 + $0x60] sm:$0xf] %vm3153_vm8, %v3592_v14  ;;  %v3595_v31 = vpack.c.bf16 %v3020_v37, %v3020_v37  ;;  %v3018_v18 = vmax.f32 %v2986_v38, 0.0  ;;  %v2991_v33 = vadd.f32 %v5612_v0, %v2952_v5  ;;  %v2741_v15 = vadd.f32 %v4024_v9, %v2513_v24 }
 0x242   : > { %v2950_v40 = vadd.f32 %v2907_v6, %v2738_v29  ;;  %v2698_v59 = vpop.f32.mrf.mxu1 }
 0x243   : > { %3181 = vst.msk [vmem:[%s5632_s15 + $0x6c] sm:$0xf] %vm3153_vm8, %v3595_v31  ;;  %v3593_v26 = vpack.c.bf16 %v3018_v18, %v3018_v18  ;;  %v3023_v20 = vmax.f32 %v2991_v33, 0.0  ;;  %v2953_v54 = vadd.f32 %v4058_v44, %v2741_v15  ;;  %v2739_v61 = vadd.f32 %v2698_v59, %v2511_v22 }
 0x244   : > { %v2989_v23 = vadd.f32 %v5612_v0, %v2950_v40 }
 0x245   : > { %3179 = vst.msk [vmem:[%s5632_s15 + $0x64] sm:$0xf] %vm3153_vm8, %v3593_v26  ;;  %v3598_v51 = vpack.c.bf16 %v3023_v20, %v3023_v20  ;;  %v2992_v63 = vadd.f32 %v5612_v0, %v2953_v54  ;;  %v2951_v47 = vadd.f32 %v2910_v27, %v2739_v61 }
 0x246   : > { %v3021_v17 = vmax.f32 %v2989_v23, 0.0 }
 0x247   : > { %3184 = vst.msk [vmem:[%s5632_s15 + $0x78] sm:$0xf] %vm3153_vm8, %v3598_v51  ;;  %v3024_v35 = vmax.f32 %v2992_v63, 0.0  ;;  %v2990_v8 = vadd.f32 %v5612_v0, %v2951_v47 }
 0x248   : > { %v3596_v21 = vpack.c.bf16 %v3021_v17, %v3021_v17 }
 0x249   : > { %v3599_v30 = vpack.c.bf16 %v3024_v35, %v3024_v35  ;;  %v3022_v11 = vmax.f32 %v2990_v8, 0.0 }
 0x24a   : > { %3182 = vst.msk [vmem:[%s5632_s15 + $0x70] sm:$0xf] %vm3153_vm8, %v3596_v21 }
 0x24b   : > { %3185 = vst.msk [vmem:[%s5632_s15 + $0x7c] sm:$0xf] %vm3153_vm8, %v3599_v30  ;;  %v3597_v7 = vpack.c.bf16 %v3022_v11, %v3022_v11 }
 0x24d   : > { %3183 = vst.msk [vmem:[%s5632_s15 + $0x74] sm:$0xf] %vm3153_vm8, %v3597_v7 }
 0x24e PF: > { %s15_s14 = sadd.s32 1, %s4219_s14   ;;  %s6023_s12 = smov %s4215_s13 }
 0x24f   : > { %p12_p3 = scmp.ge.s32.totalorder %s15_s14, 4   ;;  %s6024_s13 = smov %s6026_s16 }
 0x251   :  { %14 = sbr.rel (!%p12_p3) target bundleno = 3 (0x3), region = 79 }
 0x256   :  { %3218 = vsyncpa [#allocation3], 1 }
 0x257   :  { %3220 = vsyncpa [#allocation3 + $0x1], 1 }
 0x258   :  { %3221 = vsyncpa [#allocation5], 1 }

// kernel: vgg_forward.13
= control target key start
LH: loop header
LB: loop body
LE: loop exit
PB: predicated region body
PF: predicated region fallthrough
CT: control target
= control target key end

     0   :  { %s940_s12 = smov 0   ;;  %s942_s13 = smov 0   ;;  %s1023_s0 = inlined_call_operand.vmem [shape: bf16[8,4096], index: 0, kind: input, shape index: {}]   ;;  %s1024_s1 = inlined_call_operand.vmem [shape: bf16[4096,128], index: 1, kind: input, shape index: {}]   ;;  %s1025_s2 = inlined_call_operand.vmem [shape: f32[1,128], index: 2, kind: input, shape index: {}]   ;;  %s1026_s3 = inlined_call_operand.vmem [shape: f32[8,128], index: 3, kind: output, shape index: {}]  }
   0x1   :  { %s944_s14 = smov 0  }
   0x2 LB: > { %s25_s15 = sadd.s32 1, %s913_s13  ;;  %p743_p0 = scmp.ge.s32.totalorder %s917_s14, 1  ;;  %s917_s14 = sphi %s944_s14, %s13_s14   ;;  %s913_s13 = sphi %s942_s13, %s1028_s13   ;;  %s909_s12 = sphi %s940_s12, %s1027_s12  }
   0x3   : > { %p26_p1 = scmp.ge.s32.totalorder %s25_s15, 8  ;;  %p189_p2 = scmp.lt.s32.totalorder %s917_s14, 9 }
   0x5   : > { %s1030_s15 = smov (%p26_p1, %s25_s15), 0  ;;  %p190_p3 = pnand %p743_p0, %p189_p2 }
   0x6   : > { %s744_s16 = sshll.u32 (!%p190_p3), %s909_s12, 2  ;;  %s746_s17 = sshll.u32 (!%p190_p3), %s909_s12, 6 }
   0x7   : > { %193 = sbr.rel (%p190_p3) target bundleno = 269 (0x10d), region = 32  ;;  %p233_p4 = scmp.lt.s32.totalorder (!%p190_p3), %s744_s16, 31 }
   0x8   : > { %p241_p5 = scmp.lt.s32.totalorder (!%p190_p3), %s746_s17, 511  ;;  %p748_p6 = scmp.ne.s32.totalorder (!%p190_p3), %s909_s12, 0 }
   0xc   : > { %s1032_s16 = smov (!%p233_p4, %s744_s16), 31  ;;  %s1034_s17 = smov (!%p241_p5, %s746_s17), 511 }
   0xd   : > { %s745_s18 = sshll.u32 %s1032_s16, 2  ;;  %s747_s22 = sshll.u32 %s1034_s17, 2 }
   0xe   : > { %s965_s21 = scalar_lea.vmem %s1023_s0, %s745_s18  ;;  %s970_s25 = scalar_lea.vmem %s1024_s1, %s747_s22 }
   0xf   : > { %263 = sbr.rel (%p748_p6) target bundleno = 22 (0x16), region = 36 }
  0x14   : > { %v919_v0 = vmov 0.0  }
  0x15   : > { %264 = vst [vmem:[#allocation2] sm:$0xff] %v919_v0 }
  0x16 PF: > { %v859_v1 = vld [vmem:[%s970_s25 + $0x78] sm:$0xff]   ;;  %v863_v5 = vld [vmem:[%s970_s25 + $0x70] sm:$0xff]   ;;  %v867_v9 = vld [vmem:[%s970_s25 + $0x68] sm:$0xff]   ;;  %p785_p7 = scmp.ne.s32.totalorder %s909_s12, 7 }
  0x17   : > { %v860_v2 = vld [vmem:[%s970_s25 + $0xf8] sm:$0xff]   ;;  %790 = vmatprep.subr.bf16.mxu0 %v859_v1  ;;  %v864_v6 = vld [vmem:[%s970_s25 + $0xf0] sm:$0xff]   ;;  %v868_v10 = vld [vmem:[%s970_s25 + $0xe8] sm:$0xff]  }
  0x18   : > { %v861_v3 = vld [vmem:[%s970_s25 + $0x38] sm:$0xff]   ;;  %812 = vmatprep.subr.bf16.mxu1 %v860_v2  ;;  %v865_v7 = vld [vmem:[%s970_s25 + $0x30] sm:$0xff]   ;;  %v869_v11 = vld [vmem:[%s970_s25 + $0x28] sm:$0xff]  }
  0x19   : > { %v862_v4 = vld [vmem:[%s970_s25 + $0xb8] sm:$0xff]   ;;  %791 = vmatpush3.bf16.msra.mxu0 %v861_v3  ;;  %v866_v8 = vld [vmem:[%s970_s25 + $0xb0] sm:$0xff]   ;;  %v870_v12 = vld [vmem:[%s970_s25 + $0xa8] sm:$0xff]  }
  0x1a   : > { %813 = vmatpush3.bf16.msra.mxu1 %v862_v4  ;;  %792 = vmatprep.subr.bf16.mxu0 %v863_v5  ;;  %v871_v13 = vld [vmem:[%s970_s25 + $0x60] sm:$0xff]   ;;  %v875_v17 = vld [vmem:[%s970_s25 + $0x58] sm:$0xff]   ;;  %v879_v21 = vld [vmem:[%s970_s25 + $0x50] sm:$0xff]  }
  0x1b   : > { %814 = vmatprep.subr.bf16.mxu1 %v864_v6  ;;  %v872_v14 = vld [vmem:[%s970_s25 + $0xe0] sm:$0xff]   ;;  %v876_v18 = vld [vmem:[%s970_s25 + $0xd8] sm:$0xff]   ;;  %v880_v22 = vld [vmem:[%s970_s25 + $0xd0] sm:$0xff]  }
  0x1c   : > { %v873_v15 = vld [vmem:[%s970_s25 + $0x20] sm:$0xff]   ;;  %v877_v19 = vld [vmem:[%s970_s25 + $0x18] sm:$0xff]   ;;  %v881_v23 = vld [vmem:[%s970_s25 + $0x10] sm:$0xff]  }
  0x1d   : > { %793 = vmatpush3.bf16.msra.mxu0 %v865_v7  ;;  %v874_v16 = vld [vmem:[%s970_s25 + $0xa0] sm:$0xff]   ;;  %v878_v20 = vld [vmem:[%s970_s25 + $0x98] sm:$0xff]   ;;  %v882_v24 = vld [vmem:[%s970_s25 + $0x90] sm:$0xff]  }
  0x1e   : > { %815 = vmatpush3.bf16.msra.mxu1 %v866_v8  ;;  %794 = vmatprep.subr.bf16.mxu0 %v867_v9  ;;  %v883_v25 = vld [vmem:[%s970_s25 + $0x48] sm:$0xff]   ;;  %v887_v29 = vld [vmem:[%s970_s25 + $0x40] sm:$0xff]  }
  0x1f   : > { %816 = vmatprep.subr.bf16.mxu1 %v868_v10  ;;  %v884_v26 = vld [vmem:[%s970_s25 + $0xc8] sm:$0xff]   ;;  %v888_v30 = vld [vmem:[%s970_s25 + $0xc0] sm:$0xff]  }
  0x20   : > { %v885_v27 = vld [vmem:[%s970_s25 + $0x8] sm:$0xff]   ;;  %v889_v31 = vld [vmem:[%s970_s25] sm:$0xff]  }
  0x21   : > { %795 = vmatpush3.bf16.msra.mxu0 %v869_v11  ;;  %v886_v28 = vld [vmem:[%s970_s25 + $0x88] sm:$0xff]   ;;  %v890_v32 = vld [vmem:[%s970_s25 + $0x80] sm:$0xff]  }
  0x22   : > { %817 = vmatpush3.bf16.msra.mxu1 %v870_v12  ;;  %796 = vmatprep.subr.bf16.mxu0 %v871_v13  ;;  %v266_v33 = vld [vmem:[%s965_s21] sm:$0xff]  ;;  %v267_v34 = vld [vmem:[%s965_s21 + $0x8] sm:$0xff] }
  0x23   : > { %818 = vmatprep.subr.bf16.mxu1 %v872_v14  ;;  %v749_v35 = vcombine.low %v266_v33, %v266_v33  ;;  %v750_v36 = vcombine.high %v266_v33, %v266_v33  ;;  %v751_v37 = vcombine.low %v267_v34, %v267_v34  ;;  %v752_v38 = vcombine.high %v267_v34, %v267_v34  ;;  %v265_v45 = vld [vmem:[#allocation2] sm:$0xff] }
  0x25   : > { %797 = vmatpush3.bf16.msra.mxu0 %v873_v15  ;;  %570 = vmatprep.mubr.bf16.mxu0 %v750_v36 }
  0x26   : > { %819 = vmatpush3.bf16.msra.mxu1 %v874_v16  ;;  %798 = vmatprep.subr.bf16.mxu0 %v875_v17 }
  0x27   : > { %820 = vmatprep.subr.bf16.mxu1 %v876_v18  ;;  %610 = vmatprep.mubr.bf16.mxu1 %v752_v38 }
  0x29   : > { %799 = vmatpush3.bf16.msra.mxu0 %v877_v19 }
  0x2a   : > { %821 = vmatpush3.bf16.msra.mxu1 %v878_v20  ;;  %800 = vmatprep.subr.bf16.mxu0 %v879_v21 }
  0x2b   : > { %822 = vmatprep.subr.bf16.mxu1 %v880_v22 }
  0x2d   : > { %801 = vmatpush3.bf16.msra.mxu0 %v881_v23 }
  0x2e   : > { %823 = vmatpush3.bf16.msra.mxu1 %v882_v24  ;;  %802 = vmatprep.subr.bf16.mxu0 %v883_v25 }
  0x2f   : > { %824 = vmatprep.subr.bf16.mxu1 %v884_v26 }
  0x31   : > { %803 = vmatpush3.bf16.msra.mxu0 %v885_v27 }
  0x32   : > { %825 = vmatpush3.bf16.msra.mxu1 %v886_v28  ;;  %804 = vmatprep.subr.bf16.mxu0 %v887_v29 }
  0x33   : > { %826 = vmatprep.subr.bf16.mxu1 %v888_v30 }
  0x35   : > { %805 = vmatpush3.bf16.msra.mxu0 %v889_v31 }
  0x36   : > { %827 = vmatpush3.bf16.msra.mxu1 %v890_v32 }
  0x38   : > { %571 = vmatmul.mubr.bf16.vlgmr.msra.gmra.mxu0 %v749_v35 }
  0x39   : > { %611 = vmatmul.mubr.bf16.vlgmr.msra.gmra.mxu1 %v751_v37 }
  0xf8   : > { %v806_v39 = vpop.f32.mrf.mxu0 }
  0xf9   : > { %v828_v40 = vpop.f32.mrf.mxu1 }
  0xfa   : > { %v807_v41 = vpop.f32.mrf.mxu0 }
  0xfb   : > { %v829_v42 = vpop.f32.mrf.mxu1  ;;  %v808_v43 = vadd.f32 %v807_v41, %v806_v39 }
  0xfc   : > { %v830_v44 = vadd.f32 %v829_v42, %v828_v40  ;;  %v809_v46 = vpop.f32.mrf.mxu0 }
  0xfd   : > { %v831_v47 = vpop.f32.mrf.mxu1 }
  0xfe   : > { %v613_v48 = vadd.f32 %v830_v44, %v808_v43  ;;  %v810_v49 = vpop.f32.mrf.mxu0  ;;  %623 = sbr.rel (%p785_p7) target bundleno = 269 (0x10d), region = 40 }
  0xff   : > { %v832_v50 = vpop.f32.mrf.mxu1 }
 0x100   : > { %v618_v51 = vadd.f32 %v613_v48, %v265_v45 }
 0x102   : > { %619 = vst [vmem:[#allocation2] sm:$0xff] %v618_v51 }
 0x103   : > { %v786_v53 = vld [vmem:[%s1025_s2] ss:$0 sm:$0xff] }
 0x109   : > { %v624_v52 = vld [vmem:[#allocation2] sm:$0xff] }
 0x10a   : > { %v632_v54 = vadd.f32 %v786_v53, %v624_v52 }
 0x10c   : > { %633 = vst [vmem:[%s1026_s3] sm:$0xff] %v632_v54 }
 0x10d PF: > { %s13_s14 = sadd.s32 1, %s917_s14   ;;  %s1027_s12 = smov %s913_s13 }
 0x10e   : > { %p10_p8 = scmp.ge.s32.totalorder %s13_s14, 10   ;;  %s1028_s13 = smov %s1030_s15 }
 0x110   :  { %12 = sbr.rel (!%p10_p8) target bundleno = 2 (0x2), region = 76 }

// kernel: vgg_forward.12
= control target key start
LH: loop header
LB: loop body
LE: loop exit
PB: predicated region body
PF: predicated region fallthrough
CT: control target
= control target key end

     0   :  { %s2481_s0 = inlined_call_operand.vmem [shape: bf16[8,4096], index: 0, kind: input, shape index: {}]   ;;  %s2482_s1 = inlined_call_operand.hbm [shape: bf16[4096,4096], index: 1, kind: input, shape index: {}]   ;;  %s2483_s2 = inlined_call_operand.hbm [shape: f32[1,4096], index: 2, kind: input, shape index: {}]   ;;  %s2484_s3 = inlined_call_operand.vmem [shape: bf16[8,4096], index: 3, kind: output, shape index: {}]  }
   0x1   :  { %2487 = sst [smem:[#allocation11_spill]] %s2482_s1 }
   0x2   :  { %8 = vsyncpa [#allocation4], 0 }
   0x3   :  { %10 = vsyncpa [#allocation4 + $0x1], 0 }
   0x4   :  { %11 = vsyncpa [#allocation6], 0 }
   0x5   :  { %13 = vsyncpa [#allocation6 + $0x1], 0  ;;  %s2108_s12 = smov 0   ;;  %s2110_s13 = smov 0  }
   0x6   :  { %s2112_s14 = smov 0   ;;  %s2114_s15 = smov 0  }
   0x7   :  { %s2116_s16 = smov 0   ;;  %s2118_s17 = smov 0  }
   0x8   :  { %s2120_s18 = smov 0   ;;  %s2122_s19 = smov 0  }
   0x9   :  { %s2124_s20 = smov 0   ;;  %s2126_s21 = smov 0  }
   0xa   :  { %s2128_s22 = smov 0  }
   0xb LB: > { %s31_s23 = sadd.s32 1, %s2072_s20  ;;  %p82_p1 = scmp.ne.s32.totalorder %s2060_s17, %s2056_s16  ;;  %s2080_s22 = sphi %s2128_s22, %s19_s22   ;;  %s2076_s21 = sphi %s2126_s21, %s2512_s21   ;;  %s2072_s20 = sphi %s2124_s20, %s2511_s20   ;;  %s2068_s19 = sphi %s2122_s19, %s2510_s19   ;;  %s2064_s18 = sphi %s2120_s18, %s2509_s18   ;;  %s2060_s17 = sphi %s2118_s17, %s2508_s17   ;;  %s2056_s16 = sphi %s2116_s16, %s2507_s16   ;;  %s2052_s15 = sphi %s2114_s15, %s2506_s15   ;;  %s2048_s14 = sphi %s2112_s14, %s2505_s14   ;;  %s2044_s13 = sphi %s2110_s13, %s2504_s13   ;;  %s2040_s12 = sphi %s2108_s12, %s2503_s12  }
   0xc   : > { %p2165_p0 = scmp.ge.s32.totalorder %s31_s23, 8  ;;  %p83_p2 = scmp.eq.s32.totalorder %s2080_s22, 0 }
   0xd   : > { %p1641_p4 = scmp.lt.s32.totalorder %s2080_s22, 64  ;;  %s179_s27 = sand.u32 1, %s2060_s17  }
   0xe   : > { %s2514_s23 = smov (%p2165_p0, %s31_s23), 0  ;;  %p84_p3 = por %p83_p2, %p82_p1 }
   0xf   : > { %2489 = sst [smem:[#allocation9_spill]] %s2514_s23  ;;  %s1473_s28 = sshll.u32 %s179_s27, 10 }
  0x10   : > { %s1475_s29 = sshll.u32 %s2076_s21, 2  ;;  %s1626_s30 = sshll.u32 %s2072_s20, 11 }
  0x11   : > { %s183_s4 = scalar_lea.vmem [#allocation3], %s1473_s28  ;;  %s190_s6 = sadd.s32 %s1626_s30, %s1475_s29 }
  0x12   : > { %s193_s5 = sshll.u32 %s183_s4, 4  ;;  %s1477_s7 = sshll.u32 %s190_s6, 6  ;;  %s194_s5 = int_to_ptr.vmem [resolvable:$true] %s193_s5 }
  0x13   : > { %p2186_p5 = pnand %p1641_p4, %p84_p3  ;;  %s2491_s1 = sld [smem:[#allocation11_spill]] }
  0x14   : > { %p1481_p6 = scmp.ge.s32.totalorder %s2080_s22, 1  ;;  %s180_s24 = scalar_lea.sflag [#allocation4], %s179_s27 }
  0x15   : > { %p1932_p7 = pneg %p2186_p5  ;;  %s1943_s26 = scalar_lea.vmem %s194_s5, 16384 }
  0x16   : > { %p1944_p8 = scmp.ne.s32.totalorder %s194_s5, %s1943_s26  ;;  %s2082_s28 = smov [#allocation3]  }
  0x17   : > { %s1948_s29 = sshll.u32 %s2082_s28, 4  ;;  %s1949_s29 = int_to_ptr.vmem [resolvable:$false] %s1948_s29 }
  0x18   : > { %p1946_p9 = pnand %p1944_p8, %p1932_p7  ;;  %s1950_s30 = scalar_lea.vmem %s1949_s29, 32768 }
  0x19   : > { %s192_s11 = scalar_lea.hbm %s2491_s1, %s1477_s7  ;;  %p1951_p11 = scmp.lt.s32.totalorder %s194_s5, %s1949_s29 }
  0x1a   : > { %p1947_p10 = pneg %p1946_p9  ;;  %p1952_p12 = scmp.lt.s32.totalorder %s1950_s30, %s1943_s26 }
  0x1c   : > { %p1953_p13 = por %p1952_p12, %p1951_p11 }
  0x1e   : > { %p1954_p1 = pnand %p1953_p13, %p1947_p10 }
  0x20   : > { %1957 = shalt.err (!%p1954_p1)
}
  0x21   : > { %s2083_s4 = smov 2048   ;;  %s2084_s27 = smov 256  }
  0x22   : > { %s2085_s26 = smov 16   ;;  %p220_p3 = scmp.lt.s32.totalorder %s2080_s22, 65 }
  0x23   : > { %1637 = dma.hbm_to_vmem [thread:$0]  (!%p2186_p5), %s192_s11, 16384, %s194_s5, %s180_s24, %s2083_s4, %s2084_s27, %s2085_s26  }
  0x24   : > { %p2201_p7 = pnand %p1481_p6, %p220_p3  ;;  %s1469_s7 = sadd.s32 4294967295, %s2080_s22  }
  0x25   : > { %s34_s9 = sadd.s32 1, %s2076_s21  ;;  %p88_p8 = scmp.ne.s32.totalorder %s2056_s16, %s2052_s15 }
  0x26   : > { %s2516_s9 = smov (!%p2165_p0, %s34_s9), %s2076_s21  ;;  %p2212_p9 = scmp.eq.s32.totalorder %s1469_s7, 0 }
  0x27   : > { %p36_p5 = scmp.ge.s32.totalorder %s2516_s9, 8  ;;  %s101_s24 = sadd.s32 1, %s2048_s14 }
  0x28   : > { %p2219_p6 = por %p2212_p9, %p88_p8  ;;  %p108_p10 = scmp.ne.s32.totalorder %s2048_s14, %s2044_s13 }
  0x29   : > { %s2518_s9 = smov (%p36_p5, %s2516_s9), 0  ;;  %p114_p11 = scmp.ne.s32.totalorder %s2044_s13, %s2040_s12 }
  0x2a   : > { %2495 = sst [smem:[#allocation10_spill]] %s2518_s9  ;;  %p2229_p0 = por %p108_p10, %p83_p2 }
  0x2b   : > { %s71_s25 = ssub.s32 %s2076_s21, %s2518_s9  ;;  %s203_s10 = sand.u32 1, %s2048_s14  }
  0x2c   : > { %s2497_s11 = ssub.s32 %s2072_s20, %s2514_s23  ;;  %p99_p12 = scmp.eq.s32.totalorder %s71_s25, 0 }
  0x2d   : > { %s72_s28 = sor.u32 %s71_s25, %s2497_s11  ;;  %p2243_p1 = por %p114_p11, %p2212_p9 }
  0x2e   : > { %p73_p13 = scmp.eq.s32.totalorder %s72_s28, 0  ;;  %s2499_s4 = sadd.s32 1, %s2060_s17 }
  0x2f   : > { %s2248_s30 = scalar_select %p99_p12, %s2048_s14, %s101_s24  }
  0x30   : > { %s2253_s27 = scalar_select %p73_p13, %s2060_s17, %s2499_s4  }
  0x31   : > { %s1478_s26 = sshll.u32 %s203_s10, 2  ;;  %s1627_s7 = sshll.u32 %s2076_s21, 6 }
  0x32   : > { %s213_s9 = scalar_lea.hbm %s2483_s2, %s1627_s7  ;;  %s207_s23 = scalar_lea.vmem [#allocation5], %s1478_s26 }
  0x33   : > { %s215_s11 = sshll.u32 %s207_s23, 4  ;;  %p2263_p2 = pnand %p1641_p4, %p2229_p0  ;;  %s216_s11 = int_to_ptr.vmem [resolvable:$true] %s215_s11 }
  0x34   : > { %s204_s24 = scalar_lea.sflag [#allocation6], %s203_s10  ;;  %s1971_s25 = scalar_lea.vmem %s216_s11, 64 }
  0x35   : > { %p1960_p3 = pneg %p2263_p2  ;;  %p1972_p8 = scmp.ne.s32.totalorder %s216_s11, %s1971_s25 }
  0x36   : > { %s2086_s28 = smov [#allocation5]  }
  0x37   : > { %p1974_p9 = pnand %p1972_p8, %p1960_p3  ;;  %s1976_s1 = sshll.u32 %s2086_s28, 4  ;;  %s1977_s1 = int_to_ptr.vmem [resolvable:$false] %s1976_s1 }
  0x38   : > { %s1978_s4 = scalar_lea.vmem %s1977_s1, 128  ;;  %p1979_p10 = scmp.lt.s32.totalorder %s216_s11, %s1977_s1 }
  0x39   : > { %p1975_p5 = pneg %p1974_p9  ;;  %p1980_p11 = scmp.lt.s32.totalorder %s1978_s4, %s1971_s25 }
  0x3b   : > { %p1981_p12 = por %p1980_p11, %p1979_p10 }
  0x3d   : > { %p1982_p13 = pnand %p1981_p12, %p1975_p5 }
  0x3f   : > { %1985 = shalt.err (!%p1982_p13)
}
  0x40   : > { %1640 = dma.hbm_to_vmem [thread:$0]  (!%p2263_p2), %s213_s9, 64, %s216_s11, %s204_s24  }
  0x41   : > { %224 = sbr.rel (%p2201_p7) target bundleno = 434 (0x1b2), region = 32  ;;  %s226_s23 = sand.u32 (!%p2201_p7), 1, %s2056_s16  }
  0x42   : > { %s1482_s15 = sshll.u32 (!%p2201_p7), %s226_s23, 10  ;;  %s227_s10 = scalar_lea.sflag (!%p2201_p7), [#allocation4], %s226_s23 }
  0x43   : > { %s2274_s26 = scalar_lea.vmem (!%p2201_p7), [#allocation3], %s1482_s15 }
  0x46   : > { %2031 = dma.done.wait (%p2219_p6), %s227_s10, 16384  }
  0x47   : > { %2033 = vsyncadd (%p2219_p6), %s227_s10, 4294950912  ;;  %s235_s7 = sand.u32 1, %s2044_s13  }
  0x48   : > { %s2281_s12 = sshll.u32 %s235_s7, 2  ;;  %s236_s6 = scalar_lea.sflag [#allocation6], %s235_s7 }
  0x49   : > { %s239_s9 = scalar_lea.vmem [#allocation5], %s2281_s12 }
  0x4a   : > { %2035 = dma.done.wait (%p2243_p1), %s236_s6, 64  }
  0x4b   : > { %2037 = vsyncadd (%p2243_p1), %s236_s6, 4294967232  ;;  %s1484_s11 = sshll.u32 %s2064_s18, 2  ;;  %s1486_s8 = sshll.u32 %s2068_s19, 2 }
  0x4c   : > { %p283_p4 = scmp.lt.s32.totalorder %s1484_s11, 31  ;;  %p296_p7 = scmp.lt.s32.totalorder %s1486_s8, 31 }
  0x4d   : > { %p1488_p6 = scmp.ne.s32.totalorder %s2064_s18, 0 }
  0x4e   : > { %s2520_s11 = smov (!%p283_p4, %s1484_s11), 31  ;;  %s2522_s8 = smov (!%p296_p7, %s1486_s8), 31 }
  0x4f   : > { %s1485_s5 = sshll.u32 %s2520_s11, 2  ;;  %s1487_s1 = sshll.u32 %s2522_s8, 2 }
  0x50   : > { %s2293_s28 = scalar_lea.vmem %s2481_s0, %s1485_s5  ;;  %s2298_s29 = scalar_lea.vmem %s2484_s3, %s1487_s1 }
  0x51   : > { %306 = sbr.rel (%p1488_p6) target bundleno = 89 (0x59), region = 44 }
  0x56   : > { %v2087_v0 = vmov 0.0  }
  0x57   : > { %307 = vst [vmem:[#allocation2 + $0x10] sm:$0xff] %v2087_v0  ;;  %308 = vst [vmem:[#allocation2] sm:$0xff] %v2087_v0 }
  0x58   : > { %309 = vst [vmem:[#allocation2 + $0x18] sm:$0xff] %v2087_v0  ;;  %310 = vst [vmem:[#allocation2 + $0x8] sm:$0xff] %v2087_v0 }
  0x59 PF: > { %v1734_v1 = vld [vmem:[%s2274_s26 + $0xe4] ss:$16 sps:$4 sm:$0xff]   ;;  %v1738_v3 = vld [vmem:[%s2274_s26 + $0xe0] ss:$16 sps:$4 sm:$0xff]   ;;  %v316_v49 = vld [vmem:[%s2293_s28 + $0x8] sm:$0xff]  ;;  %p1621_p0 = scmp.ne.s32.totalorder %s2064_s18, 7 }
  0x5a   : > { %v1736_v2 = vld [vmem:[%s2274_s26 + $0x2e4] ss:$16 sps:$4 sm:$0xff]   ;;  %1099 = vmatprep.subr.bf16.mxu0 %v1734_v1  ;;  %v1739_v4 = vld [vmem:[%s2274_s26 + $0x2e0] ss:$16 sps:$4 sm:$0xff]   ;;  %v1492_v52 = vcombine.high %v316_v49, %v316_v49 }
  0x5b   : > { %1140 = vmatprep.subr.bf16.mxu1 %v1736_v2  ;;  %v1740_v5 = vld [vmem:[%s2274_s26 + $0xc4] ss:$16 sps:$4 sm:$0xff]   ;;  %1100 = vmatpush1.bf16.msra.mxu0 %v1738_v3  ;;  %v1744_v7 = vld [vmem:[%s2274_s26 + $0xc0] ss:$16 sps:$4 sm:$0xff]  }
  0x5c   : > { %1141 = vmatpush1.bf16.msra.mxu1 %v1739_v4  ;;  %v1742_v6 = vld [vmem:[%s2274_s26 + $0x2c4] ss:$16 sps:$4 sm:$0xff]   ;;  %1101 = vmatprep.subr.bf16.mxu0 %v1740_v5  ;;  %v1745_v8 = vld [vmem:[%s2274_s26 + $0x2c0] ss:$16 sps:$4 sm:$0xff]   ;;  %v1836_v5 = vld [vmem:[%s2274_s26 + $0xec] ss:$16 sps:$4 sm:$0xff]  }
  0x5d   : > { %1142 = vmatprep.subr.bf16.mxu1 %v1742_v6  ;;  %v1746_v9 = vld [vmem:[%s2274_s26 + $0xa4] ss:$16 sps:$4 sm:$0xff]   ;;  %v1750_v11 = vld [vmem:[%s2274_s26 + $0xa0] ss:$16 sps:$4 sm:$0xff]   ;;  %1172 = vmatprep.mubr.bf16.mxu1 %v1492_v52  ;;  %v1839_v6 = vld [vmem:[%s2274_s26 + $0x2ec] ss:$16 sps:$4 sm:$0xff]  }
  0x5e   : > { %v1748_v10 = vld [vmem:[%s2274_s26 + $0x2a4] ss:$16 sps:$4 sm:$0xff]   ;;  %v1751_v12 = vld [vmem:[%s2274_s26 + $0x2a0] ss:$16 sps:$4 sm:$0xff]  }
  0x5f   : > { %1102 = vmatpush1.bf16.msra.mxu0 %v1744_v7  ;;  %v1752_v13 = vld [vmem:[%s2274_s26 + $0x84] ss:$16 sps:$4 sm:$0xff]   ;;  %v1756_v15 = vld [vmem:[%s2274_s26 + $0x80] ss:$16 sps:$4 sm:$0xff]  }
  0x60   : > { %1143 = vmatpush1.bf16.msra.mxu1 %v1745_v8  ;;  %1103 = vmatprep.subr.bf16.mxu0 %v1746_v9  ;;  %v1754_v14 = vld [vmem:[%s2274_s26 + $0x284] ss:$16 sps:$4 sm:$0xff]   ;;  %v1757_v16 = vld [vmem:[%s2274_s26 + $0x280] ss:$16 sps:$4 sm:$0xff]   ;;  %v2374_v8 = vcombine.low %v316_v49, %v316_v49  ;;  %v1834_v9 = vld [vmem:[%s2274_s26 + $0xe8] ss:$16 sps:$4 sm:$0xff]  }
  0x61   : > { %1144 = vmatprep.subr.bf16.mxu1 %v1748_v10  ;;  %v1758_v17 = vld [vmem:[%s2274_s26 + $0x64] ss:$16 sps:$4 sm:$0xff]   ;;  %v1762_v19 = vld [vmem:[%s2274_s26 + $0x60] ss:$16 sps:$4 sm:$0xff]   ;;  %v1837_v10 = vld [vmem:[%s2274_s26 + $0x2e8] ss:$16 sps:$4 sm:$0xff]  }
  0x62   : > { %v1760_v18 = vld [vmem:[%s2274_s26 + $0x264] ss:$16 sps:$4 sm:$0xff]   ;;  %v1763_v20 = vld [vmem:[%s2274_s26 + $0x260] ss:$16 sps:$4 sm:$0xff]   ;;  %v1894_v49 = vld [vmem:[%s2274_s26 + $0x1a8] ss:$16 sps:$4 sm:$0xff]  }
  0x63   : > { %1104 = vmatpush1.bf16.msra.mxu0 %v1750_v11  ;;  %v1764_v21 = vld [vmem:[%s2274_s26 + $0x44] ss:$16 sps:$4 sm:$0xff]   ;;  %v1768_v23 = vld [vmem:[%s2274_s26 + $0x40] ss:$16 sps:$4 sm:$0xff]   ;;  %v1842_v11 = vld [vmem:[%s2274_s26 + $0xcc] ss:$16 sps:$4 sm:$0xff]  }
  0x64   : > { %1145 = vmatpush1.bf16.msra.mxu1 %v1751_v12  ;;  %1105 = vmatprep.subr.bf16.mxu0 %v1752_v13  ;;  %v1766_v22 = vld [vmem:[%s2274_s26 + $0x244] ss:$16 sps:$4 sm:$0xff]   ;;  %v1769_v24 = vld [vmem:[%s2274_s26 + $0x240] ss:$16 sps:$4 sm:$0xff]   ;;  %v1845_v12 = vld [vmem:[%s2274_s26 + $0x2cc] ss:$16 sps:$4 sm:$0xff]  }
  0x65   : > { %1146 = vmatprep.subr.bf16.mxu1 %v1754_v14  ;;  %v1770_v25 = vld [vmem:[%s2274_s26 + $0x24] ss:$16 sps:$4 sm:$0xff]   ;;  %v1774_v27 = vld [vmem:[%s2274_s26 + $0x20] ss:$16 sps:$4 sm:$0xff]   ;;  %v1840_v13 = vld [vmem:[%s2274_s26 + $0xc8] ss:$16 sps:$4 sm:$0xff]  }
  0x66   : > { %v1772_v26 = vld [vmem:[%s2274_s26 + $0x224] ss:$16 sps:$4 sm:$0xff]   ;;  %v1775_v28 = vld [vmem:[%s2274_s26 + $0x220] ss:$16 sps:$4 sm:$0xff]   ;;  %v1843_v14 = vld [vmem:[%s2274_s26 + $0x2c8] ss:$16 sps:$4 sm:$0xff]  }
  0x67   : > { %1106 = vmatpush1.bf16.msra.mxu0 %v1756_v15  ;;  %v1776_v29 = vld [vmem:[%s2274_s26 + $0x4] ss:$16 sps:$4 sm:$0xff]   ;;  %v1780_v31 = vld [vmem:[%s2274_s26] ss:$16 sps:$4 sm:$0xff]   ;;  %v1848_v15 = vld [vmem:[%s2274_s26 + $0xac] ss:$16 sps:$4 sm:$0xff]  }
  0x68   : > { %1147 = vmatpush1.bf16.msra.mxu1 %v1757_v16  ;;  %1107 = vmatprep.subr.bf16.mxu0 %v1758_v17  ;;  %v1778_v30 = vld [vmem:[%s2274_s26 + $0x204] ss:$16 sps:$4 sm:$0xff]   ;;  %v1781_v32 = vld [vmem:[%s2274_s26 + $0x200] ss:$16 sps:$4 sm:$0xff]   ;;  %v1851_v16 = vld [vmem:[%s2274_s26 + $0x2ac] ss:$16 sps:$4 sm:$0xff]  }
  0x69   : > { %1148 = vmatprep.subr.bf16.mxu1 %v1760_v18  ;;  %v1782_v33 = vld [vmem:[%s2274_s26 + $0x1e4] ss:$16 sps:$4 sm:$0xff]   ;;  %v1786_v35 = vld [vmem:[%s2274_s26 + $0x1e0] ss:$16 sps:$4 sm:$0xff]   ;;  %v1846_v17 = vld [vmem:[%s2274_s26 + $0xa8] ss:$16 sps:$4 sm:$0xff]  }
  0x6a   : > { %v1784_v34 = vld [vmem:[%s2274_s26 + $0x3e4] ss:$16 sps:$4 sm:$0xff]   ;;  %v1787_v36 = vld [vmem:[%s2274_s26 + $0x3e0] ss:$16 sps:$4 sm:$0xff]   ;;  %v1849_v18 = vld [vmem:[%s2274_s26 + $0x2a8] ss:$16 sps:$4 sm:$0xff]  }
  0x6b   : > { %1108 = vmatpush1.bf16.msra.mxu0 %v1762_v19  ;;  %v1788_v37 = vld [vmem:[%s2274_s26 + $0x1c4] ss:$16 sps:$4 sm:$0xff]   ;;  %v1792_v39 = vld [vmem:[%s2274_s26 + $0x1c0] ss:$16 sps:$4 sm:$0xff]   ;;  %v1854_v19 = vld [vmem:[%s2274_s26 + $0x8c] ss:$16 sps:$4 sm:$0xff]  }
  0x6c   : > { %1149 = vmatpush1.bf16.msra.mxu1 %v1763_v20  ;;  %1109 = vmatprep.subr.bf16.mxu0 %v1764_v21  ;;  %v1790_v38 = vld [vmem:[%s2274_s26 + $0x3c4] ss:$16 sps:$4 sm:$0xff]   ;;  %v1793_v40 = vld [vmem:[%s2274_s26 + $0x3c0] ss:$16 sps:$4 sm:$0xff]   ;;  %v1857_v20 = vld [vmem:[%s2274_s26 + $0x28c] ss:$16 sps:$4 sm:$0xff]  }
  0x6d   : > { %1150 = vmatprep.subr.bf16.mxu1 %v1766_v22  ;;  %v1794_v41 = vld [vmem:[%s2274_s26 + $0x1a4] ss:$16 sps:$4 sm:$0xff]   ;;  %v1798_v43 = vld [vmem:[%s2274_s26 + $0x1a0] ss:$16 sps:$4 sm:$0xff]   ;;  %v1852_v21 = vld [vmem:[%s2274_s26 + $0x88] ss:$16 sps:$4 sm:$0xff]  }
  0x6e   : > { %v1796_v42 = vld [vmem:[%s2274_s26 + $0x3a4] ss:$16 sps:$4 sm:$0xff]   ;;  %v1799_v44 = vld [vmem:[%s2274_s26 + $0x3a0] ss:$16 sps:$4 sm:$0xff]   ;;  %v1855_v22 = vld [vmem:[%s2274_s26 + $0x288] ss:$16 sps:$4 sm:$0xff]  }
  0x6f   : > { %1110 = vmatpush1.bf16.msra.mxu0 %v1768_v23  ;;  %v1800_v45 = vld [vmem:[%s2274_s26 + $0x184] ss:$16 sps:$4 sm:$0xff]   ;;  %v1804_v50 = vld [vmem:[%s2274_s26 + $0x180] ss:$16 sps:$4 sm:$0xff]   ;;  %v1860_v23 = vld [vmem:[%s2274_s26 + $0x6c] ss:$16 sps:$4 sm:$0xff]  }
  0x70   : > { %1151 = vmatpush1.bf16.msra.mxu1 %v1769_v24  ;;  %1111 = vmatprep.subr.bf16.mxu0 %v1770_v25  ;;  %v1802_v46 = vld [vmem:[%s2274_s26 + $0x384] ss:$16 sps:$4 sm:$0xff]   ;;  %v1805_v51 = vld [vmem:[%s2274_s26 + $0x380] ss:$16 sps:$4 sm:$0xff]   ;;  %v1863_v24 = vld [vmem:[%s2274_s26 + $0x26c] ss:$16 sps:$4 sm:$0xff]  }
  0x71   : > { %1152 = vmatprep.subr.bf16.mxu1 %v1772_v26  ;;  %v315_v47 = vld [vmem:[%s2293_s28] sm:$0xff]  ;;  %v1858_v25 = vld [vmem:[%s2274_s26 + $0x68] ss:$16 sps:$4 sm:$0xff]  }
  0x72   : > { %v2348_v48 = vcombine.high %v315_v47, %v315_v47  ;;  %v1806_v53 = vld [vmem:[%s2274_s26 + $0x164] ss:$16 sps:$4 sm:$0xff]   ;;  %v1810_v55 = vld [vmem:[%s2274_s26 + $0x160] ss:$16 sps:$4 sm:$0xff]   ;;  %v2372_v7 = vcombine.low %v315_v47, %v315_v47  ;;  %v1861_v26 = vld [vmem:[%s2274_s26 + $0x268] ss:$16 sps:$4 sm:$0xff]  }
  0x73   : > { %1112 = vmatpush1.bf16.msra.mxu0 %v1774_v27  ;;  %v1808_v54 = vld [vmem:[%s2274_s26 + $0x364] ss:$16 sps:$4 sm:$0xff]   ;;  %v1811_v56 = vld [vmem:[%s2274_s26 + $0x360] ss:$16 sps:$4 sm:$0xff]   ;;  %v1866_v27 = vld [vmem:[%s2274_s26 + $0x4c] ss:$16 sps:$4 sm:$0xff]  }
  0x74   : > { %1153 = vmatpush1.bf16.msra.mxu1 %v1775_v28  ;;  %1113 = vmatprep.subr.bf16.mxu0 %v1776_v29  ;;  %v1812_v57 = vld [vmem:[%s2274_s26 + $0x144] ss:$16 sps:$4 sm:$0xff]   ;;  %v1816_v59 = vld [vmem:[%s2274_s26 + $0x140] ss:$16 sps:$4 sm:$0xff]   ;;  %v1869_v28 = vld [vmem:[%s2274_s26 + $0x24c] ss:$16 sps:$4 sm:$0xff]  }
  0x75   : > { %1154 = vmatprep.subr.bf16.mxu1 %v1778_v30  ;;  %1131 = vmatprep.mubr.bf16.mxu0 %v2348_v48  ;;  %v1814_v58 = vld [vmem:[%s2274_s26 + $0x344] ss:$16 sps:$4 sm:$0xff]   ;;  %v1817_v60 = vld [vmem:[%s2274_s26 + $0x340] ss:$16 sps:$4 sm:$0xff]   ;;  %v1864_v29 = vld [vmem:[%s2274_s26 + $0x48] ss:$16 sps:$4 sm:$0xff]  }
  0x76   : > { %v1818_v61 = vld [vmem:[%s2274_s26 + $0x124] ss:$16 sps:$4 sm:$0xff]   ;;  %v1822_v63 = vld [vmem:[%s2274_s26 + $0x120] ss:$16 sps:$4 sm:$0xff]   ;;  %v1867_v30 = vld [vmem:[%s2274_s26 + $0x248] ss:$16 sps:$4 sm:$0xff]  }
  0x77   : > { %1114 = vmatpush1.bf16.msra.mxu0 %v1780_v31  ;;  %v1820_v62 = vld [vmem:[%s2274_s26 + $0x324] ss:$16 sps:$4 sm:$0xff]   ;;  %v1823_v0 = vld [vmem:[%s2274_s26 + $0x320] ss:$16 sps:$4 sm:$0xff]   ;;  %v1872_v31 = vld [vmem:[%s2274_s26 + $0x2c] ss:$16 sps:$4 sm:$0xff]  }
  0x78   : > { %1155 = vmatpush1.bf16.msra.mxu1 %v1781_v32  ;;  %1115 = vmatprep.subr.bf16.mxu0 %v1782_v33  ;;  %v1824_v1 = vld [vmem:[%s2274_s26 + $0x104] ss:$16 sps:$4 sm:$0xff]   ;;  %v1828_v3 = vld [vmem:[%s2274_s26 + $0x100] ss:$16 sps:$4 sm:$0xff]   ;;  %v1875_v32 = vld [vmem:[%s2274_s26 + $0x22c] ss:$16 sps:$4 sm:$0xff]  }
  0x79   : > { %1156 = vmatprep.subr.bf16.mxu1 %v1784_v34  ;;  %v1826_v2 = vld [vmem:[%s2274_s26 + $0x304] ss:$16 sps:$4 sm:$0xff]   ;;  %v1829_v4 = vld [vmem:[%s2274_s26 + $0x300] ss:$16 sps:$4 sm:$0xff]   ;;  %v1870_v33 = vld [vmem:[%s2274_s26 + $0x28] ss:$16 sps:$4 sm:$0xff]  }
  0x7a   : > { %v1873_v34 = vld [vmem:[%s2274_s26 + $0x228] ss:$16 sps:$4 sm:$0xff]   ;;  %v1896_v47 = vld [vmem:[%s2274_s26 + $0x1ac] ss:$16 sps:$4 sm:$0xff]  }
  0x7b   : > { %1116 = vmatpush2.bf16.msra.mxu0 %v1786_v35  ;;  %v1878_v35 = vld [vmem:[%s2274_s26 + $0xc] ss:$16 sps:$4 sm:$0xff]  }
  0x7c   : > { %1157 = vmatpush2.bf16.msra.mxu1 %v1787_v36  ;;  %1117 = vmatprep.subr.bf16.mxu0 %v1788_v37  ;;  %v1881_v36 = vld [vmem:[%s2274_s26 + $0x20c] ss:$16 sps:$4 sm:$0xff]   ;;  %v1876_v37 = vld [vmem:[%s2274_s26 + $0x8] ss:$16 sps:$4 sm:$0xff]  }
  0x7d   : > { %1158 = vmatprep.subr.bf16.mxu1 %v1790_v38  ;;  %v1879_v38 = vld [vmem:[%s2274_s26 + $0x208] ss:$16 sps:$4 sm:$0xff]  }
  0x7f   : > { %1118 = vmatpush2.bf16.msra.mxu0 %v1792_v39  ;;  %v1884_v39 = vld [vmem:[%s2274_s26 + $0x1ec] ss:$16 sps:$4 sm:$0xff]  }
  0x80   : > { %1159 = vmatpush2.bf16.msra.mxu1 %v1793_v40  ;;  %1119 = vmatprep.subr.bf16.mxu0 %v1794_v41  ;;  %v1887_v40 = vld [vmem:[%s2274_s26 + $0x3ec] ss:$16 sps:$4 sm:$0xff]   ;;  %v1882_v41 = vld [vmem:[%s2274_s26 + $0x1e8] ss:$16 sps:$4 sm:$0xff]  }
  0x81   : > { %1160 = vmatprep.subr.bf16.mxu1 %v1796_v42  ;;  %v1885_v42 = vld [vmem:[%s2274_s26 + $0x3e8] ss:$16 sps:$4 sm:$0xff]  }
  0x83   : > { %1120 = vmatpush2.bf16.msra.mxu0 %v1798_v43  ;;  %v1890_v43 = vld [vmem:[%s2274_s26 + $0x1cc] ss:$16 sps:$4 sm:$0xff]  }
  0x84   : > { %1161 = vmatpush2.bf16.msra.mxu1 %v1799_v44  ;;  %1121 = vmatprep.subr.bf16.mxu0 %v1800_v45  ;;  %v1893_v44 = vld [vmem:[%s2274_s26 + $0x3cc] ss:$16 sps:$4 sm:$0xff]   ;;  %v1888_v45 = vld [vmem:[%s2274_s26 + $0x1c8] ss:$16 sps:$4 sm:$0xff]  }
  0x85   : > { %1162 = vmatprep.subr.bf16.mxu1 %v1802_v46  ;;  %v1891_v46 = vld [vmem:[%s2274_s26 + $0x3c8] ss:$16 sps:$4 sm:$0xff]  }
  0x87   : > { %1122 = vmatpush2.bf16.msra.mxu0 %v1804_v50  ;;  %v1897_v50 = vld [vmem:[%s2274_s26 + $0x3a8] ss:$16 sps:$4 sm:$0xff]  }
  0x88   : > { %1163 = vmatpush2.bf16.msra.mxu1 %v1805_v51  ;;  %1123 = vmatprep.subr.bf16.mxu0 %v1806_v53  ;;  %v1902_v51 = vld [vmem:[%s2274_s26 + $0x18c] ss:$16 sps:$4 sm:$0xff]   ;;  %v1900_v53 = vld [vmem:[%s2274_s26 + $0x188] ss:$16 sps:$4 sm:$0xff]  }
  0x89   : > { %1164 = vmatprep.subr.bf16.mxu1 %v1808_v54  ;;  %v1903_v54 = vld [vmem:[%s2274_s26 + $0x388] ss:$16 sps:$4 sm:$0xff]  }
  0x8b   : > { %1124 = vmatpush2.bf16.msra.mxu0 %v1810_v55  ;;  %v1908_v55 = vld [vmem:[%s2274_s26 + $0x16c] ss:$16 sps:$4 sm:$0xff]  }
  0x8c   : > { %1165 = vmatpush2.bf16.msra.mxu1 %v1811_v56  ;;  %1125 = vmatprep.subr.bf16.mxu0 %v1812_v57  ;;  %v1911_v56 = vld [vmem:[%s2274_s26 + $0x36c] ss:$16 sps:$4 sm:$0xff]   ;;  %v1906_v57 = vld [vmem:[%s2274_s26 + $0x168] ss:$16 sps:$4 sm:$0xff]  }
  0x8d   : > { %1166 = vmatprep.subr.bf16.mxu1 %v1814_v58  ;;  %v1909_v58 = vld [vmem:[%s2274_s26 + $0x368] ss:$16 sps:$4 sm:$0xff]  }
  0x8f   : > { %1126 = vmatpush2.bf16.msra.mxu0 %v1816_v59  ;;  %v1914_v59 = vld [vmem:[%s2274_s26 + $0x14c] ss:$16 sps:$4 sm:$0xff]  }
  0x90   : > { %1167 = vmatpush2.bf16.msra.mxu1 %v1817_v60  ;;  %1127 = vmatprep.subr.bf16.mxu0 %v1818_v61  ;;  %v1917_v60 = vld [vmem:[%s2274_s26 + $0x34c] ss:$16 sps:$4 sm:$0xff]   ;;  %v1912_v61 = vld [vmem:[%s2274_s26 + $0x148] ss:$16 sps:$4 sm:$0xff]  }
  0x91   : > { %1168 = vmatprep.subr.bf16.mxu1 %v1820_v62  ;;  %v1915_v62 = vld [vmem:[%s2274_s26 + $0x348] ss:$16 sps:$4 sm:$0xff]  }
  0x93   : > { %1128 = vmatpush2.bf16.msra.mxu0 %v1822_v63  ;;  %v1920_v63 = vld [vmem:[%s2274_s26 + $0x12c] ss:$16 sps:$4 sm:$0xff]  }
  0x94   : > { %1169 = vmatpush2.bf16.msra.mxu1 %v1823_v0  ;;  %1129 = vmatprep.subr.bf16.mxu0 %v1824_v1  ;;  %v1923_v0 = vld [vmem:[%s2274_s26 + $0x32c] ss:$16 sps:$4 sm:$0xff]   ;;  %v1918_v1 = vld [vmem:[%s2274_s26 + $0x128] ss:$16 sps:$4 sm:$0xff]  }
  0x95   : > { %1170 = vmatprep.subr.bf16.mxu1 %v1826_v2  ;;  %v1921_v2 = vld [vmem:[%s2274_s26 + $0x328] ss:$16 sps:$4 sm:$0xff]  }
  0x97   : > { %1130 = vmatpush2.bf16.msra.mxu0 %v1828_v3  ;;  %v1926_v3 = vld [vmem:[%s2274_s26 + $0x10c] ss:$16 sps:$4 sm:$0xff]  }
  0x98   : > { %1171 = vmatpush2.bf16.msra.mxu1 %v1829_v4  ;;  %1181 = vmatprep.subr.bf16.mxu0 %v1836_v5  ;;  %v1929_v4 = vld [vmem:[%s2274_s26 + $0x30c] ss:$16 sps:$4 sm:$0xff]   ;;  %v1924_v5 = vld [vmem:[%s2274_s26 + $0x108] ss:$16 sps:$4 sm:$0xff]  }
  0x99   : > { %1222 = vmatprep.subr.bf16.mxu1 %v1839_v6  ;;  %v1927_v6 = vld [vmem:[%s2274_s26 + $0x308] ss:$16 sps:$4 sm:$0xff]  }
  0x9a   : > { %1132 = vmatmul.mubr.bf16.vlgmr.msra.gmra.mxu0 %v2372_v7 }
  0x9b   : > { %1173 = vmatmul.mubr.bf16.vlgmr.msra.gmra.mxu1 %v2374_v8  ;;  %1182 = vmatpush1.bf16.msra.mxu0 %v1834_v9 }
  0x9c   : > { %1223 = vmatpush1.bf16.msra.mxu1 %v1837_v10  ;;  %1183 = vmatprep.subr.bf16.mxu0 %v1842_v11  ;;  %v311_v10 = vld [vmem:[#allocation2 + $0x10] sm:$0xff] }
  0x9d   : > { %1224 = vmatprep.subr.bf16.mxu1 %v1845_v12  ;;  %1213 = vmatprep.mubr.bf16.mxu0 %v2348_v48  ;;  %v1899_v48 = vld [vmem:[%s2274_s26 + $0x3ac] ss:$16 sps:$4 sm:$0xff]  }
  0x9e   : > { %1254 = vmatprep.mubr.bf16.mxu1 %v1492_v52  ;;  %v1905_v52 = vld [vmem:[%s2274_s26 + $0x38c] ss:$16 sps:$4 sm:$0xff]  }
  0x9f   : > { %1184 = vmatpush1.bf16.msra.mxu0 %v1840_v13 }
  0xa0   : > { %1225 = vmatpush1.bf16.msra.mxu1 %v1843_v14  ;;  %1185 = vmatprep.subr.bf16.mxu0 %v1848_v15  ;;  %v312_v14 = vld [vmem:[#allocation2] sm:$0xff] }
  0xa1   : > { %1226 = vmatprep.subr.bf16.mxu1 %v1851_v16 }
  0xa3   : > { %1186 = vmatpush1.bf16.msra.mxu0 %v1846_v17 }
  0xa4   : > { %1227 = vmatpush1.bf16.msra.mxu1 %v1849_v18  ;;  %1187 = vmatprep.subr.bf16.mxu0 %v1854_v19 }
  0xa5   : > { %1228 = vmatprep.subr.bf16.mxu1 %v1857_v20 }
  0xa7   : > { %1188 = vmatpush1.bf16.msra.mxu0 %v1852_v21 }
  0xa8   : > { %1229 = vmatpush1.bf16.msra.mxu1 %v1855_v22  ;;  %1189 = vmatprep.subr.bf16.mxu0 %v1860_v23 }
  0xa9   : > { %1230 = vmatprep.subr.bf16.mxu1 %v1863_v24 }
  0xab   : > { %1190 = vmatpush1.bf16.msra.mxu0 %v1858_v25 }
  0xac   : > { %1231 = vmatpush1.bf16.msra.mxu1 %v1861_v26  ;;  %1191 = vmatprep.subr.bf16.mxu0 %v1866_v27  ;;  %v314_v26 = vld [vmem:[#allocation2 + $0x8] sm:$0xff] }
  0xad   : > { %1232 = vmatprep.subr.bf16.mxu1 %v1869_v28 }
  0xaf   : > { %1192 = vmatpush1.bf16.msra.mxu0 %v1864_v29 }
  0xb0   : > { %1233 = vmatpush1.bf16.msra.mxu1 %v1867_v30  ;;  %1193 = vmatprep.subr.bf16.mxu0 %v1872_v31 }
  0xb1   : > { %1234 = vmatprep.subr.bf16.mxu1 %v1875_v32 }
  0xb3   : > { %1194 = vmatpush1.bf16.msra.mxu0 %v1870_v33 }
  0xb4   : > { %1235 = vmatpush1.bf16.msra.mxu1 %v1873_v34  ;;  %1195 = vmatprep.subr.bf16.mxu0 %v1878_v35 }
  0xb5   : > { %1236 = vmatprep.subr.bf16.mxu1 %v1881_v36 }
  0xb7   : > { %1196 = vmatpush1.bf16.msra.mxu0 %v1876_v37 }
  0xb8   : > { %1237 = vmatpush1.bf16.msra.mxu1 %v1879_v38  ;;  %1197 = vmatprep.subr.bf16.mxu0 %v1884_v39 }
  0xb9   : > { %1238 = vmatprep.subr.bf16.mxu1 %v1887_v40 }
  0xbb   : > { %1198 = vmatpush2.bf16.msra.mxu0 %v1882_v41 }
  0xbc   : > { %1239 = vmatpush2.bf16.msra.mxu1 %v1885_v42  ;;  %1199 = vmatprep.subr.bf16.mxu0 %v1890_v43 }
  0xbd   : > { %1240 = vmatprep.subr.bf16.mxu1 %v1893_v44 }
  0xbf   : > { %1200 = vmatpush2.bf16.msra.mxu0 %v1888_v45 }
  0xc0   : > { %1241 = vmatpush2.bf16.msra.mxu1 %v1891_v46  ;;  %1201 = vmatprep.subr.bf16.mxu0 %v1896_v47 }
  0xc1   : > { %1242 = vmatprep.subr.bf16.mxu1 %v1899_v48 }
  0xc3   : > { %1202 = vmatpush2.bf16.msra.mxu0 %v1894_v49 }
  0xc4   : > { %1243 = vmatpush2.bf16.msra.mxu1 %v1897_v50  ;;  %1203 = vmatprep.subr.bf16.mxu0 %v1902_v51 }
  0xc5   : > { %1244 = vmatprep.subr.bf16.mxu1 %v1905_v52 }
  0xc7   : > { %1204 = vmatpush2.bf16.msra.mxu0 %v1900_v53 }
  0xc8   : > { %1245 = vmatpush2.bf16.msra.mxu1 %v1903_v54  ;;  %1205 = vmatprep.subr.bf16.mxu0 %v1908_v55 }
  0xc9   : > { %1246 = vmatprep.subr.bf16.mxu1 %v1911_v56 }
  0xcb   : > { %1206 = vmatpush2.bf16.msra.mxu0 %v1906_v57 }
  0xcc   : > { %1247 = vmatpush2.bf16.msra.mxu1 %v1909_v58  ;;  %1207 = vmatprep.subr.bf16.mxu0 %v1914_v59 }
  0xcd   : > { %1248 = vmatprep.subr.bf16.mxu1 %v1917_v60 }
  0xcf   : > { %1208 = vmatpush2.bf16.msra.mxu0 %v1912_v61 }
  0xd0   : > { %1249 = vmatpush2.bf16.msra.mxu1 %v1915_v62  ;;  %1209 = vmatprep.subr.bf16.mxu0 %v1920_v63 }
  0xd1   : > { %1250 = vmatprep.subr.bf16.mxu1 %v1923_v0 }
  0xd3   : > { %1210 = vmatpush2.bf16.msra.mxu0 %v1918_v1 }
  0xd4   : > { %1251 = vmatpush2.bf16.msra.mxu1 %v1921_v2  ;;  %1211 = vmatprep.subr.bf16.mxu0 %v1926_v3 }
  0xd5   : > { %1252 = vmatprep.subr.bf16.mxu1 %v1929_v4 }
  0xd7   : > { %1212 = vmatpush2.bf16.msra.mxu0 %v1924_v5 }
  0xd8   : > { %1253 = vmatpush2.bf16.msra.mxu1 %v1927_v6 }
  0xda   : > { %1214 = vmatmul.mubr.bf16.vlgmr.msra.gmra.mxu0 %v2372_v7  ;;  %v313_v7 = vld [vmem:[#allocation2 + $0x18] sm:$0xff] }
  0xdb   : > { %1255 = vmatmul.mubr.bf16.vlgmr.msra.gmra.mxu1 %v2374_v8 }
 0x15a   : > { %v1133_v9 = vpop.f32.mrf.mxu0 }
 0x15b   : > { %v1174_v11 = vpop.f32.mrf.mxu1 }
 0x15c   : > { %v1175_v12 = vadd.f32 %v1174_v11, %v1133_v9  ;;  %v1135_v13 = vpop.f32.mrf.mxu0 }
 0x15d   : > { %v1176_v15 = vpop.f32.mrf.mxu1 }
 0x15e   : > { %v1263_v16 = vadd.f32 %v1175_v12, %v311_v10  ;;  %v1177_v17 = vadd.f32 %v1176_v15, %v1135_v13  ;;  %v1137_v18 = vpop.f32.mrf.mxu0 }
 0x15f   : > { %v1178_v19 = vpop.f32.mrf.mxu1 }
 0x160   : > { %1267 = vst [vmem:[#allocation2 + $0x10] sm:$0xff] %v1263_v16  ;;  %v1264_v20 = vadd.f32 %v1177_v17, %v312_v14  ;;  %v1138_v21 = vpop.f32.mrf.mxu0 }
 0x161   : > { %v1179_v22 = vpop.f32.mrf.mxu1 }
 0x162   : > { %1268 = vst [vmem:[#allocation2] sm:$0xff] %v1264_v20 }
 0x19a   : > { %v1215_v23 = vpop.f32.mrf.mxu0 }
 0x19b   : > { %v1256_v24 = vpop.f32.mrf.mxu1 }
 0x19c   : > { %v1257_v8 = vadd.f32 %v1256_v24, %v1215_v23  ;;  %v1217_v25 = vpop.f32.mrf.mxu0 }
 0x19d   : > { %v1258_v27 = vpop.f32.mrf.mxu1 }
 0x19e   : > { %v1265_v28 = vadd.f32 %v1257_v8, %v313_v7  ;;  %v1259_v29 = vadd.f32 %v1258_v27, %v1217_v25  ;;  %v1219_v30 = vpop.f32.mrf.mxu0  ;;  %1274 = sbr.rel (%p1621_p0) target bundleno = 434 (0x1b2), region = 48 }
 0x19f   : > { %v1260_v31 = vpop.f32.mrf.mxu1 }
 0x1a0   : > { %1269 = vst [vmem:[#allocation2 + $0x18] sm:$0xff] %v1265_v28  ;;  %v1266_v32 = vadd.f32 %v1259_v29, %v314_v26  ;;  %v1220_v33 = vpop.f32.mrf.mxu0 }
 0x1a1   : > { %v1261_v34 = vpop.f32.mrf.mxu1 }
 0x1a2   : > { %1270 = vst [vmem:[#allocation2 + $0x8] sm:$0xff] %v1266_v32 }
 0x1a3   : > { %v1281_v35 = vlaneseq  ;;  %v1279_v37 = vld [vmem:[%s239_s9] sm:$0xf]  ;;  %v1275_v38 = vld [vmem:[#allocation2 + $0x10] sm:$0xff] }
 0x1a4   : > { %v1276_v43 = vld [vmem:[#allocation2] sm:$0xff] }
 0x1a5   : > { %v1282_v36 = vshrl.u32 %v1281_v35, 7 }
 0x1a7   : > { %v1283_v39 = vsub.s32 0, %v1282_v36  ;;  %v1287_v40 = vsub.s32 1, %v1282_v36  ;;  %v1291_v41 = vsub.s32 2, %v1282_v36  ;;  %v1295_v42 = vsub.s32 3, %v1282_v36  ;;  %v1277_v44 = vld [vmem:[#allocation2 + $0x18] sm:$0xff] }
 0x1a9   : > { %v1278_v45 = vld [vmem:[#allocation2 + $0x8] sm:$0xff]  ;;  %v1284_v46 = vrot.slane %v1279_v37, %v1283_v39  ;;  %v1288_v47 = vrot.slane %v1279_v37, %v1287_v40  ;;  %v1292_v48 = vrot.slane %v1279_v37, %v1291_v41  ;;  %v1296_v49 = vrot.slane %v1279_v37, %v1295_v42 }
 0x1ab   : > { %v1301_v50 = vadd.f32 %v1284_v46, %v1275_v38  ;;  %v1302_v51 = vadd.f32 %v1288_v47, %v1276_v43  ;;  %v1303_v52 = vadd.f32 %v1292_v48, %v1277_v44  ;;  %v1304_v53 = vadd.f32 %v1296_v49, %v1278_v45 }
 0x1ad   : > { %v1305_v54 = vmax.f32 %v1301_v50, 0.0  ;;  %v1306_v55 = vmax.f32 %v1302_v51, 0.0  ;;  %v1307_v56 = vmax.f32 %v1303_v52, 0.0  ;;  %v1308_v57 = vmax.f32 %v1304_v53, 0.0 }
 0x1af   : > { %v1628_v58 = vpack.c.bf16 %v1306_v55, %v1305_v54  ;;  %v1629_v59 = vpack.c.bf16 %v1308_v57, %v1307_v56 }
 0x1b1   : > { %1325 = vst [vmem:[%s2298_s29] sm:$0xff] %v1628_v58  ;;  %1326 = vst [vmem:[%s2298_s29 + $0x8] sm:$0xff] %v1629_v59 }
 0x1b2 PF: > { %s19_s22 = sadd.s32 1, %s2080_s22   ;;  %s2501_s10 = sld [smem:[#allocation9_spill]] }
 0x1b3   : > { %p16_p1 = scmp.ge.s32.totalorder %s19_s22, 66   ;;  %s2502_s26 = sld [smem:[#allocation10_spill]] }
 0x1b4   : > { %s2503_s12 = smov %s2044_s13  ;;  %s2504_s13 = smov %s2048_s14 }
 0x1b5   : > { %s2505_s14 = smov %s2248_s30  ;;  %s2506_s15 = smov %s2056_s16 }
 0x1b6   : > { %s2507_s16 = smov %s2060_s17  ;;  %s2508_s17 = smov %s2253_s27 }
 0x1b7   : > { %s2509_s18 = smov %s2072_s20  ;;  %s2510_s19 = smov %s2076_s21 }
 0x1b8   : > { %s2511_s20 = smov %s2501_s10  ;;  %18 = sbr.rel (!%p16_p1) target bundleno = 11 (0xb), region = 96 }
 0x1b9   : > { %s2512_s21 = smov %s2502_s26 }
 0x1bd   :  { %1357 = vsyncpa [#allocation4], 1 }
 0x1be   :  { %1359 = vsyncpa [#allocation4 + $0x1], 1 }
 0x1bf   :  { %1360 = vsyncpa [#allocation6], 1 }
 0x1c0   :  { %1362 = vsyncpa [#allocation6 + $0x1], 1 }

</bundles_post_ra>
